<compile_context>
chip_gen: v7x
topology: tpu7x:2x2x1
jax: 0.10.0
libtpu: 0.0.40
codegen_flags: <defaults>
</compile_context>

<pallas_src>
import numpy as np
import jax
import jax.numpy as jnp
from jax.experimental import pallas as pl
from jax.experimental.pallas import tpu as pltpu

# ----- module config (module_cfg.embed) -----
C_S = 32          # c_s
C_Z = 32          # c_z
FEAT_DIM = 32     # feat_dim
NUM_BINS = 16     # num_bins
TOTAL_EDGE_FEATS = FEAT_DIM * 3 + NUM_BINS * 2 + 2   # 130
MAX_LEN = 2056.0
LN_EPS = 1e-5


def make_constants():
    K = np.arange(FEAT_DIM // 2, dtype=np.float64)
    freq = (np.pi / np.power(MAX_LEN, 2.0 * K / FEAT_DIM)).astype(np.float32)
    lower = np.linspace(0.001, 20.0, NUM_BINS).astype(np.float32)
    upper = np.concatenate([lower[1:], np.array([1e8], np.float32)])
    return jnp.asarray(freq), jnp.asarray(lower), jnp.asarray(upper)


def edge_feature_kernel(u_ref, v_ref, rp_ref, t_ref, sc_ref, em_ref,
                        bins_ref, w1d_ref, w23_ref, vecs_ref, out_ref):
    ti, N, cz = rp_ref.shape          # i-tile rows, nodes, c_z
    R = ti * N                        # edge rows handled by this grid step
    i0 = pl.multiple_of(pl.program_id(1) * ti, ti)

    def dot(a, b):
        # The remaining matmuls are tiny (R x 32 x 32); per-dot HIGHEST keeps the kernel
        # bit-faithful to the f32 reference at negligible MXU cost (no global config).
        return jnp.dot(a, b, preferred_element_type=jnp.float32,
                       precision=jax.lax.Precision.HIGHEST)

    def repeat_rows(x):
        # (ti, c) -> (ti*N, c): row k repeated N consecutive times.  Only static row
        # slices, sublane broadcasts and an aligned sublane concat (no lane movement).
        return jnp.concatenate(
            [jnp.broadcast_to(x[k:k + 1, :], (N, x.shape[1])) for k in range(ti)], axis=0)

    def tile_rows(x):
        # (N, c) -> (ti*N, c): whole block repeated ti times (leading-dim broadcast +
        # layout-free leading-dim merge; N is a multiple of 8).
        return jnp.broadcast_to(x[None, :, :], (ti, N, x.shape[1])).reshape(R, x.shape[1])

    # ---- layer 1: cross-node (u[i] + v[j]) + relpos + all layer-1 biases (precomputed) ----
    h = rp_ref[...].reshape(R, cz)       # relpos table already includes every layer-1 bias
    h = h + repeat_rows(u_ref[0])        # u[i] contribution (includes flow[i] * W1_fa)
    h = h + tile_rows(v_ref[0])          # v[j] contribution (includes flow[j] * W1_fb)

    # ---- fused distograms: squared distances vs squared bin edges (sqrt-free) ----
    lo2 = bins_ref[0:1, :]
    hi2 = bins_ref[1:2, :]

    def distogram(pos_ref):
        p_all = pos_ref[0]                               # (N, 8) zero-padded xyz
        p_tile = pos_ref[0, pl.ds(i0, ti), :]            # (ti, 8) rows of this i-tile
        diff = repeat_rows(p_tile) - tile_rows(p_all)    # (R, 8)
        d2 = jnp.sum(diff * diff, axis=-1, keepdims=True)
        return jnp.logical_and(d2 > lo2, d2 < hi2).astype(jnp.float32)   # (R, NUM_BINS)

    dist_both = jnp.concatenate([distogram(t_ref), distogram(sc_ref)], axis=-1)  # (R, 2*NB)
    h = h + dot(dist_both, w1d_ref[...])

    # ---- edge_embedder: ReLU -> Linear -> ReLU -> Linear -> LayerNorm ----
    h = jnp.maximum(h, 0.0)
    h = jnp.maximum(dot(h, w23_ref[0:cz, :]) + vecs_ref[0:1, :], 0.0)
    h = dot(h, w23_ref[cz:, :]) + vecs_ref[1:2, :]

    mu = jnp.mean(h, axis=-1, keepdims=True)
    var = jnp.mean((h - mu) * (h - mu), axis=-1, keepdims=True)
    h = (h - mu) * jax.lax.rsqrt(var + LN_EPS)
    h = h * vecs_ref[2:3, :] + vecs_ref[3:4, :]

    out_ref[0] = h * em_ref[0]           # edge-mask multiply


def edge_feature_net(params, s, t, sc_t, edge_mask, flow_mask, tile_i=None):
    B, N, _ = s.shape
    assert N % 8 == 0, "N must be a multiple of 8 (sublane tile)"
    if tile_i is None:
        tile_i = 16 if N % 16 == 0 else 8   # keeps in-kernel static unroll small
    assert N % tile_i == 0
    R = tile_i * N
    f32 = jnp.float32
    hp = jax.lax.Precision.HIGHEST
    dotp = lambda a, b: jnp.dot(a, b, precision=hp)

    fd, hd, nb, cz = FEAT_DIM, FEAT_DIM // 2, NUM_BINS, C_Z

    # W1 split by the feature-concatenation blocks:
    # [p_i | p_j | relpos | dist(t) | dist(sc_t) | flow_i | flow_j]
    w1 = params["w1"]
    w1_ci = w1[0:fd]
    w1_cj = w1[fd:2 * fd]
    w1_rp = w1[2 * fd:3 * fd]
    w1_d = w1[3 * fd:3 * fd + nb]
    w1_sc = w1[3 * fd + nb:3 * fd + 2 * nb]
    w1_fa = w1[3 * fd + 2 * nb:3 * fd + 2 * nb + 1]
    w1_fb = w1[3 * fd + 2 * nb + 1:3 * fd + 2 * nb + 2]

    s32 = s.astype(f32)
    fm = flow_mask.astype(f32)[..., None]                                   # (B, N, 1)

    # fold linear_s_p and the flow-mask cross-concat through W1 (per-node contributions)
    u = dotp(s32, dotp(params["w_sp"], w1_ci)) + fm * w1_fa                 # (B, N, C_Z)
    v = dotp(s32, dotp(params["w_sp"], w1_cj)) + fm * w1_fb                 # (B, N, C_Z)

    # relpos table folded through linear_relpos and W1, plus every layer-1 bias term
    freq, lower, upper = make_constants()
    idx = jnp.arange(N, dtype=f32)
    ang = (idx[:, None] - idx[None, :])[:, :, None] * freq[None, None, :]   # (N, N, fd//2)
    w_rp1 = dotp(params["w_rp"], w1_rp)                                     # (fd, C_Z)
    bias1 = (params["b1"] + dotp(params["b_rp"], w1_rp)
             + dotp(params["b_sp"], w1_ci) + dotp(params["b_sp"], w1_cj))   # (1, C_Z)
    rp = dotp(jnp.sin(ang), w_rp1[:hd]) + dotp(jnp.cos(ang), w_rp1[hd:]) + bias1   # (N,N,C_Z)

    # xyz zero-padded to 8 lanes (norms unchanged)
    pad = lambda x: jnp.pad(x.astype(f32), ((0, 0), (0, 0), (0, 8 - x.shape[-1])))
    t_p, sc_p = pad(t), pad(sc_t)

    em = edge_mask.astype(f32).reshape(B, N * N, 1)

    # packed small constants
    bins2 = jnp.stack([lower * lower, upper * upper], axis=0)               # (2, NUM_BINS)
    w1_dsc = jnp.concatenate([w1_d, w1_sc], axis=0)                         # (2*NB, C_Z)
    w23 = jnp.concatenate([params["w2"], params["w3"]], axis=0)             # (2*C_Z, C_Z)
    vecs = jnp.concatenate([params["b2"], params["b3"],
                            params["gamma"], params["beta"]], axis=0)       # (4, C_Z)

    in_specs = [
        pl.BlockSpec((1, tile_i, cz), lambda b, it: (b, it, 0)),   # u   (this i-tile)
        pl.BlockSpec((1, N, cz),      lambda b, it: (b, 0, 0)),    # v   (all nodes)
        pl.BlockSpec((tile_i, N, cz), lambda b, it: (it, 0, 0)),   # relpos + bias table
        pl.BlockSpec((1, N, 8),       lambda b, it: (b, 0, 0)),    # t    (padded xyz)
        pl.BlockSpec((1, N, 8),       lambda b, it: (b, 0, 0)),    # sc_t (padded xyz)
        pl.BlockSpec((1, R, 1),       lambda b, it: (b, it, 0)),   # edge mask rows
        pl.BlockSpec((2, nb),         lambda b, it: (0, 0)),       # squared bin edges
        pl.BlockSpec((2 * nb, cz),    lambda b, it: (0, 0)),       # [W1_d; W1_sc]
        pl.BlockSpec((2 * cz, cz),    lambda b, it: (0, 0)),       # [W2; W3]
        pl.BlockSpec((4, cz),         lambda b, it: (0, 0)),       # [b2; b3; gamma; beta]
    ]

    out = pl.pallas_call(
        edge_feature_kernel,
        out_shape=jax.ShapeDtypeStruct((B, N * N, cz), jnp.float32),
        grid_spec=pltpu.PrefetchScalarGridSpec(
            num_scalar_prefetch=0,
            grid=(B, N // tile_i),
            in_specs=in_specs,
            out_specs=pl.BlockSpec((1, R, cz), lambda b, it: (b, it, 0)),
        ),
        compiler_params=pltpu.CompilerParams(
            dimension_semantics=("parallel", "parallel")),
    )(u, v, rp, t_p, sc_p, em, bins2, w1_dsc, w23, vecs)
    return out.reshape(B, N, N, cz)


# ----- deterministic synthetic parameter init (shapes from __init__) -----
def init_params(key):
    ks = jax.random.split(key, 5)

    def lin(k, fan_in, fan_out):
        k1, k2 = jax.random.split(k)
        w = jax.random.normal(k1, (fan_in, fan_out), jnp.float32) / np.sqrt(fan_in)
        b = jax.random.normal(k2, (1, fan_out), jnp.float32) * 0.01
        return w, b

    p = {}
    p["w_sp"], p["b_sp"] = lin(ks[0], C_S, FEAT_DIM)                 # linear_s_p
    p["w_rp"], p["b_rp"] = lin(ks[1], FEAT_DIM, FEAT_DIM)            # linear_relpos
    p["w1"], p["b1"] = lin(ks[2], TOTAL_EDGE_FEATS, C_Z)             # edge_embedder[0]
    p["w2"], p["b2"] = lin(ks[3], C_Z, C_Z)                          # edge_embedder[2]
    p["w3"], p["b3"] = lin(ks[4], C_Z, C_Z)                          # edge_embedder[4]
    p["gamma"] = jnp.ones((1, C_Z), jnp.float32)                     # LayerNorm
    p["beta"] = jnp.zeros((1, C_Z), jnp.float32)
    return p


# ----- pure-JAX reference (mirrors the PyTorch forward) -----
def reference(params, s, t, sc_t, edge_mask, flow_mask, freq, lower, upper):
    B, N, _ = s.shape
    p = s @ params["w_sp"] + params["b_sp"]
    cn = jnp.concatenate([
        jnp.broadcast_to(p[:, :, None, :], (B, N, N, FEAT_DIM)),
        jnp.broadcast_to(p[:, None, :, :], (B, N, N, FEAT_DIM))], axis=-1)
    r = jnp.arange(N, dtype=jnp.float32)
    d = r[:, None] - r[None, :]
    ang = d[:, :, None] * freq[None, None, :]
    pe = jnp.concatenate([jnp.sin(ang), jnp.cos(ang)], axis=-1)
    relpos = pe @ params["w_rp"] + params["b_rp"]
    relpos = jnp.broadcast_to(relpos[None], (B, N, N, FEAT_DIM))

    def distogram(pos):
        dd = jnp.linalg.norm(pos[:, :, None, :] - pos[:, None, :, :], axis=-1)[..., None]
        return ((dd > lower) & (dd < upper)).astype(jnp.float32)

    df, sf = distogram(t), distogram(sc_t)
    fmv = flow_mask[..., None]
    diff = jnp.concatenate([
        jnp.broadcast_to(fmv[:, :, None, :], (B, N, N, 1)),
        jnp.broadcast_to(fmv[:, None, :, :], (B, N, N, 1))], axis=-1)
    feats = jnp.concatenate([cn, relpos, df, sf, diff], axis=-1)
    h = jnp.maximum(feats @ params["w1"] + params["b1"], 0.0)
    h = jnp.maximum(h @ params["w2"] + params["b2"], 0.0)
    h = h @ params["w3"] + params["b3"]
    mu = h.mean(-1, keepdims=True)
    var = ((h - mu) ** 2).mean(-1, keepdims=True)
    h = (h - mu) / jnp.sqrt(var + LN_EPS)
    h = h * params["gamma"] + params["beta"]
    return h * edge_mask[..., None]


if __name__ == "__main__":
    key = jax.random.PRNGKey(0)
    k1, k2, k3, k4, k5 = jax.random.split(key, 5)
    B, N = 2, 16
    s = jax.random.normal(k1, (B, N, C_S), jnp.float32)
    t = jax.random.normal(k2, (B, N, 3), jnp.float32) * 4.0
    sc_t = jax.random.normal(k3, (B, N, 3), jnp.float32) * 4.0
    edge_mask = (jax.random.uniform(k4, (B, N, N)) > 0.2).astype(jnp.float32)
    flow_mask = (jax.random.uniform(k5, (B, N)) > 0.5).astype(jnp.float32)

    params = init_params(jax.random.PRNGKey(1))

    out = edge_feature_net(params, s, t, sc_t, edge_mask, flow_mask)
    out = jax.block_until_ready(out)

    freq, lower, upper = make_constants()
    # scoped high precision for the ground truth only (no global config mutation)
    with jax.default_matmul_precision("highest"):
        ref = reference(params, s, t, sc_t, edge_mask, flow_mask, freq, lower, upper)
        ref = jax.block_until_ready(ref)

    np.testing.assert_allclose(np.asarray(out), np.asarray(ref), atol=2e-3, rtol=2e-3)
    print("KERNEL_OK")
</pallas_src>

<mosaic_0001>
module attributes {stable_mosaic.version = 11 : i64} {
  func.func @edge_feature_kernel(%arg0: i32, %arg1: i32, %arg2: memref<1x16x32xf32, #tpu.memory_space<vmem>>, %arg3: memref<1x16x32xf32, #tpu.memory_space<vmem>>, %arg4: memref<16x16x32xf32, #tpu.memory_space<vmem>>, %arg5: memref<1x16x8xf32, #tpu.memory_space<vmem>>, %arg6: memref<1x16x8xf32, #tpu.memory_space<vmem>>, %arg7: memref<1x256x1xf32, #tpu.memory_space<vmem>>, %arg8: memref<2x16xf32, #tpu.memory_space<vmem>>, %arg9: memref<32x32xf32, #tpu.memory_space<vmem>>, %arg10: memref<64x32xf32, #tpu.memory_space<vmem>>, %arg11: memref<4x32xf32, #tpu.memory_space<vmem>>, %arg12: memref<1x256x32xf32, #tpu.memory_space<vmem>>) attributes {dimension_semantics = [#tpu.dimension_semantics<parallel>, #tpu.dimension_semantics<parallel>], iteration_bounds = array<i64: 2, 1>, scalar_prefetch = 0 : i64, scratch_operands = 0 : i64, tpu.core_type = #tpu.core_type<tc>, window_params = [{transform_indices = @transform_0, window_bounds = array<i64: 1, 16, 32>}, {transform_indices = @transform_1, window_bounds = array<i64: 1, 16, 32>}, {transform_indices = @transform_2, window_bounds = array<i64: 16, 16, 32>}, {transform_indices = @transform_3, window_bounds = array<i64: 1, 16, 8>}, {transform_indices = @transform_4, window_bounds = array<i64: 1, 16, 8>}, {transform_indices = @transform_5, window_bounds = array<i64: 1, 256, 1>}, {pipeline_mode = #tpu.pipeline_mode<synchronous>, transform_indices = @transform_6, window_bounds = array<i64: 2, 16>}, {pipeline_mode = #tpu.pipeline_mode<synchronous>, transform_indices = @transform_7, window_bounds = array<i64: 32, 32>}, {pipeline_mode = #tpu.pipeline_mode<synchronous>, transform_indices = @transform_8, window_bounds = array<i64: 64, 32>}, {pipeline_mode = #tpu.pipeline_mode<synchronous>, transform_indices = @transform_9, window_bounds = array<i64: 4, 32>}, {transform_indices = @transform_10, window_bounds = array<i64: 1, 256, 32>}]} {
    %c16_i32 = arith.constant 16 : i32
    %0 = arith.muli %arg1, %c16_i32 : i32
    %1 = tpu.assume_multiple %0, 16 : i32
    %c0 = arith.constant 0 : index
    %c0_0 = arith.constant 0 : index
    %c0_1 = arith.constant 0 : index
    %2 = vector.load %arg4[%c0, %c0_0, %c0_1] : memref<16x16x32xf32, #tpu.memory_space<vmem>>, vector<16x16x32xf32>
    %3 = vector.shape_cast %2 : vector<16x16x32xf32> to vector<256x32xf32>
    %c0_2 = arith.constant 0 : index
    %c0_3 = arith.constant 0 : index
    %c0_4 = arith.constant 0 : index
    %4 = vector.load %arg2[%c0_2, %c0_3, %c0_4] : memref<1x16x32xf32, #tpu.memory_space<vmem>>, vector<1x16x32xf32>
    %5 = vector.shape_cast %4 : vector<1x16x32xf32> to vector<16x32xf32>
    %6 = vector.extract_strided_slice %5 {offsets = [0, 0], sizes = [1, 32], strides = [1, 1]} : vector<16x32xf32> to vector<1x32xf32>
    %7 = vector.shape_cast %6 : vector<1x32xf32> to vector<1x32xf32>
    %8 = vector.broadcast %7 : vector<1x32xf32> to vector<16x32xf32>
    %9 = vector.extract_strided_slice %5 {offsets = [1, 0], sizes = [1, 32], strides = [1, 1]} : vector<16x32xf32> to vector<1x32xf32>
    %10 = vector.shape_cast %9 : vector<1x32xf32> to vector<1x32xf32>
    %11 = vector.broadcast %10 : vector<1x32xf32> to vector<16x32xf32>
    %12 = vector.extract_strided_slice %5 {offsets = [2, 0], sizes = [1, 32], strides = [1, 1]} : vector<16x32xf32> to vector<1x32xf32>
    %13 = vector.shape_cast %12 : vector<1x32xf32> to vector<1x32xf32>
    %14 = vector.broadcast %13 : vector<1x32xf32> to vector<16x32xf32>
    %15 = vector.extract_strided_slice %5 {offsets = [3, 0], sizes = [1, 32], strides = [1, 1]} : vector<16x32xf32> to vector<1x32xf32>
    %16 = vector.shape_cast %15 : vector<1x32xf32> to vector<1x32xf32>
    %17 = vector.broadcast %16 : vector<1x32xf32> to vector<16x32xf32>
    %18 = vector.extract_strided_slice %5 {offsets = [4, 0], sizes = [1, 32], strides = [1, 1]} : vector<16x32xf32> to vector<1x32xf32>
    %19 = vector.shape_cast %18 : vector<1x32xf32> to vector<1x32xf32>
    %20 = vector.broadcast %19 : vector<1x32xf32> to vector<16x32xf32>
    %21 = vector.extract_strided_slice %5 {offsets = [5, 0], sizes = [1, 32], strides = [1, 1]} : vector<16x32xf32> to vector<1x32xf32>
    %22 = vector.shape_cast %21 : vector<1x32xf32> to vector<1x32xf32>
    %23 = vector.broadcast %22 : vector<1x32xf32> to vector<16x32xf32>
    %24 = vector.extract_strided_slice %5 {offsets = [6, 0], sizes = [1, 32], strides = [1, 1]} : vector<16x32xf32> to vector<1x32xf32>
    %25 = vector.shape_cast %24 : vector<1x32xf32> to vector<1x32xf32>
    %26 = vector.broadcast %25 : vector<1x32xf32> to vector<16x32xf32>
    %27 = vector.extract_strided_slice %5 {offsets = [7, 0], sizes = [1, 32], strides = [1, 1]} : vector<16x32xf32> to vector<1x32xf32>
    %28 = vector.shape_cast %27 : vector<1x32xf32> to vector<1x32xf32>
    %29 = vector.broadcast %28 : vector<1x32xf32> to vector<16x32xf32>
    %30 = vector.extract_strided_slice %5 {offsets = [8, 0], sizes = [1, 32], strides = [1, 1]} : vector<16x32xf32> to vector<1x32xf32>
    %31 = vector.shape_cast %30 : vector<1x32xf32> to vector<1x32xf32>
    %32 = vector.broadcast %31 : vector<1x32xf32> to vector<16x32xf32>
    %33 = vector.extract_strided_slice %5 {offsets = [9, 0], sizes = [1, 32], strides = [1, 1]} : vector<16x32xf32> to vector<1x32xf32>
    %34 = vector.shape_cast %33 : vector<1x32xf32> to vector<1x32xf32>
    %35 = vector.broadcast %34 : vector<1x32xf32> to vector<16x32xf32>
    %36 = vector.extract_strided_slice %5 {offsets = [10, 0], sizes = [1, 32], strides = [1, 1]} : vector<16x32xf32> to vector<1x32xf32>
    %37 = vector.shape_cast %36 : vector<1x32xf32> to vector<1x32xf32>
    %38 = vector.broadcast %37 : vector<1x32xf32> to vector<16x32xf32>
    %39 = vector.extract_strided_slice %5 {offsets = [11, 0], sizes = [1, 32], strides = [1, 1]} : vector<16x32xf32> to vector<1x32xf32>
    %40 = vector.shape_cast %39 : vector<1x32xf32> to vector<1x32xf32>
    %41 = vector.broadcast %40 : vector<1x32xf32> to vector<16x32xf32>
    %42 = vector.extract_strided_slice %5 {offsets = [12, 0], sizes = [1, 32], strides = [1, 1]} : vector<16x32xf32> to vector<1x32xf32>
    %43 = vector.shape_cast %42 : vector<1x32xf32> to vector<1x32xf32>
    %44 = vector.broadcast %43 : vector<1x32xf32> to vector<16x32xf32>
    %45 = vector.extract_strided_slice %5 {offsets = [13, 0], sizes = [1, 32], strides = [1, 1]} : vector<16x32xf32> to vector<1x32xf32>
    %46 = vector.shape_cast %45 : vector<1x32xf32> to vector<1x32xf32>
    %47 = vector.broadcast %46 : vector<1x32xf32> to vector<16x32xf32>
    %48 = vector.extract_strided_slice %5 {offsets = [14, 0], sizes = [1, 32], strides = [1, 1]} : vector<16x32xf32> to vector<1x32xf32>
    %49 = vector.shape_cast %48 : vector<1x32xf32> to vector<1x32xf32>
    %50 = vector.broadcast %49 : vector<1x32xf32> to vector<16x32xf32>
    %51 = vector.extract_strided_slice %5 {offsets = [15, 0], sizes = [1, 32], strides = [1, 1]} : vector<16x32xf32> to vector<1x32xf32>
    %52 = vector.shape_cast %51 : vector<1x32xf32> to vector<1x32xf32>
    %53 = vector.broadcast %52 : vector<1x32xf32> to vector<16x32xf32>
    %54 = tpu.concatenate %8, %11, %14, %17, %20, %23, %26, %29, %32, %35, %38, %41, %44, %47, %50, %53 in 0 : vector<16x32xf32>, vector<16x32xf32>, vector<16x32xf32>, vector<16x32xf32>, vector<16x32xf32>, vector<16x32xf32>, vector<16x32xf32>, vector<16x32xf32>, vector<16x32xf32>, vector<16x32xf32>, vector<16x32xf32>, vector<16x32xf32>, vector<16x32xf32>, vector<16x32xf32>, vector<16x32xf32>, vector<16x32xf32> -> vector<256x32xf32>
    %55 = arith.addf %3, %54 : vector<256x32xf32>
    %c0_5 = arith.constant 0 : index
    %c0_6 = arith.constant 0 : index
    %c0_7 = arith.constant 0 : index
    %56 = vector.load %arg3[%c0_5, %c0_6, %c0_7] : memref<1x16x32xf32, #tpu.memory_space<vmem>>, vector<1x16x32xf32>
    %57 = vector.shape_cast %56 : vector<1x16x32xf32> to vector<16x32xf32>
    %58 = vector.shape_cast %57 : vector<16x32xf32> to vector<1x16x32xf32>
    %59 = vector.shape_cast %58 : vector<1x16x32xf32> to vector<1x16x32xf32>
    %60 = vector.broadcast %59 : vector<1x16x32xf32> to vector<16x16x32xf32>
    %61 = vector.shape_cast %60 : vector<16x16x32xf32> to vector<256x32xf32>
    %62 = arith.addf %55, %61 : vector<256x32xf32>
    %c0_8 = arith.constant 0 : index
    %c0_9 = arith.constant 0 : index
    %63 = vector.load %arg8[%c0_8, %c0_9] : memref<2x16xf32, #tpu.memory_space<vmem>>, vector<1x16xf32>
    %c1 = arith.constant 1 : index
    %c0_10 = arith.constant 0 : index
    %64 = vector.load %arg8[%c1, %c0_10] : memref<2x16xf32, #tpu.memory_space<vmem>>, vector<1x16xf32>
    %c0_11 = arith.constant 0 : index
    %c0_12 = arith.constant 0 : index
    %c0_13 = arith.constant 0 : index
    %65 = vector.load %arg5[%c0_11, %c0_12, %c0_13] : memref<1x16x8xf32, #tpu.memory_space<vmem>>, vector<1x16x8xf32>
    %66 = vector.shape_cast %65 : vector<1x16x8xf32> to vector<16x8xf32>
    %c0_14 = arith.constant 0 : index
    %67 = arith.index_cast %1 : i32 to index
    %c0_15 = arith.constant 0 : index
    %68 = vector.load %arg5[%c0_14, %67, %c0_15] : memref<1x16x8xf32, #tpu.memory_space<vmem>>, vector<1x16x8xf32>
    %69 = vector.shape_cast %68 : vector<1x16x8xf32> to vector<16x8xf32>
    %70 = vector.extract_strided_slice %69 {offsets = [0, 0], sizes = [1, 8], strides = [1, 1]} : vector<16x8xf32> to vector<1x8xf32>
    %71 = vector.shape_cast %70 : vector<1x8xf32> to vector<1x8xf32>
    %72 = vector.broadcast %71 : vector<1x8xf32> to vector<16x8xf32>
    %73 = vector.extract_strided_slice %69 {offsets = [1, 0], sizes = [1, 8], strides = [1, 1]} : vector<16x8xf32> to vector<1x8xf32>
    %74 = vector.shape_cast %73 : vector<1x8xf32> to vector<1x8xf32>
    %75 = vector.broadcast %74 : vector<1x8xf32> to vector<16x8xf32>
    %76 = vector.extract_strided_slice %69 {offsets = [2, 0], sizes = [1, 8], strides = [1, 1]} : vector<16x8xf32> to vector<1x8xf32>
    %77 = vector.shape_cast %76 : vector<1x8xf32> to vector<1x8xf32>
    %78 = vector.broadcast %77 : vector<1x8xf32> to vector<16x8xf32>
    %79 = vector.extract_strided_slice %69 {offsets = [3, 0], sizes = [1, 8], strides = [1, 1]} : vector<16x8xf32> to vector<1x8xf32>
    %80 = vector.shape_cast %79 : vector<1x8xf32> to vector<1x8xf32>
    %81 = vector.broadcast %80 : vector<1x8xf32> to vector<16x8xf32>
    %82 = vector.extract_strided_slice %69 {offsets = [4, 0], sizes = [1, 8], strides = [1, 1]} : vector<16x8xf32> to vector<1x8xf32>
    %83 = vector.shape_cast %82 : vector<1x8xf32> to vector<1x8xf32>
    %84 = vector.broadcast %83 : vector<1x8xf32> to vector<16x8xf32>
    %85 = vector.extract_strided_slice %69 {offsets = [5, 0], sizes = [1, 8], strides = [1, 1]} : vector<16x8xf32> to vector<1x8xf32>
    %86 = vector.shape_cast %85 : vector<1x8xf32> to vector<1x8xf32>
    %87 = vector.broadcast %86 : vector<1x8xf32> to vector<16x8xf32>
    %88 = vector.extract_strided_slice %69 {offsets = [6, 0], sizes = [1, 8], strides = [1, 1]} : vector<16x8xf32> to vector<1x8xf32>
    %89 = vector.shape_cast %88 : vector<1x8xf32> to vector<1x8xf32>
    %90 = vector.broadcast %89 : vector<1x8xf32> to vector<16x8xf32>
    %91 = vector.extract_strided_slice %69 {offsets = [7, 0], sizes = [1, 8], strides = [1, 1]} : vector<16x8xf32> to vector<1x8xf32>
    %92 = vector.shape_cast %91 : vector<1x8xf32> to vector<1x8xf32>
    %93 = vector.broadcast %92 : vector<1x8xf32> to vector<16x8xf32>
    %94 = vector.extract_strided_slice %69 {offsets = [8, 0], sizes = [1, 8], strides = [1, 1]} : vector<16x8xf32> to vector<1x8xf32>
    %95 = vector.shape_cast %94 : vector<1x8xf32> to vector<1x8xf32>
    %96 = vector.broadcast %95 : vector<1x8xf32> to vector<16x8xf32>
    %97 = vector.extract_strided_slice %69 {offsets = [9, 0], sizes = [1, 8], strides = [1, 1]} : vector<16x8xf32> to vector<1x8xf32>
    %98 = vector.shape_cast %97 : vector<1x8xf32> to vector<1x8xf32>
    %99 = vector.broadcast %98 : vector<1x8xf32> to vector<16x8xf32>
    %100 = vector.extract_strided_slice %69 {offsets = [10, 0], sizes = [1, 8], strides = [1, 1]} : vector<16x8xf32> to vector<1x8xf32>
    %101 = vector.shape_cast %100 : vector<1x8xf32> to vector<1x8xf32>
    %102 = vector.broadcast %101 : vector<1x8xf32> to vector<16x8xf32>
    %103 = vector.extract_strided_slice %69 {offsets = [11, 0], sizes = [1, 8], strides = [1, 1]} : vector<16x8xf32> to vector<1x8xf32>
    %104 = vector.shape_cast %103 : vector<1x8xf32> to vector<1x8xf32>
    %105 = vector.broadcast %104 : vector<1x8xf32> to vector<16x8xf32>
    %106 = vector.extract_strided_slice %69 {offsets = [12, 0], sizes = [1, 8], strides = [1, 1]} : vector<16x8xf32> to vector<1x8xf32>
    %107 = vector.shape_cast %106 : vector<1x8xf32> to vector<1x8xf32>
    %108 = vector.broadcast %107 : vector<1x8xf32> to vector<16x8xf32>
    %109 = vector.extract_strided_slice %69 {offsets = [13, 0], sizes = [1, 8], strides = [1, 1]} : vector<16x8xf32> to vector<1x8xf32>
    %110 = vector.shape_cast %109 : vector<1x8xf32> to vector<1x8xf32>
    %111 = vector.broadcast %110 : vector<1x8xf32> to vector<16x8xf32>
    %112 = vector.extract_strided_slice %69 {offsets = [14, 0], sizes = [1, 8], strides = [1, 1]} : vector<16x8xf32> to vector<1x8xf32>
    %113 = vector.shape_cast %112 : vector<1x8xf32> to vector<1x8xf32>
    %114 = vector.broadcast %113 : vector<1x8xf32> to vector<16x8xf32>
    %115 = vector.extract_strided_slice %69 {offsets = [15, 0], sizes = [1, 8], strides = [1, 1]} : vector<16x8xf32> to vector<1x8xf32>
    %116 = vector.shape_cast %115 : vector<1x8xf32> to vector<1x8xf32>
    %117 = vector.broadcast %116 : vector<1x8xf32> to vector<16x8xf32>
    %118 = tpu.concatenate %72, %75, %78, %81, %84, %87, %90, %93, %96, %99, %102, %105, %108, %111, %114, %117 in 0 : vector<16x8xf32>, vector<16x8xf32>, vector<16x8xf32>, vector<16x8xf32>, vector<16x8xf32>, vector<16x8xf32>, vector<16x8xf32>, vector<16x8xf32>, vector<16x8xf32>, vector<16x8xf32>, vector<16x8xf32>, vector<16x8xf32>, vector<16x8xf32>, vector<16x8xf32>, vector<16x8xf32>, vector<16x8xf32> -> vector<256x8xf32>
    %119 = vector.shape_cast %66 : vector<16x8xf32> to vector<1x16x8xf32>
    %120 = vector.shape_cast %119 : vector<1x16x8xf32> to vector<1x16x8xf32>
    %121 = vector.broadcast %120 : vector<1x16x8xf32> to vector<16x16x8xf32>
    %122 = vector.shape_cast %121 : vector<16x16x8xf32> to vector<256x8xf32>
    %123 = arith.subf %118, %122 : vector<256x8xf32>
    %124 = arith.mulf %123, %123 : vector<256x8xf32>
    %cst = arith.constant dense<0.000000e+00> : vector<256xf32>
    %125 = vector.multi_reduction <add>, %124, %cst [1] : vector<256x8xf32> to vector<256xf32>
    %126 = vector.shape_cast %125 : vector<256xf32> to vector<256x1xf32>
    %127 = vector.broadcast %126 : vector<256x1xf32> to vector<256x16xf32>
    %128 = vector.broadcast %63 : vector<1x16xf32> to vector<256x16xf32>
    %129 = arith.cmpf ogt, %127, %128 : vector<256x16xf32>
    %130 = vector.broadcast %126 : vector<256x1xf32> to vector<256x16xf32>
    %131 = vector.broadcast %64 : vector<1x16xf32> to vector<256x16xf32>
    %132 = arith.cmpf olt, %130, %131 : vector<256x16xf32>
    %133 = arith.andi %129, %132 : vector<256x16xi1>
    %134 = arith.extui %133 : vector<256x16xi1> to vector<256x16xi32>
    %135 = arith.sitofp %134 : vector<256x16xi32> to vector<256x16xf32>
    %c0_16 = arith.constant 0 : index
    %c0_17 = arith.constant 0 : index
    %c0_18 = arith.constant 0 : index
    %136 = vector.load %arg6[%c0_16, %c0_17, %c0_18] : memref<1x16x8xf32, #tpu.memory_space<vmem>>, vector<1x16x8xf32>
    %137 = vector.shape_cast %136 : vector<1x16x8xf32> to vector<16x8xf32>
    %c0_19 = arith.constant 0 : index
    %138 = arith.index_cast %1 : i32 to index
    %c0_20 = arith.constant 0 : index
    %139 = vector.load %arg6[%c0_19, %138, %c0_20] : memref<1x16x8xf32, #tpu.memory_space<vmem>>, vector<1x16x8xf32>
    %140 = vector.shape_cast %139 : vector<1x16x8xf32> to vector<16x8xf32>
    %141 = vector.extract_strided_slice %140 {offsets = [0, 0], sizes = [1, 8], strides = [1, 1]} : vector<16x8xf32> to vector<1x8xf32>
    %142 = vector.shape_cast %141 : vector<1x8xf32> to vector<1x8xf32>
    %143 = vector.broadcast %142 : vector<1x8xf32> to vector<16x8xf32>
    %144 = vector.extract_strided_slice %140 {offsets = [1, 0], sizes = [1, 8], strides = [1, 1]} : vector<16x8xf32> to vector<1x8xf32>
    %145 = vector.shape_cast %144 : vector<1x8xf32> to vector<1x8xf32>
    %146 = vector.broadcast %145 : vector<1x8xf32> to vector<16x8xf32>
    %147 = vector.extract_strided_slice %140 {offsets = [2, 0], sizes = [1, 8], strides = [1, 1]} : vector<16x8xf32> to vector<1x8xf32>
    %148 = vector.shape_cast %147 : vector<1x8xf32> to vector<1x8xf32>
    %149 = vector.broadcast %148 : vector<1x8xf32> to vector<16x8xf32>
    %150 = vector.extract_strided_slice %140 {offsets = [3, 0], sizes = [1, 8], strides = [1, 1]} : vector<16x8xf32> to vector<1x8xf32>
    %151 = vector.shape_cast %150 : vector<1x8xf32> to vector<1x8xf32>
    %152 = vector.broadcast %151 : vector<1x8xf32> to vector<16x8xf32>
    %153 = vector.extract_strided_slice %140 {offsets = [4, 0], sizes = [1, 8], strides = [1, 1]} : vector<16x8xf32> to vector<1x8xf32>
    %154 = vector.shape_cast %153 : vector<1x8xf32> to vector<1x8xf32>
    %155 = vector.broadcast %154 : vector<1x8xf32> to vector<16x8xf32>
    %156 = vector.extract_strided_slice %140 {offsets = [5, 0], sizes = [1, 8], strides = [1, 1]} : vector<16x8xf32> to vector<1x8xf32>
    %157 = vector.shape_cast %156 : vector<1x8xf32> to vector<1x8xf32>
    %158 = vector.broadcast %157 : vector<1x8xf32> to vector<16x8xf32>
    %159 = vector.extract_strided_slice %140 {offsets = [6, 0], sizes = [1, 8], strides = [1, 1]} : vector<16x8xf32> to vector<1x8xf32>
    %160 = vector.shape_cast %159 : vector<1x8xf32> to vector<1x8xf32>
    %161 = vector.broadcast %160 : vector<1x8xf32> to vector<16x8xf32>
    %162 = vector.extract_strided_slice %140 {offsets = [7, 0], sizes = [1, 8], strides = [1, 1]} : vector<16x8xf32> to vector<1x8xf32>
    %163 = vector.shape_cast %162 : vector<1x8xf32> to vector<1x8xf32>
    %164 = vector.broadcast %163 : vector<1x8xf32> to vector<16x8xf32>
    %165 = vector.extract_strided_slice %140 {offsets = [8, 0], sizes = [1, 8], strides = [1, 1]} : vector<16x8xf32> to vector<1x8xf32>
    %166 = vector.shape_cast %165 : vector<1x8xf32> to vector<1x8xf32>
    %167 = vector.broadcast %166 : vector<1x8xf32> to vector<16x8xf32>
    %168 = vector.extract_strided_slice %140 {offsets = [9, 0], sizes = [1, 8], strides = [1, 1]} : vector<16x8xf32> to vector<1x8xf32>
    %169 = vector.shape_cast %168 : vector<1x8xf32> to vector<1x8xf32>
    %170 = vector.broadcast %169 : vector<1x8xf32> to vector<16x8xf32>
    %171 = vector.extract_strided_slice %140 {offsets = [10, 0], sizes = [1, 8], strides = [1, 1]} : vector<16x8xf32> to vector<1x8xf32>
    %172 = vector.shape_cast %171 : vector<1x8xf32> to vector<1x8xf32>
    %173 = vector.broadcast %172 : vector<1x8xf32> to vector<16x8xf32>
    %174 = vector.extract_strided_slice %140 {offsets = [11, 0], sizes = [1, 8], strides = [1, 1]} : vector<16x8xf32> to vector<1x8xf32>
    %175 = vector.shape_cast %174 : vector<1x8xf32> to vector<1x8xf32>
    %176 = vector.broadcast %175 : vector<1x8xf32> to vector<16x8xf32>
    %177 = vector.extract_strided_slice %140 {offsets = [12, 0], sizes = [1, 8], strides = [1, 1]} : vector<16x8xf32> to vector<1x8xf32>
    %178 = vector.shape_cast %177 : vector<1x8xf32> to vector<1x8xf32>
    %179 = vector.broadcast %178 : vector<1x8xf32> to vector<16x8xf32>
    %180 = vector.extract_strided_slice %140 {offsets = [13, 0], sizes = [1, 8], strides = [1, 1]} : vector<16x8xf32> to vector<1x8xf32>
    %181 = vector.shape_cast %180 : vector<1x8xf32> to vector<1x8xf32>
    %182 = vector.broadcast %181 : vector<1x8xf32> to vector<16x8xf32>
    %183 = vector.extract_strided_slice %140 {offsets = [14, 0], sizes = [1, 8], strides = [1, 1]} : vector<16x8xf32> to vector<1x8xf32>
    %184 = vector.shape_cast %183 : vector<1x8xf32> to vector<1x8xf32>
    %185 = vector.broadcast %184 : vector<1x8xf32> to vector<16x8xf32>
    %186 = vector.extract_strided_slice %140 {offsets = [15, 0], sizes = [1, 8], strides = [1, 1]} : vector<16x8xf32> to vector<1x8xf32>
    %187 = vector.shape_cast %186 : vector<1x8xf32> to vector<1x8xf32>
    %188 = vector.broadcast %187 : vector<1x8xf32> to vector<16x8xf32>
    %189 = tpu.concatenate %143, %146, %149, %152, %155, %158, %161, %164, %167, %170, %173, %176, %179, %182, %185, %188 in 0 : vector<16x8xf32>, vector<16x8xf32>, vector<16x8xf32>, vector<16x8xf32>, vector<16x8xf32>, vector<16x8xf32>, vector<16x8xf32>, vector<16x8xf32>, vector<16x8xf32>, vector<16x8xf32>, vector<16x8xf32>, vector<16x8xf32>, vector<16x8xf32>, vector<16x8xf32>, vector<16x8xf32>, vector<16x8xf32> -> vector<256x8xf32>
    %190 = vector.shape_cast %137 : vector<16x8xf32> to vector<1x16x8xf32>
    %191 = vector.shape_cast %190 : vector<1x16x8xf32> to vector<1x16x8xf32>
    %192 = vector.broadcast %191 : vector<1x16x8xf32> to vector<16x16x8xf32>
    %193 = vector.shape_cast %192 : vector<16x16x8xf32> to vector<256x8xf32>
    %194 = arith.subf %189, %193 : vector<256x8xf32>
    %195 = arith.mulf %194, %194 : vector<256x8xf32>
    %cst_21 = arith.constant dense<0.000000e+00> : vector<256xf32>
    %196 = vector.multi_reduction <add>, %195, %cst_21 [1] : vector<256x8xf32> to vector<256xf32>
    %197 = vector.shape_cast %196 : vector<256xf32> to vector<256x1xf32>
    %198 = vector.broadcast %197 : vector<256x1xf32> to vector<256x16xf32>
    %199 = vector.broadcast %63 : vector<1x16xf32> to vector<256x16xf32>
    %200 = arith.cmpf ogt, %198, %199 : vector<256x16xf32>
    %201 = vector.broadcast %197 : vector<256x1xf32> to vector<256x16xf32>
    %202 = vector.broadcast %64 : vector<1x16xf32> to vector<256x16xf32>
    %203 = arith.cmpf olt, %201, %202 : vector<256x16xf32>
    %204 = arith.andi %200, %203 : vector<256x16xi1>
    %205 = arith.extui %204 : vector<256x16xi1> to vector<256x16xi32>
    %206 = arith.sitofp %205 : vector<256x16xi32> to vector<256x16xf32>
    %207 = tpu.concatenate %135, %206 in 1 : vector<256x16xf32>, vector<256x16xf32> -> vector<256x32xf32>
    %c0_22 = arith.constant 0 : index
    %c0_23 = arith.constant 0 : index
    %208 = vector.load %arg9[%c0_22, %c0_23] : memref<32x32xf32, #tpu.memory_space<vmem>>, vector<32x32xf32>
    %cst_24 = arith.constant dense<0.000000e+00> : vector<256x32xf32>
    %209 = tpu.matmul %207, %208, %cst_24 {dimension_numbers = #tpu.dot_dimension_numbers<[1], [0], [0], [1], [0, 0, 1, 1], [], []>, precision = #tpu.contract_precision<fp32>} : vector<256x32xf32>, vector<32x32xf32>, vector<256x32xf32> -> vector<256x32xf32>
    %210 = arith.addf %62, %209 : vector<256x32xf32>
    %cst_25 = arith.constant 0.000000e+00 : f32
    %211 = vector.broadcast %cst_25 : f32 to vector<256x32xf32>
    %212 = arith.maximumf %210, %211 : vector<256x32xf32>
    %c0_26 = arith.constant 0 : index
    %c0_27 = arith.constant 0 : index
    %213 = vector.load %arg10[%c0_26, %c0_27] : memref<64x32xf32, #tpu.memory_space<vmem>>, vector<32x32xf32>
    %cst_28 = arith.constant dense<0.000000e+00> : vector<256x32xf32>
    %214 = tpu.matmul %212, %213, %cst_28 {dimension_numbers = #tpu.dot_dimension_numbers<[1], [0], [0], [1], [0, 0, 1, 1], [], []>, precision = #tpu.contract_precision<fp32>} : vector<256x32xf32>, vector<32x32xf32>, vector<256x32xf32> -> vector<256x32xf32>
    %c0_29 = arith.constant 0 : index
    %c0_30 = arith.constant 0 : index
    %215 = vector.load %arg11[%c0_29, %c0_30] : memref<4x32xf32, #tpu.memory_space<vmem>>, vector<1x32xf32>
    %216 = vector.broadcast %215 : vector<1x32xf32> to vector<256x32xf32>
    %217 = arith.addf %214, %216 : vector<256x32xf32>
    %cst_31 = arith.constant 0.000000e+00 : f32
    %218 = vector.broadcast %cst_31 : f32 to vector<256x32xf32>
    %219 = arith.maximumf %217, %218 : vector<256x32xf32>
    %c32 = arith.constant 32 : index
    %c0_32 = arith.constant 0 : index
    %220 = vector.load %arg10[%c32, %c0_32] : memref<64x32xf32, #tpu.memory_space<vmem>>, vector<32x32xf32>
    %cst_33 = arith.constant dense<0.000000e+00> : vector<256x32xf32>
    %221 = tpu.matmul %219, %220, %cst_33 {dimension_numbers = #tpu.dot_dimension_numbers<[1], [0], [0], [1], [0, 0, 1, 1], [], []>, precision = #tpu.contract_precision<fp32>} : vector<256x32xf32>, vector<32x32xf32>, vector<256x32xf32> -> vector<256x32xf32>
    %c1_34 = arith.constant 1 : index
    %c0_35 = arith.constant 0 : index
    %222 = vector.load %arg11[%c1_34, %c0_35] : memref<4x32xf32, #tpu.memory_space<vmem>>, vector<1x32xf32>
    %223 = vector.broadcast %222 : vector<1x32xf32> to vector<256x32xf32>
    %224 = arith.addf %221, %223 : vector<256x32xf32>
    %cst_36 = arith.constant dense<0.000000e+00> : vector<256xf32>
    %225 = vector.multi_reduction <add>, %224, %cst_36 [1] : vector<256x32xf32> to vector<256xf32>
    %226 = vector.shape_cast %225 : vector<256xf32> to vector<256x1xf32>
    %cst_37 = arith.constant 3.200000e+01 : f32
    %227 = vector.broadcast %cst_37 : f32 to vector<256x1xf32>
    %228 = arith.divf %226, %227 : vector<256x1xf32>
    %229 = vector.broadcast %228 : vector<256x1xf32> to vector<256x32xf32>
    %230 = arith.subf %224, %229 : vector<256x32xf32>
    %231 = vector.broadcast %228 : vector<256x1xf32> to vector<256x32xf32>
    %232 = arith.subf %224, %231 : vector<256x32xf32>
    %233 = arith.mulf %230, %232 : vector<256x32xf32>
    %cst_38 = arith.constant dense<0.000000e+00> : vector<256xf32>
    %234 = vector.multi_reduction <add>, %233, %cst_38 [1] : vector<256x32xf32> to vector<256xf32>
    %235 = vector.shape_cast %234 : vector<256xf32> to vector<256x1xf32>
    %cst_39 = arith.constant 3.200000e+01 : f32
    %236 = vector.broadcast %cst_39 : f32 to vector<256x1xf32>
    %237 = arith.divf %235, %236 : vector<256x1xf32>
    %238 = vector.broadcast %228 : vector<256x1xf32> to vector<256x32xf32>
    %239 = arith.subf %224, %238 : vector<256x32xf32>
    %cst_40 = arith.constant 9.99999974E-6 : f32
    %240 = vector.broadcast %cst_40 : f32 to vector<256x1xf32>
    %241 = arith.addf %237, %240 : vector<256x1xf32>
    %242 = math.rsqrt %241 : vector<256x1xf32>
    %243 = vector.broadcast %242 : vector<256x1xf32> to vector<256x32xf32>
    %244 = arith.mulf %239, %243 : vector<256x32xf32>
    %c2 = arith.constant 2 : index
    %c0_41 = arith.constant 0 : index
    %245 = vector.load %arg11[%c2, %c0_41] : memref<4x32xf32, #tpu.memory_space<vmem>>, vector<1x32xf32>
    %246 = vector.broadcast %245 : vector<1x32xf32> to vector<256x32xf32>
    %247 = arith.mulf %244, %246 : vector<256x32xf32>
    %c3 = arith.constant 3 : index
    %c0_42 = arith.constant 0 : index
    %248 = vector.load %arg11[%c3, %c0_42] : memref<4x32xf32, #tpu.memory_space<vmem>>, vector<1x32xf32>
    %249 = vector.broadcast %248 : vector<1x32xf32> to vector<256x32xf32>
    %250 = arith.addf %247, %249 : vector<256x32xf32>
    %c0_43 = arith.constant 0 : index
    %c0_44 = arith.constant 0 : index
    %c0_45 = arith.constant 0 : index
    %251 = vector.load %arg7[%c0_43, %c0_44, %c0_45] : memref<1x256x1xf32, #tpu.memory_space<vmem>>, vector<1x256x1xf32>
    %252 = vector.shape_cast %251 : vector<1x256x1xf32> to vector<256x1xf32>
    %253 = vector.broadcast %252 : vector<256x1xf32> to vector<256x32xf32>
    %254 = arith.mulf %250, %253 : vector<256x32xf32>
    %c0_46 = arith.constant 0 : index
    %c0_47 = arith.constant 0 : index
    %c0_48 = arith.constant 0 : index
    %255 = vector.load %arg12[%c0_46, %c0_47, %c0_48] : memref<1x256x32xf32, #tpu.memory_space<vmem>>, vector<1x256x32xf32>
    %256 = vector.shape_cast %255 : vector<1x256x32xf32> to vector<256x32xf32>
    %257 = vector.shape_cast %254 : vector<256x32xf32> to vector<1x256x32xf32>
    tpu.vector_store %arg12[%c0_46, %c0_47, %c0_48], %257 {strides = array<i32>} : memref<1x256x32xf32, #tpu.memory_space<vmem>>, vector<1x256x32xf32>,
    return
  }
  func.func @transform_0(%arg0: i32, %arg1: i32) -> (i32, i32, i32) {
    %c0_i32 = arith.constant 0 : i32
    %c0_i32_0 = arith.constant 0 : i32
    return %arg0, %arg1, %c0_i32 : i32, i32, i32
  }
  func.func @transform_1(%arg0: i32, %arg1: i32) -> (i32, i32, i32) {
    %c0_i32 = arith.constant 0 : i32
    %c0_i32_0 = arith.constant 0 : i32
    %c0_i32_1 = arith.constant 0 : i32
    return %arg0, %c0_i32, %c0_i32_0 : i32, i32, i32
  }
  func.func @transform_2(%arg0: i32, %arg1: i32) -> (i32, i32, i32) {
    %c0_i32 = arith.constant 0 : i32
    %c0_i32_0 = arith.constant 0 : i32
    %c0_i32_1 = arith.constant 0 : i32
    return %arg1, %c0_i32, %c0_i32_0 : i32, i32, i32
  }
  func.func @transform_3(%arg0: i32, %arg1: i32) -> (i32, i32, i32) {
    %c0_i32 = arith.constant 0 : i32
    %c0_i32_0 = arith.constant 0 : i32
    %c0_i32_1 = arith.constant 0 : i32
    return %arg0, %c0_i32, %c0_i32_0 : i32, i32, i32
  }
  func.func @transform_4(%arg0: i32, %arg1: i32) -> (i32, i32, i32) {
    %c0_i32 = arith.constant 0 : i32
    %c0_i32_0 = arith.constant 0 : i32
    %c0_i32_1 = arith.constant 0 : i32
    return %arg0, %c0_i32, %c0_i32_0 : i32, i32, i32
  }
  func.func @transform_5(%arg0: i32, %arg1: i32) -> (i32, i32, i32) {
    %c0_i32 = arith.constant 0 : i32
    %c0_i32_0 = arith.constant 0 : i32
    return %arg0, %arg1, %c0_i32 : i32, i32, i32
  }
  func.func @transform_6(%arg0: i32, %arg1: i32) -> (i32, i32) {
    %c0_i32 = arith.constant 0 : i32
    %c0_i32_0 = arith.constant 0 : i32
    %c0_i32_1 = arith.constant 0 : i32
    return %c0_i32, %c0_i32_0 : i32, i32
  }
  func.func @transform_7(%arg0: i32, %arg1: i32) -> (i32, i32) {
    %c0_i32 = arith.constant 0 : i32
    %c0_i32_0 = arith.constant 0 : i32
    %c0_i32_1 = arith.constant 0 : i32
    return %c0_i32, %c0_i32_0 : i32, i32
  }
  func.func @transform_8(%arg0: i32, %arg1: i32) -> (i32, i32) {
    %c0_i32 = arith.constant 0 : i32
    %c0_i32_0 = arith.constant 0 : i32
    %c0_i32_1 = arith.constant 0 : i32
    return %c0_i32, %c0_i32_0 : i32, i32
  }
  func.func @transform_9(%arg0: i32, %arg1: i32) -> (i32, i32) {
    %c0_i32 = arith.constant 0 : i32
    %c0_i32_0 = arith.constant 0 : i32
    %c0_i32_1 = arith.constant 0 : i32
    return %c0_i32, %c0_i32_0 : i32, i32
  }
  func.func @transform_10(%arg0: i32, %arg1: i32) -> (i32, i32, i32) {
    %c0_i32 = arith.constant 0 : i32
    %c0_i32_0 = arith.constant 0 : i32
    return %arg0, %arg1, %c0_i32 : i32, i32, i32
  }
}

</mosaic_0001>

<bundles_post_ra>
// kernel: tpu_custom_call.1
= control target key start
LH: loop header
LB: loop body
LE: loop exit
PB: predicated region body
PF: predicated region fallthrough
CT: control target
= control target key end

     0   :  { %s11104_s13 = smov 0   ;;  %s11106_s14 = smov 0   ;;  %s14658_s0 = inlined_call_operand.vmem [shape: f32[2,16,32], index: 0, kind: input, shape index: {}]   ;;  %s14659_s1 = inlined_call_operand.vmem [shape: f32[2,16,32], index: 1, kind: input, shape index: {}]   ;;  %s14660_s2 = inlined_call_operand.vmem [shape: f32[16,16,32], index: 2, kind: input, shape index: {}]   ;;  %s14661_s3 = inlined_call_operand.vmem [shape: f32[2,16,8], index: 3, kind: input, shape index: {}]   ;;  %s14662_s4 = inlined_call_operand.vmem [shape: f32[2,16,8], index: 4, kind: input, shape index: {}]   ;;  %s14663_s5 = inlined_call_operand.vmem [shape: f32[2,256,1], index: 5, kind: input, shape index: {}]   ;;  %s14664_s6 = inlined_call_operand.vmem [shape: f32[2,16], index: 6, kind: input, shape index: {}]   ;;  %s14665_s7 = inlined_call_operand.vmem [shape: f32[32,32], index: 7, kind: input, shape index: {}]   ;;  %s14666_s8 = inlined_call_operand.vmem [shape: f32[64,32], index: 8, kind: input, shape index: {}]   ;;  %s14667_s9 = inlined_call_operand.vmem [shape: f32[4,32], index: 9, kind: input, shape index: {}]   ;;  %s14668_s10 = inlined_call_operand.vmem [shape: f32[2,256,32], index: 10, kind: output, shape index: {}]  }
   0x1   :  { %s11108_s15 = smov 0  }
   0x2 LB: > { %s32_s16 = sadd.s32 1, %s11040_s14  ;;  %p8408_p0 = scmp.ge.s32.totalorder %s11044_s15, 1  ;;  %s11044_s15 = sphi %s11108_s15, %s20_s15   ;;  %s11040_s14 = sphi %s11106_s14, %s15427_s14   ;;  %s11036_s13 = sphi %s11104_s13, %s15426_s13  }
   0x3   : > { %p34_p1 = scmp.ge.s32.totalorder %s32_s16, 2  ;;  %p392_p2 = scmp.lt.s32.totalorder %s11044_s15, 3 }
   0x5   : > { %s15429_s16 = smov (%p34_p1, %s32_s16), 0  ;;  %p393_p3 = pnand %p8408_p0, %p392_p2 }
   0x7   : > { %396 = sbr.rel (%p393_p3) target bundleno = 2349 (0x92d), region = 60 }
   0xe   : > { %p469_p4 = scmp.lt.s32.totalorder %s11036_s13, 1  ;;  %v555_v0 = vlaneseq  ;;  %vm14691_vm0 = vcmask 64512   ;;  %s11047_s21 = smov 16  }
  0x10   : > { %s15431_s13 = smov (!%p469_p4, %s11036_s13), 1  ;;  %v556_v1 = vshrl.u32 %v555_v0, 7 }
  0x11   : > { %s11125_s17 = sshll.u32 %s15431_s13, 4  ;;  %s8497_s24 = sshll.u32 %s15431_s13, 8 }
  0x12   : > { %v11127_v2 = vsub.s32 1, %v556_v1  ;;  %v11129_v3 = vsub.s32 0, %v556_v1  ;;  %v11131_v4 = vsub.s32 2, %v556_v1  ;;  %s499_s20 = scalar_lea.vmem %s14662_s4, %s11125_s17  ;;  %v11141_v7 = vsub.s32 3, %v556_v1  ;;  %s11231_s23 = scalar_lea.vmem %s14661_s3, %s11125_s17 }
  0x13   : > { %v11137_v5 = vld [vmem:[%s499_s20] sm:$0xff]  ;;  %v11139_v6 = vld [vmem:[%s499_s20 + $0x8] sm:$0xff]  ;;  %v11157_v18 = vsub.s32 4, %v556_v1  ;;  %v11165_v28 = vsub.s32 5, %v556_v1  ;;  %v11171_v36 = vsub.s32 6, %v556_v1  ;;  %v11181_v44 = vsub.s32 7, %v556_v1  ;;  %s12507_s25 = scalar_lea.vmem %s14658_s0, %s11125_s17  ;;  %s482_s30 = scalar_lea.vmem %s14659_s1, %s11125_s17 }
  0x14   : > { %14922 = vst [vmem:[#allocation2_spill] sm:$0xff] %v11127_v2  ;;  %14923 = vst [vmem:[#allocation3_spill] sm:$0xff] %v11129_v3  ;;  %v1097_v8 = vrot.slane %v11137_v5, %v11127_v2  ;;  %v1093_v9 = vrot.slane %v11137_v5, %v11129_v3  ;;  %v1101_v10 = vrot.slane %v11137_v5, %v11131_v4  ;;  %s13914_s27 = scalar_lea.vmem %s14663_s5, %s8497_s24 }
  0x15   : > { %14924 = vst [vmem:[#allocation4_spill] sm:$0xff] %v11131_v4  ;;  %14925 = vst [vmem:[#allocation5_spill] sm:$0xff] %v11141_v7  ;;  %v1105_v17 = vrot.slane %v11137_v5, %v11141_v7  ;;  %v1109_v27 = vrot.slane %v11137_v5, %v11157_v18  ;;  %v1113_v35 = vrot.slane %v11137_v5, %v11165_v28 }
  0x16   : > { %v1156_v11 = vsub.f32 %v1097_v8, %v11137_v5  ;;  %v1154_v12 = vsub.f32 %v1093_v9, %v11137_v5  ;;  %v1157_v13 = vsub.f32 %v1097_v8, %v11139_v6  ;;  %v1155_v14 = vsub.f32 %v1093_v9, %v11139_v6  ;;  %14926 = vst [vmem:[#allocation6_spill] sm:$0xff] %v11157_v18 }
  0x17   : > { %v1159_v15 = vsub.f32 %v1101_v10, %v11139_v6  ;;  %v1158_v16 = vsub.f32 %v1101_v10, %v11137_v5  ;;  %v1161_v25 = vsub.f32 %v1105_v17, %v11139_v6  ;;  %v1160_v26 = vsub.f32 %v1105_v17, %v11137_v5  ;;  %14927 = vst [vmem:[#allocation7_spill] sm:$0xff] %v11165_v28 }
  0x18   : > { %v1188_v19 = vmul.f32 %v1156_v11, %v1156_v11  ;;  %v1186_v20 = vmul.f32 %v1154_v12, %v1154_v12  ;;  %v1189_v21 = vmul.f32 %v1157_v13, %v1157_v13  ;;  %v1187_v22 = vmul.f32 %v1155_v14, %v1155_v14  ;;  %14928 = vst [vmem:[#allocation8_spill] sm:$0xff] %v11171_v36 }
  0x19   : > { %v1191_v31 = vmul.f32 %v1159_v15, %v1159_v15  ;;  %v1190_v32 = vmul.f32 %v1158_v16, %v1158_v16  ;;  %v1193_v33 = vmul.f32 %v1161_v25, %v1161_v25  ;;  %v1192_v34 = vmul.f32 %v1160_v26, %v1160_v26  ;;  %14929 = vst [vmem:[#allocation9_spill] sm:$0xff] %v11181_v44 }
  0x1a   : > { %v1224_v23 = vsel %vm14691_vm0, %v1188_v19, 0.0  ;;  %v1218_v24 = vsel %vm14691_vm0, %v1186_v20, 0.0  ;;  %v1227_v29 = vsel %vm14691_vm0, %v1189_v21, 0.0  ;;  %v1221_v30 = vsel %vm14691_vm0, %v1187_v22, 0.0 }
  0x1b   : > { %1225 = vadd.xlane.f32.xlu1 %v1224_v23  ;;  %1219 = vadd.xlane.f32.xlu0 %v1218_v24  ;;  %v1233_v37 = vsel %vm14691_vm0, %v1191_v31, 0.0  ;;  %v1230_v38 = vsel %vm14691_vm0, %v1190_v32, 0.0  ;;  %v1163_v39 = vsub.f32 %v1109_v27, %v11139_v6  ;;  %v1162_v40 = vsub.f32 %v1109_v27, %v11137_v5 }
  0x1c   : > { %v1239_v41 = vsel %vm14691_vm0, %v1193_v33, 0.0  ;;  %v1165_v42 = vsub.f32 %v1113_v35, %v11139_v6  ;;  %v1117_v43 = vrot.slane %v11137_v5, %v11171_v36  ;;  %v1236_v45 = vsel %vm14691_vm0, %v1192_v34, 0.0 }
  0x1d   : > { %v1195_v46 = vmul.f32 %v1163_v39, %v1163_v39  ;;  %v1194_v47 = vmul.f32 %v1162_v40, %v1162_v40  ;;  %v1164_v48 = vsub.f32 %v1113_v35, %v11137_v5  ;;  %v1121_v51 = vrot.slane %v11137_v5, %v11181_v44 }
  0x1e   : > { %v1197_v49 = vmul.f32 %v1165_v42, %v1165_v42  ;;  %v1167_v50 = vsub.f32 %v1117_v43, %v11139_v6  ;;  %v1166_v55 = vsub.f32 %v1117_v43, %v11137_v5  ;;  %v1125_v58 = vrot.slane %v11139_v6, %v11129_v3 }
  0x1f   : > { %1228 = vadd.xlane.f32.xlu1 %v1227_v29  ;;  %1222 = vadd.xlane.f32.xlu0 %v1221_v30  ;;  %v1245_v52 = vsel %vm14691_vm0, %v1195_v46, 0.0  ;;  %v1242_v53 = vsel %vm14691_vm0, %v1194_v47, 0.0  ;;  %v1196_v54 = vmul.f32 %v1164_v48, %v1164_v48  ;;  %v1169_v57 = vsub.f32 %v1121_v51, %v11139_v6 }
  0x20   : > { %v1199_v56 = vmul.f32 %v1167_v50, %v1167_v50  ;;  %v1251_v59 = vsel %vm14691_vm0, %v1197_v49, 0.0  ;;  %v1198_v61 = vmul.f32 %v1166_v55, %v1166_v55  ;;  %v1168_v62 = vsub.f32 %v1121_v51, %v11137_v5  ;;  %v11239_v49 = vld [vmem:[%s11231_s23] sm:$0xff] }
  0x21   : > { %v1248_v60 = vsel %vm14691_vm0, %v1196_v54, 0.0  ;;  %v1201_v63 = vmul.f32 %v1169_v57, %v1169_v57  ;;  %v1171_v0 = vsub.f32 %v1125_v58, %v11139_v6  ;;  %v1129_v1 = vrot.slane %v11139_v6, %v11127_v2 }
  0x22   : > { %v1257_v8 = vsel %vm14691_vm0, %v1199_v56, 0.0  ;;  %v1254_v9 = vsel %vm14691_vm0, %v1198_v61, 0.0  ;;  %v1200_v10 = vmul.f32 %v1168_v62, %v1168_v62  ;;  %v1170_v11 = vsub.f32 %v1125_v58, %v11137_v5  ;;  %v11247_v56 = vld [vmem:[%s11231_s23 + $0x8] sm:$0xff] }
  0x23   : > { %1234 = vadd.xlane.f32.xlu1 %v1233_v37  ;;  %1231 = vadd.xlane.f32.xlu0 %v1230_v38  ;;  %v1263_v12 = vsel %vm14691_vm0, %v1201_v63, 0.0  ;;  %v1203_v13 = vmul.f32 %v1171_v0, %v1171_v0  ;;  %v1173_v14 = vsub.f32 %v1129_v1, %v11139_v6  ;;  %v1133_v15 = vrot.slane %v11139_v6, %v11131_v4 }
  0x24   : > { %v1260_v16 = vsel %vm14691_vm0, %v1200_v10, 0.0  ;;  %v1202_v17 = vmul.f32 %v1170_v11, %v1170_v11  ;;  %v1172_v19 = vsub.f32 %v1129_v1, %v11137_v5  ;;  %v1137_v22 = vrot.slane %v11139_v6, %v11141_v7 }
  0x25   : > { %v1269_v20 = vsel %vm14691_vm0, %v1203_v13, 0.0  ;;  %v1205_v21 = vmul.f32 %v1173_v14, %v1173_v14  ;;  %v1175_v23 = vsub.f32 %v1133_v15, %v11139_v6  ;;  %v1174_v26 = vsub.f32 %v1133_v15, %v11137_v5 }
  0x26   : > { %v1266_v24 = vsel %vm14691_vm0, %v1202_v17, 0.0  ;;  %v1204_v25 = vmul.f32 %v1172_v19, %v1172_v19  ;;  %v1177_v29 = vsub.f32 %v1137_v22, %v11139_v6  ;;  %v1141_v30 = vrot.slane %v11139_v6, %v11157_v18 }
  0x27   : > { %1240 = vadd.xlane.f32.xlu1 %v1239_v41  ;;  %1237 = vadd.xlane.f32.xlu0 %v1236_v45  ;;  %v1275_v27 = vsel %vm14691_vm0, %v1205_v21, 0.0  ;;  %v1207_v31 = vmul.f32 %v1175_v23, %v1175_v23  ;;  %v1206_v33 = vmul.f32 %v1174_v26, %v1174_v26  ;;  %v1176_v34 = vsub.f32 %v1137_v22, %v11137_v5 }
  0x28   : > { %v1272_v32 = vsel %vm14691_vm0, %v1204_v25, 0.0  ;;  %v1209_v35 = vmul.f32 %v1177_v29, %v1177_v29  ;;  %v1179_v37 = vsub.f32 %v1141_v30, %v11139_v6  ;;  %v1145_v38 = vrot.slane %v11139_v6, %v11165_v28 }
  0x29   : > { %v1281_v39 = vsel %vm14691_vm0, %v1207_v31, 0.0  ;;  %v1278_v40 = vsel %vm14691_vm0, %v1206_v33, 0.0  ;;  %v1208_v41 = vmul.f32 %v1176_v34, %v1176_v34  ;;  %v1178_v42 = vsub.f32 %v1141_v30, %v11137_v5 }
  0x2a   : > { %v1287_v43 = vsel %vm14691_vm0, %v1209_v35, 0.0  ;;  %v1211_v45 = vmul.f32 %v1179_v37, %v1179_v37  ;;  %v1181_v46 = vsub.f32 %v1145_v38, %v11139_v6  ;;  %v1149_v47 = vrot.slane %v11139_v6, %v11171_v36 }
  0x2b   : > { %1246 = vadd.xlane.f32.xlu1 %v1245_v52  ;;  %1243 = vadd.xlane.f32.xlu0 %v1242_v53  ;;  %v1284_v48 = vsel %vm14691_vm0, %v1208_v41, 0.0  ;;  %v1210_v50 = vmul.f32 %v1178_v42, %v1178_v42  ;;  %v1180_v51 = vsub.f32 %v1145_v38, %v11137_v5  ;;  %v695_v54 = vrot.slane %v11239_v49, %v11129_v3 }
  0x2c   : > { %v1293_v52 = vsel %vm14691_vm0, %v1211_v45, 0.0  ;;  %v1213_v53 = vmul.f32 %v1181_v46, %v1181_v46  ;;  %v1183_v55 = vsub.f32 %v1149_v47, %v11139_v6  ;;  %v1153_v62 = vrot.slane %v11139_v6, %v11181_v44 }
  0x2d   : > { %v1290_v57 = vsel %vm14691_vm0, %v1210_v50, 0.0  ;;  %v1212_v58 = vmul.f32 %v1180_v51, %v1180_v51  ;;  %v757_v61 = vsub.f32 %v695_v54, %v11247_v56  ;;  %v699_v11 = vrot.slane %v11239_v49, %v11127_v2 }
  0x2e   : > { %v1215_v63 = vmul.f32 %v1183_v55, %v1183_v55  ;;  %v1185_v10 = vsub.f32 %v1153_v62, %v11139_v6  ;;  %v1184_v15 = vsub.f32 %v1153_v62, %v11137_v5  ;;  %v703_v6 = vrot.slane %v11239_v49, %v11131_v4 }
  0x2f   : > { %1252 = vadd.xlane.f32.xlu1 %v1251_v59  ;;  %1249 = vadd.xlane.f32.xlu0 %v1248_v60  ;;  %v1182_v59 = vsub.f32 %v1149_v47, %v11137_v5  ;;  %v1299_v60 = vsel %vm14691_vm0, %v1213_v53, 0.0  ;;  %v1296_v0 = vsel %vm14691_vm0, %v1212_v58, 0.0  ;;  %v759_v19 = vsub.f32 %v699_v11, %v11247_v56 }
  0x30   : > { %v1217_v17 = vmul.f32 %v1185_v10, %v1185_v10  ;;  %v1216_v21 = vmul.f32 %v1184_v15, %v1184_v15  ;;  %v758_v22 = vsub.f32 %v699_v11, %v11239_v49  ;;  %v707_v5 = vrot.slane %v11239_v49, %v11141_v7 }
  0x31   : > { %v1214_v1 = vmul.f32 %v1182_v59, %v1182_v59  ;;  %v761_v25 = vsub.f32 %v703_v6, %v11247_v56  ;;  %v760_v29 = vsub.f32 %v703_v6, %v11239_v49  ;;  %v719_v46 = vrot.slane %v11239_v49, %v11171_v36  ;;  %v11325_v6 = vld [vmem:[%s14664_s6 + $0x1] ss:$0 sm:$0xff] }
  0x32   : > { %v1311_v23 = vsel %vm14691_vm0, %v1217_v17, 0.0  ;;  %v1308_v26 = vsel %vm14691_vm0, %v1216_v21, 0.0  ;;  %v763_v31 = vsub.f32 %v707_v5, %v11247_v56  ;;  %v762_v37 = vsub.f32 %v707_v5, %v11239_v49  ;;  %v11315_v17 = vld [vmem:[%s14665_s7 + $0x8] sm:$0xff]  ;;  %v11340_v5 = vld [vmem:[%s14665_s7 + $0x10] sm:$0xff] }
  0x33   : > { %1258 = vadd.xlane.f32.xlu1 %v1257_v8  ;;  %1255 = vadd.xlane.f32.xlu0 %v1254_v9  ;;  %v756_v8 = vsub.f32 %v695_v54, %v11239_v49  ;;  %v789_v9 = vmul.f32 %v757_v61, %v757_v61  ;;  %v1302_v13 = vsel %vm14691_vm0, %v1214_v1, 0.0  ;;  %v793_v33 = vmul.f32 %v761_v25, %v761_v25  ;;  %v11345_v25 = vld [vmem:[%s14665_s7 + $0x18] sm:$0xff] }
  0x34   : > { %v792_v35 = vmul.f32 %v760_v29, %v760_v29  ;;  %v795_v38 = vmul.f32 %v763_v31, %v763_v31  ;;  %v768_v53 = vsub.f32 %v719_v46, %v11239_v49  ;;  %v769_v62 = vsub.f32 %v719_v46, %v11247_v56 }
  0x35   : > { %v788_v14 = vmul.f32 %v756_v8, %v756_v8  ;;  %v836_v41 = vsel %vm14691_vm0, %v793_v33, 0.0  ;;  %v14671_v21 = vand.u32 4294901760, %v11315_v17  ;;  %v14677_v33 = vmov 0.0  }
  0x36   : > { %v833_v42 = vsel %vm14691_vm0, %v792_v35, 0.0  ;;  %v842_v47 = vsel %vm14691_vm0, %v795_v38, 0.0  ;;  %v800_v59 = vmul.f32 %v768_v53, %v768_v53  ;;  %v801_v8 = vmul.f32 %v769_v62, %v769_v62 }
  0x37   : > { %1264 = vadd.xlane.f32.xlu1 %v1263_v12  ;;  %1261 = vadd.xlane.f32.xlu0 %v1260_v16  ;;  %v1305_v12 = vsel %vm14691_vm0, %v1215_v63, 0.0  ;;  %v824_v16 = vsel %vm14691_vm0, %v789_v9, 0.0  ;;  %v723_v63 = vrot.slane %v11239_v49, %v11181_v44 }
  0x38   : > { %v860_v10 = vsel %vm14691_vm0, %v801_v8, 0.0 }
  0x39   : > { %v770_v9 = vsub.f32 %v723_v63, %v11239_v49 }
  0x3b   : > { %1270 = vadd.xlane.f32.xlu1 %v1269_v20  ;;  %1267 = vadd.xlane.f32.xlu0 %v1266_v24  ;;  %v821_v20 = vsel %vm14691_vm0, %v788_v14, 0.0  ;;  %v791_v24 = vmul.f32 %v759_v19, %v759_v19  ;;  %v802_v11 = vmul.f32 %v770_v9, %v770_v9  ;;  %v11320_v19 = vld [vmem:[%s14664_s6] ss:$0 sm:$0xff] }
  0x3d   : > { %v830_v30 = vsel %vm14691_vm0, %v791_v24, 0.0 }
  0x3f   : > { %1276 = vadd.xlane.f32.xlu1 %v1275_v27  ;;  %1273 = vadd.xlane.f32.xlu0 %v1272_v32  ;;  %v790_v27 = vmul.f32 %v758_v22, %v758_v22  ;;  %v711_v32 = vrot.slane %v11239_v49, %v11157_v18 }
  0x41   : > { %v827_v34 = vsel %vm14691_vm0, %v790_v27, 0.0  ;;  %v764_v45 = vsub.f32 %v711_v32, %v11239_v49  ;;  %v14669_v27 = vand.u32 4294901760, %v11345_v25 }
  0x43   : > { %1282 = vadd.xlane.f32.xlu1 %v1281_v39  ;;  %1279 = vadd.xlane.f32.xlu0 %v1278_v40  ;;  %v765_v39 = vsub.f32 %v711_v32, %v11247_v56  ;;  %v715_v40 = vrot.slane %v11239_v49, %v11165_v28 }
  0x45   : > { %v797_v50 = vmul.f32 %v765_v39, %v765_v39  ;;  %v767_v54 = vsub.f32 %v715_v40, %v11247_v56 }
  0x47   : > { %1288 = vadd.xlane.f32.xlu1 %v1287_v43  ;;  %1285 = vadd.xlane.f32.xlu0 %v1284_v48  ;;  %v794_v43 = vmul.f32 %v762_v37, %v762_v37  ;;  %v766_v48 = vsub.f32 %v715_v40, %v11239_v49  ;;  %v848_v55 = vsel %vm14691_vm0, %v797_v50, 0.0 }
  0x49   : > { %v839_v51 = vsel %vm14691_vm0, %v794_v43, 0.0 }
  0x4b   : > { %1294 = vadd.xlane.f32.xlu1 %v1293_v52  ;;  %1291 = vadd.xlane.f32.xlu0 %v1290_v57  ;;  %v796_v52 = vmul.f32 %v764_v45, %v764_v45  ;;  %v798_v57 = vmul.f32 %v766_v48, %v766_v48 }
  0x4d   : > { %v845_v58 = vsel %vm14691_vm0, %v796_v52, 0.0  ;;  %v851_v61 = vsel %vm14691_vm0, %v798_v57, 0.0 }
  0x4f   : > { %1300 = vadd.xlane.f32.xlu1 %v1299_v60  ;;  %1297 = vadd.xlane.f32.xlu0 %v1296_v0  ;;  %v799_v60 = vmul.f32 %v767_v54, %v767_v54  ;;  %v857_v0 = vsel %vm14691_vm0, %v800_v59, 0.0 }
  0x51   : > { %v854_v1 = vsel %vm14691_vm0, %v799_v60, 0.0 }
  0x53   : > { %1306 = vadd.xlane.f32.xlu1 %v1305_v12  ;;  %1303 = vadd.xlane.f32.xlu0 %v1302_v13  ;;  %v771_v12 = vsub.f32 %v723_v63, %v11247_v56  ;;  %v863_v13 = vsel %vm14691_vm0, %v802_v11, 0.0 }
  0x55   : > { %v803_v14 = vmul.f32 %v771_v12, %v771_v12 }
  0x57   : > { %825 = vadd.xlane.f32.xlu1 %v824_v16  ;;  %822 = vadd.xlane.f32.xlu0 %v821_v20  ;;  %v866_v15 = vsel %vm14691_vm0, %v803_v14, 0.0  ;;  %v11310_v16 = vld [vmem:[%s14665_s7] sm:$0xff] }
  0x58   : > { %v14672_v20 = vand.u32 4294901760, %v11310_v16 }
  0x5a   : > { %v11333_v24 = vpack.c.bf16 %v14671_v21, %v14672_v20 }
  0x5b   : > { %1312 = vadd.xlane.f32.xlu1 %v1311_v23  ;;  %1309 = vadd.xlane.f32.xlu0 %v1308_v26  ;;  %v14670_v26 = vand.u32 4294901760, %v11340_v5 }
  0x5c   : > { %10180 = vmatprep.subr.bf16.mxu0 %v11333_v24  ;;  %10156 = vmatprep.subr.bf16.mxu1 %v11333_v24 }
  0x5d   : > { %10182 = vmatpush3.bf16.msra.mxu0 %v11333_v24  ;;  %10158 = vmatpush3.bf16.msra.mxu1 %v11333_v24  ;;  %v11359_v31 = vpack.c.bf16 %v14669_v27, %v14670_v26 }
  0x5f   : > { %831 = vadd.xlane.f32.xlu1 %v830_v30  ;;  %828 = vadd.xlane.f32.xlu0 %v827_v34  ;;  %14930 = vst [vmem:[#allocation10_spill] sm:$0xff] %v11359_v31 }
  0x60   : > { %10184 = vmatprep.subr.bf16.mxu0 %v11359_v31  ;;  %10160 = vmatprep.subr.bf16.mxu1 %v11359_v31 }
  0x61   : > { %10186 = vmatpush3.bf16.msra.mxu0 %v11359_v31  ;;  %10162 = vmatpush3.bf16.msra.mxu1 %v11359_v31 }
  0x63   : > { %837 = vadd.xlane.f32.xlu1 %v836_v41  ;;  %834 = vadd.xlane.f32.xlu0 %v833_v42 }
  0x67   : > { %843 = vadd.xlane.f32.xlu1 %v842_v47  ;;  %840 = vadd.xlane.f32.xlu0 %v839_v51 }
  0x6b   : > { %849 = vadd.xlane.f32.xlu1 %v848_v55  ;;  %846 = vadd.xlane.f32.xlu0 %v845_v58 }
  0x6f   : > { %852 = vadd.xlane.f32.xlu1 %v851_v61  ;;  %858 = vadd.xlane.f32.xlu0 %v857_v0  ;;  %v727_v61 = vrot.slane %v11247_v56, %v11129_v3 }
  0x71   : > { %v772_v63 = vsub.f32 %v727_v61, %v11239_v49  ;;  %v773_v12 = vsub.f32 %v727_v61, %v11247_v56 }
  0x73   : > { %855 = vadd.xlane.f32.xlu1 %v854_v1  ;;  %v804_v8 = vmul.f32 %v772_v63, %v772_v63 }
  0x75   : > { %v869_v11 = vsel %vm14691_vm0, %v804_v8, 0.0 }
  0x77   : > { %861 = vadd.xlane.f32.xlu1 %v860_v10 }
  0x7b   : > { %864 = vadd.xlane.f32.xlu1 %v863_v13  ;;  %v731_v13 = vrot.slane %v11247_v56, %v11127_v2 }
  0x7f   : > { %867 = vadd.xlane.f32.xlu1 %v866_v15  ;;  %v805_v15 = vmul.f32 %v773_v12, %v773_v12 }
  0xa8   : > { %v1226_v22 = vpop.xlane.xlu1 %1225  ;;  %v1220_v23 = vpop.xlane.xlu0 %1219 }
  0xa9   : > { %vm1316_vm1 = vcmp.gt.f32.partialorder %v1226_v22, %v11320_v19  ;;  %vm1348_vm2 = vcmp.lt.f32.partialorder %v1226_v22, %v11325_v6  ;;  %vm1314_vm3 = vcmp.gt.f32.partialorder %v1220_v23, %v11320_v19  ;;  %vm1346_vm4 = vcmp.lt.f32.partialorder %v1220_v23, %v11325_v6 }
  0xaa   : > { %vm1380_vm5 = vmand %vm1316_vm1, %vm1348_vm2  ;;  %v774_v22 = vsub.f32 %v731_v13, %v11239_v49 }
  0xab   : > { %vm11361_vm6 = vmand %vm1314_vm3, %vm1346_vm4  ;;  %v8457_v34 = vsel %vm1380_vm5, 1.0, %v14677_v33 }
  0xac   : > { %v1229_v29 = vpop.xlane.xlu1 %1228  ;;  %v1223_v30 = vpop.xlane.xlu0 %1222  ;;  %v8455_v40 = vsel %vm11361_vm6, 1.0, %v14677_v33  ;;  %v806_v32 = vmul.f32 %v774_v22, %v774_v22 }
  0xad   : > { %vm1317_vm7 = vcmp.gt.f32.partialorder %v1229_v29, %v11320_v19  ;;  %vm1349_vm8 = vcmp.lt.f32.partialorder %v1229_v29, %v11325_v6  ;;  %vm1315_vm9 = vcmp.gt.f32.partialorder %v1223_v30, %v11320_v19  ;;  %vm1347_vm10 = vcmp.lt.f32.partialorder %v1223_v30, %v11325_v6 }
  0xae   : > { %vm1381_vm11 = vmand %vm1317_vm7, %vm1349_vm8  ;;  %v872_v30 = vsel %vm14691_vm0, %v805_v15, 0.0 }
  0xaf   : > { %vm1379_vm12 = vmand %vm1315_vm9, %vm1347_vm10  ;;  %v8458_v35 = vsel %vm1381_vm11, 1.0, %v14677_v33 }
  0xb0   : > { %v1235_v37 = vpop.xlane.xlu1 %1234  ;;  %v1232_v38 = vpop.xlane.xlu0 %1231  ;;  %v10875_v39 = vpack.i.bf16 %v8458_v35, %v8457_v34  ;;  %v8456_v41 = vsel %vm1379_vm12, 1.0, %v14677_v33  ;;  %v775_v34 = vsub.f32 %v731_v13, %v11247_v56  ;;  %v735_v35 = vrot.slane %v11247_v56, %v11131_v4 }
  0xb1   : > { %vm1319_vm13 = vcmp.gt.f32.partialorder %v1235_v37, %v11320_v19  ;;  %vm1351_vm14 = vcmp.lt.f32.partialorder %v1235_v37, %v11325_v6  ;;  %vm1318_vm15 = vcmp.gt.f32.partialorder %v1232_v38, %v11320_v19  ;;  %vm1350_vm1 = vcmp.lt.f32.partialorder %v1232_v38, %v11325_v6 }
  0xb2   : > { %vm1383_vm2 = vmand %vm1319_vm13, %vm1351_vm14  ;;  %10876 = vrot.lane.b32.xlu1 %v10875_v39, %s11047_s21  ;;  %v10870_v42 = vpack.i.bf16 %v8456_v41, %v8455_v40  ;;  %v875_v39 = vsel %vm14691_vm0, %v806_v32, 0.0  ;;  %v807_v40 = vmul.f32 %v775_v34, %v775_v34  ;;  %v776_v41 = vsub.f32 %v735_v35, %v11239_v49 }
  0xb3   : > { %vm1382_vm3 = vmand %vm1318_vm15, %vm1350_vm1  ;;  %v8460_v43 = vsel %vm1383_vm2, 1.0, %v14677_v33  ;;  %v777_v34 = vsub.f32 %v735_v35, %v11247_v56 }
  0xb4   : > { %10871 = vrot.lane.b32.xlu0 %v10870_v42, %s11047_s21  ;;  %v1241_v45 = vpop.xlane.xlu1 %1240  ;;  %v1238_v46 = vpop.xlane.xlu0 %1237  ;;  %v8459_v47 = vsel %vm1382_vm3, 1.0, %v14677_v33 }
  0xb5   : > { %vm1321_vm4 = vcmp.gt.f32.partialorder %v1241_v45, %v11320_v19  ;;  %vm1353_vm5 = vcmp.lt.f32.partialorder %v1241_v45, %v11325_v6  ;;  %vm1320_vm6 = vcmp.gt.f32.partialorder %v1238_v46, %v11320_v19  ;;  %vm1352_vm7 = vcmp.lt.f32.partialorder %v1238_v46, %v11325_v6 }
  0xb6   : > { %vm1385_vm8 = vmand %vm1321_vm4, %vm1353_vm5  ;;  %v10880_v48 = vpack.i.bf16 %v8460_v43, %v8459_v47  ;;  %v878_v43 = vsel %vm14691_vm0, %v807_v40, 0.0  ;;  %v808_v45 = vmul.f32 %v776_v41, %v776_v41 }
  0xb7   : > { %vm1384_vm9 = vmand %vm1320_vm6, %vm1352_vm7  ;;  %v8462_v50 = vsel %vm1385_vm8, 1.0, %v14677_v33 }
  0xb8   : > { %10881 = vrot.lane.b32.xlu0 %v10880_v48, %s11047_s21  ;;  %v8461_v51 = vsel %vm1384_vm9, 1.0, %v14677_v33  ;;  %v1247_v52 = vpop.xlane.xlu1 %1246  ;;  %v1244_v54 = vpop.xlane.xlu0 %1243  ;;  %v881_v48 = vsel %vm14691_vm0, %v808_v45, 0.0 }
  0xb9   : > { %v10885_v53 = vpack.i.bf16 %v8462_v50, %v8461_v51  ;;  %vm1323_vm10 = vcmp.gt.f32.partialorder %v1247_v52, %v11320_v19  ;;  %vm1355_vm11 = vcmp.lt.f32.partialorder %v1247_v52, %v11325_v6  ;;  %vm1322_vm12 = vcmp.gt.f32.partialorder %v1244_v54, %v11320_v19 }
  0xba   : > { %vm1354_vm13 = vcmp.lt.f32.partialorder %v1244_v54, %v11325_v6  ;;  %vm1387_vm14 = vmand %vm1323_vm10, %vm1355_vm11 }
  0xbb   : > { %10886 = vrot.lane.b32.xlu1 %v10885_v53, %s11047_s21  ;;  %vm1386_vm2 = vmand %vm1322_vm12, %vm1354_vm13  ;;  %v8464_v51 = vsel %vm1387_vm14, 1.0, %v14677_v33 }
  0xbc   : > { %v1253_v55 = vpop.xlane.xlu1 %1252  ;;  %v1250_v58 = vpop.xlane.xlu0 %1249  ;;  %v8463_v50 = vsel %vm1386_vm2, 1.0, %v14677_v33 }
  0xbd   : > { %vm1325_vm15 = vcmp.gt.f32.partialorder %v1253_v55, %v11320_v19  ;;  %vm1357_vm1 = vcmp.lt.f32.partialorder %v1253_v55, %v11325_v6  ;;  %vm1324_vm3 = vcmp.gt.f32.partialorder %v1250_v58, %v11320_v19  ;;  %vm1356_vm4 = vcmp.lt.f32.partialorder %v1250_v58, %v11325_v6 }
  0xbe   : > { %vm1389_vm5 = vmand %vm1325_vm15, %vm1357_vm1  ;;  %v10890_v54 = vpack.i.bf16 %v8464_v51, %v8463_v50 }
  0xbf   : > { %vm1388_vm6 = vmand %vm1324_vm3, %vm1356_vm4  ;;  %v8466_v61 = vsel %vm1389_vm5, 1.0, %v14677_v33 }
  0xc0   : > { %v11395_v57 = vpop.xlane.xlu1 %1258  ;;  %v11399_v60 = vpop.xlane.xlu0 %1255  ;;  %v8465_v55 = vsel %vm1388_vm6, 1.0, %v14677_v33 }
  0xc1   : > { %v10895_v63 = vpack.i.bf16 %v8466_v61, %v8465_v55  ;;  %vm1327_vm7 = vcmp.gt.f32.partialorder %v11395_v57, %v11320_v19  ;;  %vm1359_vm8 = vcmp.lt.f32.partialorder %v11395_v57, %v11325_v6  ;;  %vm1326_vm9 = vcmp.gt.f32.partialorder %v11399_v60, %v11320_v19 }
  0xc2   : > { %vm1358_vm10 = vcmp.lt.f32.partialorder %v11399_v60, %v11325_v6  ;;  %vm1391_vm11 = vmand %vm1327_vm7, %vm1359_vm8 }
  0xc3   : > { %vm1390_vm12 = vmand %vm1326_vm9, %vm1358_vm10  ;;  %v8468_v57 = vsel %vm1391_vm11, 1.0, %v14677_v33 }
  0xc4   : > { %v11397_v59 = vpop.xlane.xlu1 %1264  ;;  %v11408_v1 = vpop.xlane.xlu0 %1261  ;;  %v8467_v13 = vsel %vm1390_vm12, 1.0, %v14677_v33 }
  0xc5   : > { %v10900_v15 = vpack.i.bf16 %v8468_v57, %v8467_v13  ;;  %v11507_v13 = vrot.slane %v11247_v56, %v11157_v18  ;;  %vm1329_vm13 = vcmp.gt.f32.partialorder %v11397_v59, %v11320_v19  ;;  %vm1361_vm14 = vcmp.lt.f32.partialorder %v11397_v59, %v11325_v6 }
  0xc6   : > { %vm1328_vm15 = vcmp.gt.f32.partialorder %v11408_v1, %v11320_v19  ;;  %vm1360_vm1 = vcmp.lt.f32.partialorder %v11408_v1, %v11325_v6  ;;  %vm11523_vm2 = vmand %vm1329_vm13, %vm1361_vm14 }
  0xc7   : > { %vm1392_vm5 = vmand %vm1328_vm15, %vm1360_vm1 }
  0xc8   : > { %v11403_v62 = vpop.xlane.xlu1 %1270  ;;  %v11412_v10 = vpop.xlane.xlu0 %1267 }
  0xc9   : > { %vm1331_vm3 = vcmp.gt.f32.partialorder %v11403_v62, %v11320_v19  ;;  %vm1363_vm4 = vcmp.lt.f32.partialorder %v11403_v62, %v11325_v6  ;;  %vm1330_vm8 = vcmp.gt.f32.partialorder %v11412_v10, %v11320_v19  ;;  %vm1362_vm9 = vcmp.lt.f32.partialorder %v11412_v10, %v11325_v6 }
  0xca   : > { %vm11540_vm10 = vmand %vm1331_vm3, %vm1363_vm4 }
  0xcb   : > { %vm11559_vm1 = vmand %vm1330_vm8, %vm1362_vm9  ;;  %vm14700_vm8 = vcmask 261120  }
  0xcc   : > { %v11406_v0 = vpop.xlane.xlu1 %1276  ;;  %v11423_v29 = vpop.xlane.xlu0 %1273 }
  0xd0   : > { %v11410_v9 = vpop.xlane.xlu1 %1282  ;;  %v11431_v38 = vpop.xlane.xlu0 %1279 }
  0xd4   : > { %v11418_v14 = vpop.xlane.xlu1 %1288  ;;  %v11442_v46 = vpop.xlane.xlu0 %1285 }
  0xd7   : > { %870 = vadd.xlane.f32.xlu0 %v869_v11 }
  0xd8   : > { %v11421_v23 = vpop.xlane.xlu1 %1294  ;;  %v11455_v53 = vpop.xlane.xlu0 %1291 }
  0xdc   : > { %v11429_v37 = vpop.xlane.xlu1 %1300  ;;  %v11466_v8 = vpop.xlane.xlu0 %1297 }
  0xdf   : > { %873 = vadd.xlane.f32.xlu1 %v872_v30 }
  0xe0   : > { %v11435_v42 = vpop.xlane.xlu1 %1306  ;;  %v11475_v12 = vpop.xlane.xlu0 %1303 }
  0xe3   : > { %876 = vadd.xlane.f32.xlu1 %v875_v39  ;;  %v739_v39 = vrot.slane %v11247_v56, %v11141_v7 }
  0xe4   : > { %v11444_v47 = vpop.xlane.xlu1 %825  ;;  %v11482_v30 = vpop.xlane.xlu0 %822 }
  0xe5   : > { %v779_v45 = vsub.f32 %v739_v39, %v11247_v56  ;;  %vm922_vm13 = vcmp.gt.f32.partialorder %v11444_v47, %v11320_v19  ;;  %vm958_vm14 = vcmp.lt.f32.partialorder %v11444_v47, %v11325_v6  ;;  %vm921_vm3 = vcmp.gt.f32.partialorder %v11482_v30, %v11320_v19 }
  0xe6   : > { %vm957_vm4 = vcmp.lt.f32.partialorder %v11482_v30, %v11325_v6  ;;  %vm11575_vm9 = vmand %vm922_vm13, %vm958_vm14 }
  0xe7   : > { %879 = vadd.xlane.f32.xlu1 %v878_v43  ;;  %v809_v43 = vmul.f32 %v777_v34, %v777_v34  ;;  %v811_v51 = vmul.f32 %v779_v45, %v779_v45  ;;  %v780_v34 = vsub.f32 %v11507_v13, %v11239_v49 }
  0xe8   : > { %v11453_v52 = vpop.xlane.xlu1 %1312  ;;  %v11486_v32 = vpop.xlane.xlu0 %1309 }
  0xe9   : > { %v884_v50 = vsel %vm14691_vm0, %v809_v43, 0.0  ;;  %v890_v55 = vsel %vm14691_vm0, %v811_v51, 0.0  ;;  %v812_v45 = vmul.f32 %v780_v34, %v780_v34  ;;  %v8470_v51 = vsel %vm11523_vm2, 1.0, %v14677_v33 }
  0xea   : > { %vm1602_vm2 = vcmask 130048   ;;  %v11587_v43 = vsel %vm11540_vm10, 1.0, %v14677_v33 }
  0xeb   : > { %882 = vadd.xlane.f32.xlu1 %v881_v48  ;;  %v893_v10 = vsel %vm14691_vm0, %v812_v45, 0.0 }
  0xec   : > { %v11460_v58 = vpop.xlane.xlu1 %831  ;;  %v829_v41 = vpop.xlane.xlu0 %828 }
  0xed   : > { %10891 = vrot.lane.b32.xlu0 %v10890_v54, %s11047_s21  ;;  %vm923_vm6 = vcmp.gt.f32.partialorder %v829_v41, %v11320_v19  ;;  %vm959_vm7 = vcmp.lt.f32.partialorder %v829_v41, %v11325_v6  ;;  %vm924_vm11 = vcmp.gt.f32.partialorder %v11460_v58, %v11320_v19  ;;  %vm960_vm12 = vcmp.lt.f32.partialorder %v11460_v58, %v11325_v6 }
  0xee   : > { %v8469_v41 = vsel %vm1392_vm5, 1.0, %v14677_v33  ;;  %vm991_vm15 = vmand %vm923_vm6, %vm959_vm7  ;;  %v8424_v58 = vsel %vm11575_vm9, 1.0, %v14677_v33  ;;  %vm1365_vm9 = vcmp.lt.f32.partialorder %v11406_v0, %v11325_v6 }
  0xef   : > { %vm11567_vm5 = vmand %vm924_vm11, %vm960_vm12  ;;  %v10905_v47 = vpack.i.bf16 %v8470_v51, %v8469_v41 }
  0xf0   : > { %v11473_v11 = vpop.xlane.xlu1 %837  ;;  %v11497_v54 = vpop.xlane.xlu0 %834  ;;  %v8426_v41 = vsel %vm11567_vm5, 1.0, %v14677_v33 }
  0xf1   : > { %10896 = vrot.lane.b32.xlu0 %v10895_v63, %s11047_s21  ;;  %v778_v63 = vsub.f32 %v739_v39, %v11239_v49  ;;  %vm926_vm6 = vcmp.gt.f32.partialorder %v11473_v11, %v11320_v19  ;;  %vm962_vm7 = vcmp.lt.f32.partialorder %v11473_v11, %v11325_v6  ;;  %vm925_vm11 = vcmp.gt.f32.partialorder %v11497_v54, %v11320_v19 }
  0xf2   : > { %vm961_vm12 = vcmp.lt.f32.partialorder %v11497_v54, %v11325_v6  ;;  %vm11612_vm10 = vmand %vm926_vm6, %vm962_vm7  ;;  %vm1333_vm7 = vcmp.gt.f32.partialorder %v11406_v0, %v11320_v19 }
  0xf3   : > { %vm11631_vm5 = vmand %vm925_vm11, %vm961_vm12  ;;  %vm1332_vm11 = vcmp.gt.f32.partialorder %v11423_v29, %v11320_v19  ;;  %vm1364_vm12 = vcmp.lt.f32.partialorder %v11423_v29, %v11325_v6 }
  0xf4   : > { %v11479_v22 = vpop.xlane.xlu1 %843  ;;  %v11502_v61 = vpop.xlane.xlu0 %840 }
  0xf5   : > { %vm928_vm13 = vcmp.gt.f32.partialorder %v11479_v22, %v11320_v19  ;;  %vm964_vm14 = vcmp.lt.f32.partialorder %v11479_v22, %v11325_v6 }
  0xf8   : > { %v11484_v60 = vpop.xlane.xlu1 %849  ;;  %v11521_v39 = vpop.xlane.xlu0 %846 }
  0xfc   : > { %10901 = vrot.lane.b32.xlu1 %v10900_v15, %s11047_s21  ;;  %v11491_v40 = vpop.xlane.xlu1 %852  ;;  %v810_v15 = vmul.f32 %v778_v63, %v778_v63  ;;  %v11548_v62 = vpop.xlane.xlu0 %858 }
  0xfe   : > { %v887_v59 = vsel %vm14691_vm0, %v810_v15, 0.0  ;;  %v8425_v15 = vsel %vm991_vm15, 1.0, %v14677_v33  ;;  %vm11599_vm15 = vmand %vm921_vm3, %vm957_vm4  ;;  %vm927_vm3 = vcmp.gt.f32.partialorder %v11502_v61, %v11320_v19  ;;  %vm963_vm4 = vcmp.lt.f32.partialorder %v11502_v61, %v11325_v6 }
  0xff   : > { %vm11655_vm6 = vmand %vm927_vm3, %vm963_vm4  ;;  %vm1334_vm3 = vcmp.gt.f32.partialorder %v11431_v38, %v11320_v19  ;;  %vm1366_vm4 = vcmp.lt.f32.partialorder %v11431_v38, %v11325_v6 }
 0x100   : > { %v11494_v48 = vpop.xlane.xlu1 %855  ;;  %v8429_v11 = vsel %vm11655_vm6, 1.0, %v14677_v33 }
 0x104   : > { %v11500_v35 = vpop.xlane.xlu1 %861 }
 0x108   : > { %v11509_v57 = vpop.xlane.xlu1 %864 }
 0x10c   : > { %v11534_v1 = vpop.xlane.xlu1 %867 }
 0x110   : > { %885 = vadd.xlane.f32.xlu0 %v884_v50 }
 0x114   : > { %891 = vadd.xlane.f32.xlu0 %v890_v55 }
 0x120   : > { %888 = vadd.xlane.f32.xlu1 %v887_v59  ;;  %v8428_v59 = vsel %vm11612_vm10, 1.0, %v14677_v33  ;;  %vm1367_vm10 = vcmp.lt.f32.partialorder %v11410_v9, %v11325_v6 }
 0x124   : > { %894 = vadd.xlane.f32.xlu1 %v893_v10  ;;  %v10877_v34 = vpop.permute.xlu1 %10876  ;;  %v11623_v10 = vsel %vm11559_vm1, 1.0, %v14677_v33  ;;  %vm11646_vm1 = vmand %vm928_vm13, %vm964_vm14 }
 0x125   : > { %v10879_v45 = vunpack.i.h.bf16 %v10877_v34  ;;  %v10878_v50 = vunpack.i.l.bf16 %v10877_v34  ;;  %v8430_v51 = vsel %vm11646_vm1, 1.0, %v14677_v33  ;;  %vm1397_vm13 = vmand %vm1333_vm7, %vm1365_vm9  ;;  %vm966_vm1 = vcmp.lt.f32.partialorder %v11484_v60, %v11325_v6 }
 0x126   : > { %v10872_v30 = vpop.permute.xlu0 %10871  ;;  %vm1396_vm14 = vmand %vm1332_vm11, %vm1364_vm12  ;;  %vm929_vm7 = vcmp.gt.f32.partialorder %v11521_v39, %v11320_v19  ;;  %vm965_vm9 = vcmp.lt.f32.partialorder %v11521_v39, %v11325_v6 }
 0x127   : > { %v1606_v55 = vsel %vm1602_vm2, %v8426_v41, %v10879_v45  ;;  %v1605_v61 = vsel %vm1602_vm2, %v8425_v15, %v10878_v50  ;;  %v10874_v34 = vunpack.i.h.bf16 %v10872_v30  ;;  %v10873_v27 = vunpack.i.l.bf16 %v10872_v30  ;;  %vm1398_vm11 = vmand %vm1334_vm3, %vm1366_vm4 }
 0x128   : > { %v8423_v15 = vsel %vm11599_vm15, 1.0, %v14677_v33  ;;  %v1650_v45 = vsel %vm14700_vm8, %v1606_v55, 0  ;;  %v1647_v50 = vsel %vm14700_vm8, %v1605_v61, 0  ;;  %v8427_v55 = vsel %vm11631_vm5, 1.0, %v14677_v33 }
 0x129   : > { %v11659_v41 = vand.u32 4294901760, %v1650_v45  ;;  %v11661_v30 = vand.u32 4294901760, %v1647_v50  ;;  %v1604_v22 = vsel %vm1602_vm2, %v8424_v58, %v10874_v34  ;;  %v1603_v26 = vsel %vm1602_vm2, %v8423_v15, %v10873_v27 }
 0x12a   : > { %v1644_v61 = vsel %vm14700_vm8, %v1604_v22, 0  ;;  %10906 = vrot.lane.b32.xlu0 %v10905_v47, %s11047_s21  ;;  %v10882_v21 = vpop.permute.xlu0 %10881  ;;  %v1641_v20 = vsel %vm14700_vm8, %v1603_v26, 0  ;;  %vm1335_vm15 = vcmp.gt.f32.partialorder %v11410_v9, %v11320_v19  ;;  %vm930_vm5 = vcmp.gt.f32.partialorder %v11484_v60, %v11320_v19 }
 0x12b   : > { %14953 = vst [vmem:[#allocation11_spill] sm:$0xff] %v11659_v41  ;;  %v11674_v18 = vand.u32 4294901760, %v1644_v61  ;;  %v10884_v34 = vunpack.i.h.bf16 %v10882_v21  ;;  %v10883_v58 = vunpack.i.l.bf16 %v10882_v21  ;;  %v11676_v27 = vand.u32 4294901760, %v1641_v20  ;;  %vm1399_vm6 = vmand %vm1335_vm15, %vm1367_vm10 }
 0x12c   : > { %v11685_v15 = vsub.f32 %v1647_v50, %v11661_v30  ;;  %v11688_v47 = vsub.f32 %v1650_v45, %v11659_v41  ;;  %vm998_vm12 = vmand %vm930_vm5, %vm966_vm1  ;;  %vm932_vm15 = vcmp.gt.f32.partialorder %v11494_v48, %v11320_v19  ;;  %vm968_vm10 = vcmp.lt.f32.partialorder %v11494_v48, %v11325_v6 }
 0x12d   : > { %v1608_v26 = vsel %vm1602_vm2, %v8428_v59, %v10884_v34  ;;  %v1607_v21 = vsel %vm1602_vm2, %v8427_v55, %v10883_v58  ;;  %v10887_v22 = vpop.permute.xlu1 %10886  ;;  %v11693_v7 = vsub.f32 %v1641_v20, %v11676_v27  ;;  %v11696_v54 = vsub.f32 %v1644_v61, %v11674_v18  ;;  %vm1000_vm4 = vmand %vm932_vm15, %vm968_vm10 }
 0x12e   : > { %14954 = vst [vmem:[#allocation12_spill] sm:$0xff] %v11685_v15  ;;  %v1656_v63 = vsel %vm14700_vm8, %v1608_v26, 0  ;;  %v1653_v33 = vsel %vm14700_vm8, %v1607_v21, 0  ;;  %v10889_v50 = vunpack.i.h.bf16 %v10887_v22  ;;  %v10888_v4 = vunpack.i.l.bf16 %v10887_v22 }
 0x12f   : > { %14955 = vst [vmem:[#allocation13_spill] sm:$0xff] %v11696_v54  ;;  %v11700_v2 = vand.u32 4294901760, %v1656_v63  ;;  %v11702_v45 = vand.u32 4294901760, %v1653_v33  ;;  %v1807_v59 = vand.u32 4294901760, %v11693_v7  ;;  %v1817_v55 = vand.u32 4294901760, %v11696_v54 }
 0x130   : > { %v1610_v20 = vsel %vm1602_vm2, %v8430_v51, %v10889_v50  ;;  %v1609_v34 = vsel %vm1602_vm2, %v8429_v11, %v10888_v4  ;;  %v1827_v61 = vand.u32 4294901760, %v11685_v15  ;;  %v1837_v58 = vand.u32 4294901760, %v11688_v47 }
 0x131   : > { %v1662_v26 = vsel %vm14700_vm8, %v1610_v20, 0  ;;  %v1659_v21 = vsel %vm14700_vm8, %v1609_v34, 0  ;;  %9323 = vmatprep.mubr.f32.mxu0 %v1807_v59  ;;  %v1808_v22 = vsub.f32 %v11693_v7, %v1807_v59  ;;  %v1818_v3 = vsub.f32 %v11696_v54, %v1817_v55 }
 0x132   : > { %v11714_v41 = vand.u32 4294901760, %v1662_v26  ;;  %v11716_v31 = vand.u32 4294901760, %v1659_v21  ;;  %9324 = vmatmul.mubr.f32.vlgmr.msra.gmra.mrb[0].mxu0 %v1817_v55  ;;  %v1828_v4 = vsub.f32 %v11685_v15, %v1827_v61  ;;  %v11720_v51 = vsub.f32 %v1653_v33, %v11702_v45 }
 0x133   : > { %9326 = vmatprep.mubr.f32.mxu0 %v1827_v61  ;;  %v1809_v11 = vand.u32 4294901760, %v1808_v22  ;;  %v10910_v50 = vpack.i.bf16 %v11587_v43, %v11623_v10  ;;  %v1819_v20 = vand.u32 4294901760, %v1818_v3  ;;  %v11725_v59 = vsub.f32 %v1656_v63, %v11700_v2 }
 0x134   : > { %v1847_v34 = vand.u32 4294901760, %v11720_v51  ;;  %v1838_v54 = vsub.f32 %v11688_v47, %v1837_v58  ;;  %v11730_v55 = vsub.f32 %v1659_v21, %v11716_v31  ;;  %v11733_v15 = vsub.f32 %v1662_v26, %v11714_v41 }
 0x135   : > { %9155 = vmatprep.mubr.f32.mxu1 %v1809_v11  ;;  %10911 = vrot.lane.b32.xlu1 %v10910_v50, %s11047_s21  ;;  %v1829_v33 = vand.u32 4294901760, %v1828_v4  ;;  %v1857_v43 = vand.u32 4294901760, %v11725_v59  ;;  %v747_v50 = vrot.slane %v11247_v56, %v11165_v28  ;;  %vm969_vm5 = vcmp.lt.f32.partialorder %v11548_v62, %v11325_v6 }
 0x136   : > { %9156 = vmatmul.mubr.f32.vlgmr.msra.gmra.mrb[0].mxu1 %v1819_v20  ;;  %9327 = vmatmul.mubr.f32.gmra.mrb[2].mxu0 %v1837_v58  ;;  %v1848_v3 = vsub.f32 %v11720_v51, %v1847_v34  ;;  %v1867_v10 = vand.u32 4294901760, %v11730_v55  ;;  %v1839_v63 = vand.u32 4294901760, %v1838_v54  ;;  %v1877_v26 = vand.u32 4294901760, %v11733_v15 }
 0x137   : > { %9158 = vmatprep.mubr.f32.mxu1 %v1829_v33  ;;  %9329 = vmatprep.mubr.f32.mxu0 %v1847_v34  ;;  %v1858_v61 = vsub.f32 %v11725_v59, %v1857_v43  ;;  %v781_v54 = vsub.f32 %v11507_v13, %v11247_v56  ;;  %v783_v33 = vsub.f32 %v747_v50, %v11247_v56 }
 0x138   : > { %v1849_v21 = vand.u32 4294901760, %v1848_v3  ;;  %v1868_v22 = vsub.f32 %v11730_v55, %v1867_v10  ;;  %v1878_v58 = vsub.f32 %v11733_v15, %v1877_v26  ;;  %v11753_v13 = vrot.slane %v11247_v56, %v11171_v36 }
 0x139   : > { %v1859_v4 = vand.u32 4294901760, %v1858_v61  ;;  %v813_v34 = vmul.f32 %v781_v54, %v781_v54  ;;  %v815_v3 = vmul.f32 %v783_v33, %v783_v33  ;;  %vm934_vm1 = vcmp.gt.f32.partialorder %v11500_v35, %v11320_v19 }
 0x13a   : > { %9159 = vmatmul.mubr.f32.gmra.mrb[2].mxu1 %v1839_v63  ;;  %9330 = vmatmul.mubr.f32.gmra.mrb[4].mxu0 %v1857_v43  ;;  %v1869_v11 = vand.u32 4294901760, %v1868_v22  ;;  %v1879_v20 = vand.u32 4294901760, %v1878_v58  ;;  %v782_v63 = vsub.f32 %v747_v50, %v11239_v49  ;;  %vm1369_vm15 = vcmp.lt.f32.partialorder %v11418_v14, %v11325_v6 }
 0x13b   : > { %9161 = vmatprep.mubr.f32.mxu1 %v1849_v21  ;;  %9332 = vmatprep.mubr.f32.mxu0 %v1867_v10  ;;  %v896_v43 = vsel %vm14691_vm0, %v813_v34, 0.0  ;;  %v902_v10 = vsel %vm14691_vm0, %v815_v3, 0.0  ;;  %vm1336_vm10 = vcmp.gt.f32.partialorder %v11442_v46, %v11320_v19 }
 0x13c   : > { %v814_v61 = vmul.f32 %v782_v63, %v782_v63 }
 0x13e   : > { %9162 = vmatmul.mubr.f32.gmra.mrb[4].mxu1 %v1859_v4  ;;  %9333 = vmatmul.mubr.f32.gmra.mrb[6].mxu0 %v1877_v26  ;;  %v784_v26 = vsub.f32 %v11753_v13, %v11239_v49  ;;  %v899_v21 = vsel %vm14691_vm0, %v814_v61, 0.0  ;;  %v14956_v49 = vmov 0.0  }
 0x13f   : > { %9164 = vmatprep.mubr.f32.mxu1 %v1869_v11  ;;  %v8473_v58 = vsel %vm1396_vm14, 1.0, %v14956_v49  ;;  %v8474_v11 = vsel %vm1397_vm13, 1.0, %v14956_v49  ;;  %vm931_vm13 = vcmp.gt.f32.partialorder %v11491_v40, %v11320_v19  ;;  %vm967_vm14 = vcmp.lt.f32.partialorder %v11491_v40, %v11325_v6 }
 0x140   : > { %v816_v22 = vmul.f32 %v784_v26, %v784_v26  ;;  %v10915_v0 = vpack.i.bf16 %v8474_v11, %v8473_v58  ;;  %v8475_v39 = vsel %vm1398_vm11, 1.0, %v14956_v49  ;;  %v8476_v54 = vsel %vm1399_vm6, 1.0, %v14956_v49  ;;  %vm999_vm3 = vmand %vm931_vm13, %vm967_vm14 }
 0x141   : > { %v8432_v50 = vsel %vm998_vm12, 1.0, %v14956_v49  ;;  %vm970_vm6 = vcmp.lt.f32.partialorder %v11500_v35, %v11325_v6  ;;  %vm14961_vm11 = vcmask 64512   ;;  %vm1337_vm14 = vcmp.gt.f32.partialorder %v11418_v14, %v11320_v19 }
 0x142   : > { %9165 = vmatmul.mubr.f32.gmra.mrb[6].mxu1 %v1879_v20  ;;  %v905_v4 = vsel %vm14691_vm0, %v816_v22, 0.0  ;;  %vm997_vm0 = vmand %vm929_vm7, %vm965_vm9  ;;  %v8433_v22 = vsel %vm999_vm3, 1.0, %v14956_v49  ;;  %vm1368_vm3 = vcmp.lt.f32.partialorder %v11442_v46, %v11325_v6 }
 0x143   : > { %v8431_v20 = vsel %vm997_vm0, 1.0, %v14956_v49  ;;  %vm933_vm0 = vcmp.gt.f32.partialorder %v11548_v62, %v11320_v19  ;;  %vm1002_vm9 = vmand %vm934_vm1, %vm970_vm6  ;;  %v14960_v62 = vand.u32 4294901760, %v11315_v17  ;;  %vm1340_vm6 = vcmp.gt.f32.partialorder %v11466_v8, %v11320_v19 }
 0x144   : > { %vm1001_vm7 = vmand %vm933_vm0, %vm969_vm5  ;;  %vm1341_vm0 = vcmp.gt.f32.partialorder %v11429_v37, %v11320_v19  ;;  %vm1373_vm5 = vcmp.lt.f32.partialorder %v11429_v37, %v11325_v6 }
 0x145   : > { %vm14962_vm12 = vmmov %vm14961_vm11 }
 0x146   : > { %vm14965_vm13 = vmmov %vm14961_vm11 }
 0x147   : > { %vm1400_vm1 = vmand %vm1336_vm10, %vm1368_vm3  ;;  %vm1375_vm10 = vcmp.lt.f32.partialorder %v11435_v42, %v11325_v6 }
 0x148   : > { %v8477_v14 = vsel %vm1400_vm1, 1.0, %v14956_v49 }
 0x149   : > { %897 = vadd.xlane.f32.xlu0 %v896_v43 }
 0x14d   : > { %903 = vadd.xlane.f32.xlu0 %v902_v10  ;;  %v10920_v10 = vpack.i.bf16 %v8476_v54, %v8475_v39 }
 0x159   : > { %900 = vadd.xlane.f32.xlu1 %v899_v21 }
 0x15d   : > { %906 = vadd.xlane.f32.xlu1 %v905_v4  ;;  %v8434_v4 = vsel %vm1000_vm4, 1.0, %v14956_v49  ;;  %vm1401_vm4 = vmand %vm1337_vm14, %vm1369_vm15  ;;  %vm1370_vm14 = vcmp.lt.f32.partialorder %v11455_v53, %v11325_v6  ;;  %vm1343_vm15 = vcmp.gt.f32.partialorder %v11435_v42, %v11320_v19 }
 0x15e   : > { %v8478_v37 = vsel %vm1401_vm4, 1.0, %v14956_v49  ;;  %vm1407_vm4 = vmand %vm1343_vm15, %vm1375_vm10 }
 0x15f   : > { %v10925_v46 = vpack.i.bf16 %v8478_v37, %v8477_v14 }
 0x163   : > { %10916 = vrot.lane.b32.xlu0 %v10915_v0, %s11047_s21 }
 0x164   : > { %v11786_v9 = vpop.xlane.xlu0 %870 }
 0x168   : > { %v10892_v29 = vpop.permute.xlu0 %10891 }
 0x169   : > { %v10894_v38 = vunpack.i.h.bf16 %v10892_v29  ;;  %v10893_v60 = vunpack.i.l.bf16 %v10892_v29 }
 0x16b   : > { %v1612_v40 = vsel %vm1602_vm2, %v8432_v50, %v10894_v38  ;;  %v1611_v34 = vsel %vm1602_vm2, %v8431_v20, %v10893_v60 }
 0x16c   : > { %v1668_v33 = vsel %vm14700_vm8, %v1612_v40, 0  ;;  %v1665_v48 = vsel %vm14700_vm8, %v1611_v34, 0  ;;  %v10897_v43 = vpop.permute.xlu0 %10896  ;;  %v11804_v3 = vpop.xlane.xlu1 %873 }
 0x16d   : > { %v11806_v63 = vand.u32 4294901760, %v1668_v33  ;;  %v11808_v61 = vand.u32 4294901760, %v1665_v48  ;;  %v10899_v26 = vunpack.i.h.bf16 %v10897_v43  ;;  %v10898_v21 = vunpack.i.l.bf16 %v10897_v43 }
 0x16e   : > { %10921 = vrot.lane.b32.xlu1 %v10920_v10, %s11047_s21 }
 0x16f   : > { %v1614_v58 = vsel %vm1602_vm2, %v8434_v4, %v10899_v26  ;;  %v1613_v11 = vsel %vm1602_vm2, %v8433_v22, %v10898_v21  ;;  %v11816_v0 = vsub.f32 %v1665_v48, %v11808_v61  ;;  %v11819_v29 = vsub.f32 %v1668_v33, %v11806_v63 }
 0x170   : > { %v1674_v38 = vsel %vm14700_vm8, %v1614_v58, 0  ;;  %v1671_v60 = vsel %vm14700_vm8, %v1613_v11, 0  ;;  %v11823_v39 = vpop.xlane.xlu1 %876 }
 0x171   : > { %v11825_v54 = vand.u32 4294901760, %v1674_v38  ;;  %v11827_v50 = vand.u32 4294901760, %v1671_v60  ;;  %v1887_v20 = vand.u32 4294901760, %v11816_v0  ;;  %v1897_v40 = vand.u32 4294901760, %v11819_v29 }
 0x173   : > { %v11832_v34 = vsub.f32 %v1671_v60, %v11827_v50  ;;  %v11835_v33 = vsub.f32 %v1674_v38, %v11825_v54  ;;  %9335 = vmatprep.mubr.f32.mxu0 %v1887_v20  ;;  %v1888_v43 = vsub.f32 %v11816_v0, %v1887_v20  ;;  %v1898_v10 = vsub.f32 %v11819_v29, %v1897_v40 }
 0x174   : > { %v11837_v48 = vpop.xlane.xlu1 %879  ;;  %9336 = vmatmul.mubr.f32.gmra.mrb[8].mxu0 %v1897_v40  ;;  %v785_v38 = vsub.f32 %v11753_v13, %v11247_v56  ;;  %v755_v60 = vrot.slane %v11247_v56, %v11181_v44  ;;  %v11016_v13 = vld [vmem:[%s11231_s23 + $0x8] sm:$0xff] }
 0x175   : > { %14957 = vst [vmem:[#allocation14_spill] sm:$0xff] %v11832_v34  ;;  %14958 = vst [vmem:[#allocation15_spill] sm:$0xff] %v11835_v33  ;;  %v1907_v26 = vand.u32 4294901760, %v11832_v34  ;;  %v1917_v21 = vand.u32 4294901760, %v11835_v33  ;;  %v1889_v22 = vand.u32 4294901760, %v1888_v43  ;;  %v1899_v4 = vand.u32 4294901760, %v1898_v10 }
 0x176   : > { %v817_v56 = vmul.f32 %v785_v38, %v785_v38  ;;  %v787_v10 = vsub.f32 %v755_v60, %v11016_v13 }
 0x177   : > { %9338 = vmatprep.mubr.f32.mxu0 %v1907_v26  ;;  %v1908_v58 = vsub.f32 %v11832_v34, %v1907_v26  ;;  %v1918_v11 = vsub.f32 %v11835_v33, %v1917_v21  ;;  %9167 = vmatprep.mubr.f32.mxu1 %v1889_v22 }
 0x178   : > { %v11857_v20 = vpop.xlane.xlu1 %882  ;;  %9168 = vmatmul.mubr.f32.gmra.mrb[8].mxu1 %v1899_v4  ;;  %9339 = vmatmul.mubr.f32.gmra.mrb[10].mxu0 %v1917_v21  ;;  %v8436_v21 = vsel %vm1002_vm9, 1.0, %v14956_v49  ;;  %v8435_v4 = vsel %vm1001_vm7, 1.0, %v14956_v49  ;;  %v908_v13 = vsel %vm14961_vm11, %v817_v56, 0.0  ;;  %vm1372_vm7 = vcmp.lt.f32.partialorder %v11466_v8, %v11325_v6 }
 0x179   : > { %v1909_v40 = vand.u32 4294901760, %v1908_v58  ;;  %v1919_v43 = vand.u32 4294901760, %v1918_v11  ;;  %v14959_v58 = vand.u32 4294901760, %v11310_v16  ;;  %vm1339_vm9 = vcmp.gt.f32.partialorder %v11421_v23, %v11320_v19  ;;  %vm1404_vm3 = vmand %vm1340_vm6, %vm1372_vm7 }
 0x17a   : > { %vm1371_vm11 = vcmp.lt.f32.partialorder %v11421_v23, %v11325_v6  ;;  %vm1345_vm6 = vcmp.gt.f32.partialorder %v11453_v52, %v11320_v19  ;;  %vm1377_vm7 = vcmp.lt.f32.partialorder %v11453_v52, %v11325_v6  ;;  %v11020_v23 = vld [vmem:[%s14665_s7 + $0x10] sm:$0xff] }
 0x17b   : > { %9170 = vmatprep.mubr.f32.mxu1 %v1909_v40  ;;  %v11871_v11 = vsub.f32 %v11310_v16, %v14959_v58  ;;  %v11876_v40 = vsub.f32 %v11315_v17, %v14960_v62 }
 0x17c   : > { %v10902_v35 = vpop.permute.xlu1 %10901  ;;  %9171 = vmatmul.mubr.f32.gmra.mrb[10].mxu1 %v1919_v43 }
 0x17d   : > { %v10904_v26 = vunpack.i.h.bf16 %v10902_v35  ;;  %v10903_v22 = vunpack.i.l.bf16 %v10902_v35  ;;  %v819_v35 = vmul.f32 %v787_v10, %v787_v10  ;;  %v2128_v28 = vand.u32 4294901760, %v11871_v11 }
 0x17e   : > { %v2135_v16 = vand.u32 4294901760, %v11876_v40 }
 0x17f   : > { %v1616_v38 = vsel %vm1602_vm2, %v8436_v21, %v10904_v26  ;;  %v1615_v43 = vsel %vm1602_vm2, %v8435_v4, %v10903_v22  ;;  %v2129_v17 = vsub.f32 %v11871_v11, %v2128_v28  ;;  %v914_v10 = vsel %vm14962_vm12, %v819_v35, 0.0  ;;  %vm1405_vm12 = vmand %vm1341_vm0, %vm1373_vm5 }
 0x180   : > { %v1680_v44 = vsel %vm14700_vm8, %v1616_v38, 0  ;;  %v1677_v36 = vsel %vm14700_vm8, %v1615_v43, 0  ;;  %v2136_v26 = vsub.f32 %v11876_v40, %v2135_v16  ;;  %v10187_v56 = vpack.c.bf16 %v2135_v16, %v2128_v28  ;;  %vm11934_vm8 = vmand %vm1339_vm9, %vm1371_vm11 }
 0x181   : > { %v11885_v58 = vand.u32 4294901760, %v1680_v44  ;;  %v11887_v33 = vand.u32 4294901760, %v1677_v36  ;;  %v2130_v4 = vand.u32 4294901760, %v2129_v17  ;;  %vm1342_vm0 = vcmp.gt.f32.partialorder %v11475_v12, %v11320_v19 }
 0x182   : > { %909 = vadd.xlane.f32.xlu0 %v908_v13  ;;  %v2137_v62 = vand.u32 4294901760, %v2136_v26  ;;  %10188 = vmatprep.subr.bf16.mxu0 %v10187_v56  ;;  %vm1374_vm5 = vcmp.lt.f32.partialorder %v11475_v12, %v11325_v6  ;;  %v8482_v8 = vsel %vm1405_vm12, 1.0, %v14956_v49  ;;  %vm1344_vm11 = vcmp.gt.f32.partialorder %v11486_v32, %v11320_v19  ;;  %vm11959_vm12 = vmand %vm1345_vm6, %vm1377_vm7 }
 0x183   : > { %v11893_v22 = vsub.f32 %v1677_v36, %v11887_v33  ;;  %v11896_v21 = vsub.f32 %v1680_v44, %v11885_v58  ;;  %10190 = vmatpush3.bf16.msra.mxu0 %v10187_v56  ;;  %v11017_v36 = vld [vmem:[%s11231_s23] sm:$0xff]  ;;  %vm1406_vm9 = vmand %vm1342_vm0, %vm1374_vm5 }
 0x184   : > { %v10163_v13 = vpack.c.bf16 %v2137_v62, %v2130_v4  ;;  %v786_v16 = vsub.f32 %v755_v60, %v11017_v36  ;;  %v8480_v60 = vsel %vm11934_vm8, 1.0, %v14956_v49  ;;  %v8483_v56 = vsel %vm1406_vm9, 1.0, %v14956_v49 }
 0x185   : > { %14963 = vst [vmem:[#allocation16_spill] sm:$0xff] %v11893_v22  ;;  %14964 = vst [vmem:[#allocation17_spill] sm:$0xff] %v11896_v21  ;;  %v1927_v38 = vand.u32 4294901760, %v11893_v22  ;;  %v1937_v43 = vand.u32 4294901760, %v11896_v21 }
 0x186   : > { %915 = vadd.xlane.f32.xlu0 %v914_v10  ;;  %10164 = vmatprep.subr.bf16.mxu1 %v10163_v13  ;;  %v818_v26 = vmul.f32 %v786_v16, %v786_v16 }
 0x187   : > { %9341 = vmatprep.mubr.f32.mxu0 %v1927_v38  ;;  %v1928_v28 = vsub.f32 %v11893_v22, %v1927_v38  ;;  %v1938_v35 = vsub.f32 %v11896_v21, %v1937_v43  ;;  %10166 = vmatpush3.bf16.msra.mxu1 %v10163_v13 }
 0x188   : > { %9342 = vmatmul.mubr.f32.gmra.mrb[12].mxu0 %v1937_v43  ;;  %v911_v34 = vsel %vm14965_vm13, %v818_v26, 0.0  ;;  %vm1338_vm13 = vcmp.gt.f32.partialorder %v11455_v53, %v11320_v19  ;;  %v8481_v53 = vsel %vm1404_vm3, 1.0, %v14956_v49  ;;  %v8484_v19 = vsel %vm1407_vm4, 1.0, %v14956_v49 }
 0x189   : > { %v1929_v44 = vand.u32 4294901760, %v1928_v28  ;;  %v1939_v17 = vand.u32 4294901760, %v1938_v35  ;;  %vm1402_vm1 = vmand %vm1338_vm13, %vm1370_vm14  ;;  %vm1376_vm13 = vcmp.lt.f32.partialorder %v11486_v32, %v11325_v6  ;;  %v10935_v12 = vpack.i.bf16 %v8482_v8, %v8481_v53  ;;  %v11968_v6 = vld [vmem:[%s14664_s6] ss:$0 sm:$0xff]  ;;  %v11975_v32 = vld [vmem:[%s14664_s6 + $0x1] ss:$0 sm:$0xff] }
 0x18a   : > { %vm1408_vm14 = vmand %vm1344_vm11, %vm1376_vm13  ;;  %vm935_vm15 = vcmp.gt.f32.partialorder %v11509_v57, %v11968_v6  ;;  %vm971_vm8 = vcmp.lt.f32.partialorder %v11509_v57, %v11975_v32  ;;  %vm936_vm10 = vcmp.gt.f32.partialorder %v11534_v1, %v11968_v6  ;;  %vm972_vm3 = vcmp.lt.f32.partialorder %v11534_v1, %v11975_v32  ;;  %v11021_v8 = vld [vmem:[%s14665_s7 + $0x18] sm:$0xff] }
 0x18b   : > { %9173 = vmatprep.mubr.f32.mxu1 %v1929_v44  ;;  %v10940_v62 = vpack.i.bf16 %v8484_v19, %v8483_v56  ;;  %vm1003_vm0 = vmand %vm935_vm15, %vm971_vm8  ;;  %v8485_v38 = vsel %vm1408_vm14, 1.0, %v14956_v49  ;;  %v8486_v57 = vsel %vm11959_vm12, 1.0, %v14956_v49  ;;  %vm937_vm6 = vcmp.gt.f32.partialorder %v11786_v9, %v11968_v6 }
 0x18c   : > { %9174 = vmatmul.mubr.f32.gmra.mrb[12].mxu1 %v1939_v17  ;;  %vm1004_vm5 = vmand %vm936_vm10, %vm972_vm3  ;;  %v10945_v1 = vpack.i.bf16 %v8486_v57, %v8485_v38  ;;  %v8437_v35 = vsel %vm1003_vm0, 1.0, %v14956_v49  ;;  %vm973_vm7 = vcmp.lt.f32.partialorder %v11786_v9, %v11975_v32  ;;  %vm938_vm9 = vcmp.gt.f32.partialorder %v11804_v3, %v11968_v6 }
 0x18d   : > { %v8438_v36 = vsel %vm1004_vm5, 1.0, %v14956_v49  ;;  %vm974_vm11 = vcmp.lt.f32.partialorder %v11804_v3, %v11975_v32  ;;  %vm1005_vm13 = vmand %vm937_vm6, %vm973_vm7  ;;  %vm939_vm8 = vcmp.gt.f32.partialorder %v11823_v39, %v11968_v6  ;;  %vm975_vm10 = vcmp.lt.f32.partialorder %v11823_v39, %v11975_v32 }
 0x18e   : > { %vm1006_vm12 = vmand %vm938_vm9, %vm974_vm11  ;;  %vm940_vm3 = vcmp.gt.f32.partialorder %v11837_v48, %v11968_v6  ;;  %vm976_vm0 = vcmp.lt.f32.partialorder %v11837_v48, %v11975_v32  ;;  %vm941_vm7 = vcmp.gt.f32.partialorder %v11857_v20, %v11968_v6  ;;  %vm977_vm9 = vcmp.lt.f32.partialorder %v11857_v20, %v11975_v32 }
 0x18f   : > { %vm1007_vm5 = vmand %vm939_vm8, %vm975_vm10 }
 0x192   : > { %912 = vadd.xlane.f32.xlu1 %v911_v34  ;;  %v8479_v34 = vsel %vm1402_vm1, 1.0, %v14956_v49  ;;  %vm14970_vm1 = vcmask 261120  }
 0x193   : > { %v10930_v4 = vpack.i.bf16 %v8480_v60, %v8479_v34  ;;  %vm14971_vm4 = vmmov %vm14970_vm1 }
 0x194   : > { %vm14976_vm14 = vmmov %vm14970_vm1 }
 0x195   : > { %vm14977_vm15 = vmmov %vm14970_vm1 }
 0x196   : > { %vm14980_vm6 = vmmov %vm14971_vm4 }
 0x197   : > { %vm14984_vm8 = vmmov %vm14971_vm4 }
 0x19c   : > { %10926 = vrot.lane.b32.xlu0 %v10925_v46, %s11047_s21  ;;  %v14972_v46 = vand.u32 4294901760, %v11340_v5 }
 0x19d   : > { %v11953_v42 = vpop.xlane.xlu0 %885 }
 0x19e   : > { %v12008_v53 = vsub.f32 %v11020_v23, %v14972_v46  ;;  %v8439_v23 = vsel %vm1005_vm13, 1.0, %v14956_v49  ;;  %v8440_v46 = vsel %vm1006_vm12, 1.0, %v14956_v49  ;;  %vm942_vm11 = vcmp.gt.f32.partialorder %v11953_v42, %v11968_v6  ;;  %vm1009_vm12 = vmand %vm941_vm7, %vm977_vm9 }
 0x19f   : > { %vm978_vm13 = vcmp.lt.f32.partialorder %v11953_v42, %v11975_v32 }
 0x1a0   : > { %10936 = vrot.lane.b32.xlu0 %v10935_v12, %s11047_s21  ;;  %v14973_v12 = vand.u32 4294901760, %v11345_v25  ;;  %v2142_v56 = vand.u32 4294901760, %v12008_v53 }
 0x1a1   : > { %v11984_v10 = vpop.xlane.xlu0 %891 }
 0x1a2   : > { %v12015_v34 = vsub.f32 %v11021_v8, %v14973_v12  ;;  %v2143_v25 = vsub.f32 %v12008_v53, %v2142_v56  ;;  %vm944_vm10 = vcmp.gt.f32.partialorder %v11984_v10, %v11968_v6 }
 0x1a3   : > { %10931 = vrot.lane.b32.xlu1 %v10930_v4, %s11047_s21 }
 0x1a4   : > { %10941 = vrot.lane.b32.xlu0 %v10940_v62, %s11047_s21  ;;  %v2149_v5 = vand.u32 4294901760, %v12015_v34 }
 0x1a5   : > { %v10907_v43 = vpop.permute.xlu0 %10906 }
 0x1a6   : > { %v10909_v13 = vunpack.i.h.bf16 %v10907_v43  ;;  %v10908_v28 = vunpack.i.l.bf16 %v10907_v43  ;;  %v2150_v38 = vsub.f32 %v12015_v34, %v2149_v5  ;;  %v10191_v57 = vpack.c.bf16 %v2149_v5, %v2142_v56 }
 0x1a8   : > { %v1618_v16 = vsel %vm1602_vm2, %v8438_v36, %v10909_v13  ;;  %v1617_v44 = vsel %vm1602_vm2, %v8437_v35, %v10908_v28  ;;  %10946 = vrot.lane.b32.xlu0 %v10945_v1, %s11047_s21  ;;  %v2144_v1 = vand.u32 4294901760, %v2143_v25  ;;  %v2151_v35 = vand.u32 4294901760, %v2150_v38  ;;  %10192 = vmatprep.subr.bf16.mxu0 %v10191_v57  ;;  %s14462_s21 = scalar_lea.vmem %s14668_s10, %s8497_s24 }
 0x1a9   : > { %v1686_v17 = vsel %vm14970_vm1, %v1618_v16, 0  ;;  %v1683_v26 = vsel %vm14971_vm4, %v1617_v44, 0  ;;  %10194 = vmatpush3.bf16.msra.mxu0 %v10191_v57  ;;  %vm1008_vm1 = vmand %vm940_vm3, %vm976_vm0  ;;  %vm980_vm3 = vcmp.lt.f32.partialorder %v11984_v10, %v11975_v32 }
 0x1aa   : > { %v11999_v14 = vand.u32 4294901760, %v1686_v17  ;;  %v12001_v37 = vand.u32 4294901760, %v1683_v26  ;;  %v10167_v44 = vpack.c.bf16 %v2151_v35, %v2144_v1  ;;  %10196 = vmatprep.subr.bf16.mxu0 %v11333_v24  ;;  %v12069_v1 = vpack.c.bf16 %v11876_v40, %v11871_v11 }
 0x1ac   : > { %v12018_v60 = vsub.f32 %v1683_v26, %v12001_v37  ;;  %v12021_v52 = vsub.f32 %v1686_v17, %v11999_v14  ;;  %10168 = vmatprep.subr.bf16.mxu1 %v10167_v44 }
 0x1ad   : > { %v12025_v19 = vpop.xlane.xlu1 %888  ;;  %10170 = vmatpush3.bf16.msra.mxu1 %v10167_v44 }
 0x1ae   : > { %14974 = vst [vmem:[#allocation18_spill] sm:$0xff] %v12018_v60  ;;  %14975 = vst [vmem:[#allocation19_spill] sm:$0xff] %v12021_v52  ;;  %v1947_v4 = vand.u32 4294901760, %v12018_v60  ;;  %v1957_v62 = vand.u32 4294901760, %v12021_v52  ;;  %10172 = vmatprep.subr.bf16.mxu1 %v12069_v1  ;;  %vm943_vm0 = vcmp.gt.f32.partialorder %v12025_v19, %v11968_v6 }
 0x1b0   : > { %9344 = vmatprep.mubr.f32.mxu0 %v1947_v4  ;;  %v1948_v43 = vsub.f32 %v12018_v60, %v1947_v4  ;;  %v1958_v13 = vsub.f32 %v12021_v52, %v1957_v62 }
 0x1b1   : > { %9345 = vmatmul.mubr.f32.gmra.mrb[14].mxu0 %v1957_v62  ;;  %v12041_v28 = vpop.xlane.xlu1 %894 }
 0x1b2   : > { %v1949_v36 = vand.u32 4294901760, %v1948_v43  ;;  %v1959_v16 = vand.u32 4294901760, %v1958_v13  ;;  %vm945_vm9 = vcmp.gt.f32.partialorder %v12041_v28, %v11968_v6 }
 0x1b4   : > { %9176 = vmatprep.mubr.f32.mxu1 %v1949_v36 }
 0x1b5   : > { %9177 = vmatmul.mubr.f32.gmra.mrb[14].mxu1 %v1959_v16  ;;  %v10912_v3 = vpop.permute.xlu1 %10911 }
 0x1b6   : > { %v10914_v17 = vunpack.i.h.bf16 %v10912_v3  ;;  %v10913_v26 = vunpack.i.l.bf16 %v10912_v3 }
 0x1b8   : > { %v1620_v8 = vsel %vm1602_vm2, %v8440_v46, %v10914_v17  ;;  %v1619_v9 = vsel %vm1602_vm2, %v8439_v23, %v10913_v26  ;;  %v8441_v17 = vsel %vm1007_vm5, 1.0, %v14956_v49  ;;  %v8442_v26 = vsel %vm1008_vm1, 1.0, %v14956_v49  ;;  %vm1012_vm1 = vmand %vm944_vm10, %vm980_vm3 }
 0x1b9   : > { %v1692_v12 = vsel %vm14976_vm14, %v1620_v8, 0  ;;  %v1689_v56 = vsel %vm14977_vm15, %v1619_v9, 0  ;;  %v12090_v46 = vpack.c.bf16 %v12015_v34, %v12008_v53  ;;  %vm1010_vm14 = vmand %vm942_vm11, %vm978_vm13  ;;  %vm979_vm5 = vcmp.lt.f32.partialorder %v12025_v19, %v11975_v32 }
 0x1ba   : > { %v12053_v5 = vand.u32 4294901760, %v1692_v12  ;;  %v12055_v4 = vand.u32 4294901760, %v1689_v56  ;;  %vm14983_vm15 = vmmov %vm14971_vm4  ;;  %vm981_vm11 = vcmp.lt.f32.partialorder %v12041_v28, %v11975_v32 }
 0x1bc   : > { %v12058_v62 = vsub.f32 %v1689_v56, %v12055_v4  ;;  %v12061_v25 = vsub.f32 %v1692_v12, %v12053_v5 }
 0x1be   : > { %14978 = vst [vmem:[#allocation20_spill] sm:$0xff] %v12058_v62  ;;  %14979 = vst [vmem:[#allocation21_spill] sm:$0xff] %v12061_v25  ;;  %v1967_v38 = vand.u32 4294901760, %v12058_v62  ;;  %v1977_v57 = vand.u32 4294901760, %v12061_v25 }
 0x1c0   : > { %9347 = vmatprep.mubr.f32.mxu0 %v1967_v38  ;;  %v1968_v43 = vsub.f32 %v12058_v62, %v1967_v38  ;;  %v1978_v13 = vsub.f32 %v12061_v25, %v1977_v57 }
 0x1c1   : > { %9348 = vmatmul.mubr.f32.gmra.mrb[16].mxu0 %v1977_v57 }
 0x1c2   : > { %v1969_v35 = vand.u32 4294901760, %v1968_v43  ;;  %v1979_v36 = vand.u32 4294901760, %v1978_v13 }
 0x1c4   : > { %9179 = vmatprep.mubr.f32.mxu1 %v1969_v35 }
 0x1c5   : > { %9180 = vmatmul.mubr.f32.gmra.mrb[16].mxu1 %v1979_v36 }
 0x1d6   : > { %v12072_v16 = vpop.xlane.xlu0 %897 }
 0x1d7   : > { %vm946_vm13 = vcmp.gt.f32.partialorder %v12072_v16, %v11968_v6 }
 0x1da   : > { %v12082_v11 = vpop.xlane.xlu0 %903 }
 0x1de   : > { %v10917_v40 = vpop.permute.xlu0 %10916 }
 0x1df   : > { %v10919_v44 = vunpack.i.h.bf16 %v10917_v40  ;;  %v10918_v3 = vunpack.i.l.bf16 %v10917_v40 }
 0x1e1   : > { %v1622_v23 = vsel %vm1602_vm2, %v8442_v26, %v10919_v44  ;;  %v1621_v39 = vsel %vm1602_vm2, %v8441_v17, %v10918_v3  ;;  %v8443_v17 = vsel %vm1009_vm12, 1.0, %v14956_v49  ;;  %v8444_v26 = vsel %vm1010_vm14, 1.0, %v14956_v49 }
 0x1e2   : > { %v1698_v48 = vsel %vm14971_vm4, %v1622_v23, 0  ;;  %v1695_v8 = vsel %vm14980_vm6, %v1621_v39, 0  ;;  %vm1011_vm4 = vmand %vm943_vm0, %vm979_vm5  ;;  %vm982_vm12 = vcmp.lt.f32.partialorder %v12072_v16, %v11975_v32  ;;  %vm948_vm14 = vcmp.gt.f32.partialorder %v12082_v11, %v11968_v6 }
 0x1e3   : > { %v12094_v9 = vand.u32 4294901760, %v1698_v48  ;;  %v12096_v12 = vand.u32 4294901760, %v1695_v8  ;;  %vm12172_vm0 = vmand %vm945_vm9, %vm981_vm11 }
 0x1e5   : > { %v12099_v56 = vsub.f32 %v1695_v8, %v12096_v12  ;;  %v12102_v38 = vsub.f32 %v1698_v48, %v12094_v9 }
 0x1e6   : > { %v901_v57 = vpop.xlane.xlu1 %900 }
 0x1e7   : > { %14981 = vst [vmem:[#allocation22_spill] sm:$0xff] %v12099_v56  ;;  %14982 = vst [vmem:[#allocation23_spill] sm:$0xff] %v12102_v38  ;;  %v1987_v43 = vand.u32 4294901760, %v12099_v56  ;;  %v1997_v53 = vand.u32 4294901760, %v12102_v38  ;;  %vm947_vm6 = vcmp.gt.f32.partialorder %v901_v57, %v11968_v6  ;;  %vm983_vm7 = vcmp.lt.f32.partialorder %v901_v57, %v11975_v32 }
 0x1e9   : > { %9350 = vmatprep.mubr.f32.mxu0 %v1987_v43  ;;  %v1988_v34 = vsub.f32 %v12099_v56, %v1987_v43  ;;  %v1998_v13 = vsub.f32 %v12102_v38, %v1997_v53 }
 0x1ea   : > { %9351 = vmatmul.mubr.f32.gmra.mrb[18].mxu0 %v1997_v53  ;;  %v12116_v35 = vpop.xlane.xlu1 %906 }
 0x1eb   : > { %v1989_v36 = vand.u32 4294901760, %v1988_v34  ;;  %v1999_v40 = vand.u32 4294901760, %v1998_v13  ;;  %vm949_vm10 = vcmp.gt.f32.partialorder %v12116_v35, %v11968_v6  ;;  %vm985_vm3 = vcmp.lt.f32.partialorder %v12116_v35, %v11975_v32 }
 0x1ec   : > { %vm1017_vm9 = vmand %vm949_vm10, %vm985_vm3 }
 0x1ed   : > { %9182 = vmatprep.mubr.f32.mxu1 %v1989_v36 }
 0x1ee   : > { %9183 = vmatmul.mubr.f32.gmra.mrb[18].mxu1 %v1999_v40  ;;  %v10922_v20 = vpop.permute.xlu1 %10921 }
 0x1ef   : > { %v10924_v44 = vunpack.i.h.bf16 %v10922_v20  ;;  %v10923_v3 = vunpack.i.l.bf16 %v10922_v20 }
 0x1f1   : > { %v1623_v23 = vsel %vm1602_vm2, %v8443_v17, %v10923_v3  ;;  %v1624_v42 = vsel %vm1602_vm2, %v8444_v26, %v10924_v44 }
 0x1f2   : > { %v1701_v39 = vsel %vm14983_vm15, %v1623_v23, 0  ;;  %v1704_v48 = vsel %vm14984_vm8, %v1624_v42, 0  ;;  %v8446_v23 = vsel %vm1012_vm1, 1.0, %v14956_v49  ;;  %v8445_v42 = vsel %vm1011_vm4, 1.0, %v14956_v49  ;;  %vm12162_vm8 = vmand %vm947_vm6, %vm983_vm7 }
 0x1f3   : > { %v12124_v8 = vand.u32 4294901760, %v1701_v39  ;;  %v12126_v43 = vand.u32 4294901760, %v1704_v48  ;;  %vm984_vm15 = vcmp.lt.f32.partialorder %v12082_v11, %v11975_v32  ;;  %vm14991_vm4 = vcmask 261120  }
 0x1f4   : > { %vm14992_vm6 = vmmov %vm14991_vm4 }
 0x1f5   : > { %v12129_v53 = vsub.f32 %v1701_v39, %v12124_v8  ;;  %v12132_v34 = vsub.f32 %v1704_v48, %v12126_v43  ;;  %vm1016_vm7 = vmand %vm948_vm14, %vm984_vm15 }
 0x1f6   : > { %vm12201_vm15 = vmand %vm946_vm13, %vm982_vm12  ;;  %v8450_v57 = vsel %vm1016_vm7, 1.0, %v14956_v49 }
 0x1f7   : > { %14985 = vst [vmem:[#allocation24_spill] sm:$0xff] %v12129_v53  ;;  %14986 = vst [vmem:[#allocation25_spill] sm:$0xff] %v12132_v34  ;;  %v2007_v13 = vand.u32 4294901760, %v12129_v53  ;;  %v2017_v36 = vand.u32 4294901760, %v12132_v34 }
 0x1f8   : > { %vm14997_vm12 = vmmov %vm14991_vm4 }
 0x1f9   : > { %9353 = vmatprep.mubr.f32.mxu0 %v2007_v13  ;;  %v2008_v40 = vsub.f32 %v12129_v53, %v2007_v13  ;;  %v2018_v20 = vsub.f32 %v12132_v34, %v2017_v36 }
 0x1fa   : > { %9354 = vmatmul.mubr.f32.gmra.mrb[20].mxu0 %v2017_v36 }
 0x1fb   : > { %v2009_v44 = vand.u32 4294901760, %v2008_v40  ;;  %v2019_v3 = vand.u32 4294901760, %v2018_v20 }
 0x1fd   : > { %9185 = vmatprep.mubr.f32.mxu1 %v2009_v44 }
 0x1fe   : > { %9186 = vmatmul.mubr.f32.gmra.mrb[20].mxu1 %v2019_v3 }
 0x20f   : > { %v910_v17 = vpop.xlane.xlu0 %909 }
 0x210   : > { %vm950_vm5 = vcmp.gt.f32.partialorder %v910_v17, %v11968_v6  ;;  %vm986_vm1 = vcmp.lt.f32.partialorder %v910_v17, %v11975_v32 }
 0x211   : > { %vm1018_vm13 = vmand %vm950_vm5, %vm986_vm1 }
 0x212   : > { %vm14998_vm5 = vmmov %vm14991_vm4 }
 0x213   : > { %v916_v26 = vpop.xlane.xlu0 %915  ;;  %vm14999_vm1 = vmmov %vm14991_vm4 }
 0x214   : > { %vm952_vm11 = vcmp.gt.f32.partialorder %v916_v26, %v11968_v6  ;;  %vm988_vm14 = vcmp.lt.f32.partialorder %v916_v26, %v11975_v32  ;;  %v8447_v26 = vsel %vm12172_vm0, 1.0, %v14956_v49  ;;  %vm15002_vm7 = vmmov %vm14999_vm1 }
 0x217   : > { %v10927_v39 = vpop.permute.xlu0 %10926 }
 0x218   : > { %v10929_v10 = vunpack.i.h.bf16 %v10927_v39  ;;  %v10928_v19 = vunpack.i.l.bf16 %v10927_v39 }
 0x21a   : > { %v1626_v28 = vsel %vm1602_vm2, %v8446_v23, %v10929_v10  ;;  %v1625_v48 = vsel %vm1602_vm2, %v8445_v42, %v10928_v19  ;;  %v8449_v42 = vsel %vm12162_vm8, 1.0, %v14956_v49  ;;  %vm1020_vm8 = vmand %vm952_vm11, %vm988_vm14 }
 0x21b   : > { %v1710_v11 = vsel %vm14991_vm4, %v1626_v28, 0  ;;  %v1707_v36 = vsel %vm14992_vm6, %v1625_v48, 0  ;;  %v10937_v40 = vpop.permute.xlu0 %10936  ;;  %vm15000_vm4 = vmmov %vm14999_vm1 }
 0x21c   : > { %v12180_v20 = vand.u32 4294901760, %v1710_v11  ;;  %v12182_v44 = vand.u32 4294901760, %v1707_v36  ;;  %v10939_v3 = vunpack.i.h.bf16 %v10937_v40  ;;  %v10938_v23 = vunpack.i.l.bf16 %v10937_v40  ;;  %vm15001_vm6 = vmmov %vm14999_vm1 }
 0x21d   : > { %vm15040_vm11 = vmmov %vm14999_vm1 }
 0x21e   : > { %v1629_v10 = vsel %vm1602_vm2, %v8449_v42, %v10938_v23  ;;  %v12207_v19 = vsub.f32 %v1707_v36, %v12182_v44  ;;  %v12210_v35 = vsub.f32 %v1710_v11, %v12180_v20  ;;  %v8451_v36 = vsel %vm1017_vm9, 1.0, %v14956_v49  ;;  %vm15003_vm9 = vmmov %vm14999_vm1 }
 0x21f   : > { %v1719_v16 = vsel %vm14997_vm12, %v1629_v10, 0  ;;  %v10942_v28 = vpop.permute.xlu0 %10941  ;;  %v913_v48 = vpop.xlane.xlu1 %912  ;;  %v1630_v11 = vsel %vm1602_vm2, %v8450_v57, %v10939_v3  ;;  %v8448_v42 = vsel %vm12201_vm15, 1.0, %v14956_v49  ;;  %v8452_v10 = vsel %vm1018_vm13, 1.0, %v14956_v49  ;;  %vm15041_vm14 = vmmov %vm14999_vm1 }
 0x220   : > { %14995 = vst [vmem:[#allocation26_spill] sm:$0xff] %v12207_v19  ;;  %14996 = vst [vmem:[#allocation27_spill] sm:$0xff] %v12210_v35  ;;  %v10944_v40 = vunpack.i.h.bf16 %v10942_v28  ;;  %v10943_v23 = vunpack.i.l.bf16 %v10942_v28  ;;  %vm951_vm10 = vcmp.gt.f32.partialorder %v913_v48, %v11968_v6  ;;  %vm987_vm3 = vcmp.lt.f32.partialorder %v913_v48, %v11975_v32 }
 0x221   : > { %v2027_v13 = vand.u32 4294901760, %v12207_v19  ;;  %v2037_v17 = vand.u32 4294901760, %v12210_v35  ;;  %v12231_v34 = vand.u32 4294901760, %v1719_v16  ;;  %vm1019_vm0 = vmand %vm951_vm10, %vm987_vm3  ;;  %v8454_v57 = vsel %vm1020_vm8, 1.0, %v14956_v49 }
 0x222   : > { %v1631_v3 = vsel %vm1602_vm2, %v8451_v36, %v10943_v23  ;;  %v1722_v6 = vsel %vm14998_vm5, %v1630_v11, 0  ;;  %v1632_v39 = vsel %vm1602_vm2, %v8452_v10, %v10944_v40  ;;  %v8453_v38 = vsel %vm1019_vm0, 1.0, %v14956_v49  ;;  %vm15044_vm15 = vmmov %vm14999_vm1 }
 0x223   : > { %v1725_v32 = vsel %vm14999_vm1, %v1631_v3, 0  ;;  %9356 = vmatprep.mubr.f32.mxu0 %v2027_v13  ;;  %v10947_v28 = vpop.permute.xlu0 %10946  ;;  %v10932_v48 = vpop.permute.xlu1 %10931  ;;  %v2028_v53 = vsub.f32 %v12207_v19, %v2027_v13  ;;  %v2038_v52 = vsub.f32 %v12210_v35, %v2037_v17  ;;  %v12241_v11 = vand.u32 4294901760, %v1722_v6  ;;  %vm15045_vm13 = vmmov %vm14999_vm1 }
 0x224   : > { %v10949_v56 = vunpack.i.h.bf16 %v10947_v28  ;;  %v10948_v25 = vunpack.i.l.bf16 %v10947_v28  ;;  %9357 = vmatmul.mubr.f32.gmra.mrb[22].mxu0 %v2037_v17  ;;  %v10934_v36 = vunpack.i.h.bf16 %v10932_v48  ;;  %v10933_v23 = vunpack.i.l.bf16 %v10932_v48  ;;  %vm15048_vm12 = vmmov %vm14999_vm1 }
 0x225   : > { %v2029_v62 = vand.u32 4294901760, %v2028_v53  ;;  %v12244_v3 = vsub.f32 %v1719_v16, %v12231_v34  ;;  %v12246_v60 = vand.u32 4294901760, %v1725_v32  ;;  %v1728_v40 = vsel %vm15000_vm4, %v1632_v39, 0  ;;  %vm15049_vm8 = vmmov %vm14999_vm1 }
 0x226   : > { %v1633_v13 = vsel %vm1602_vm2, %v8453_v38, %v10948_v25  ;;  %v1627_v10 = vsel %vm1602_vm2, %v8447_v26, %v10933_v23  ;;  %v1628_v28 = vsel %vm1602_vm2, %v8448_v42, %v10934_v36  ;;  %v1634_v53 = vsel %vm1602_vm2, %v8454_v57, %v10949_v56  ;;  %vm15005_vm2 = vmmov %vm14999_vm1 }
 0x227   : > { %v1731_v49 = vsel %vm15001_vm6, %v1633_v13, 0  ;;  %9188 = vmatprep.mubr.f32.mxu1 %v2029_v62  ;;  %v1713_v17 = vsel %vm15002_vm7, %v1627_v10, 0  ;;  %v1716_v16 = vsel %vm15003_vm9, %v1628_v28, 0  ;;  %v2039_v25 = vand.u32 4294901760, %v2038_v52  ;;  %vm15052_vm10 = vmmov %vm14999_vm1 }
 0x228   : > { %v12256_v48 = vand.u32 4294901760, %v1713_v17  ;;  %v12258_v35 = vand.u32 4294901760, %v1716_v16  ;;  %v12261_v38 = vsub.f32 %v1722_v6, %v12241_v11  ;;  %v12263_v39 = vand.u32 4294901760, %v1728_v40  ;;  %vm15053_vm3 = vmmov %vm14999_vm1 }
 0x229   : > { %v12266_v26 = vsub.f32 %v1725_v32, %v12246_v60  ;;  %v12268_v62 = vand.u32 4294901760, %v1731_v49  ;;  %v1734_v56 = vsel %vm15005_vm2, %v1634_v53, 0  ;;  %9189 = vmatmul.mubr.f32.gmra.mrb[22].mxu1 %v2039_v25  ;;  %v2067_v52 = vand.u32 4294901760, %v12244_v3  ;;  %vm15056_vm0 = vmmov %vm14999_vm1 }
 0x22a   : > { %v12272_v42 = vsub.f32 %v1713_v17, %v12256_v48  ;;  %v12275_v57 = vsub.f32 %v1716_v16, %v12258_v35  ;;  %v12281_v32 = vsub.f32 %v1728_v40, %v12263_v39  ;;  %v12283_v23 = vand.u32 4294901760, %v1734_v56  ;;  %vm15057_vm5 = vmmov %vm15056_vm0 }
 0x22b   : > { %15004 = vst [vmem:[#allocation28_spill] sm:$0xff] %v12266_v26  ;;  %v12286_v13 = vsub.f32 %v1731_v49, %v12268_v62  ;;  %v2077_v10 = vand.u32 4294901760, %v12261_v38  ;;  %v2068_v17 = vsub.f32 %v12244_v3, %v2067_v52  ;;  %v2087_v16 = vand.u32 4294901760, %v12266_v26  ;;  %vm15060_vm1 = vmmov %vm15056_vm0 }
 0x22c   : > { %15006 = vst [vmem:[#allocation29_spill] sm:$0xff] %v12275_v57  ;;  %v2047_v6 = vand.u32 4294901760, %v12272_v42  ;;  %v2057_v36 = vand.u32 4294901760, %v12275_v57  ;;  %v12294_v19 = vsub.f32 %v1734_v56, %v12283_v23  ;;  %v2097_v21 = vand.u32 4294901760, %v12281_v32  ;;  %vm15061_vm4 = vmmov %vm15056_vm0 }
 0x22d   : > { %v2078_v49 = vsub.f32 %v12261_v38, %v2077_v10  ;;  %v2069_v22 = vand.u32 4294901760, %v2068_v17  ;;  %vm15064_vm6 = vmmov %vm15056_vm0 }
 0x22e   : > { %9359 = vmatprep.mubr.f32.mxu0 %v2047_v6  ;;  %v2048_v28 = vsub.f32 %v12272_v42, %v2047_v6  ;;  %v2058_v53 = vsub.f32 %v12275_v57, %v2057_v36  ;;  %v2088_v6 = vsub.f32 %v12266_v26, %v2087_v16  ;;  %v2107_v57 = vand.u32 4294901760, %v12286_v13  ;;  %vm15065_vm7 = vmmov %vm15056_vm0 }
 0x22f   : > { %9360 = vmatmul.mubr.f32.gmra.mrb[24].mxu0 %v2057_v36  ;;  %v2098_v36 = vsub.f32 %v12281_v32, %v2097_v21  ;;  %v2117_v56 = vand.u32 4294901760, %v12294_v19  ;;  %vm15068_vm9 = vmmov %vm15056_vm0 }
 0x230   : > { %9362 = vmatprep.mubr.f32.mxu0 %v2067_v52  ;;  %v2049_v40 = vand.u32 4294901760, %v2048_v28  ;;  %v2059_v25 = vand.u32 4294901760, %v2058_v53  ;;  %v2079_v52 = vand.u32 4294901760, %v2078_v49  ;;  %v2089_v28 = vand.u32 4294901760, %v2088_v6  ;;  %vm15069_vm2 = vmmov %vm15056_vm0 }
 0x231   : > { %v2108_v53 = vsub.f32 %v12286_v13, %v2107_v57  ;;  %v2099_v17 = vand.u32 4294901760, %v2098_v36  ;;  %v15010_v36 = vld [vmem:[#allocation13_spill] sm:$0xff] }
 0x232   : > { %9191 = vmatprep.mubr.f32.mxu1 %v2049_v40  ;;  %v2118_v40 = vsub.f32 %v12294_v19, %v2117_v56 }
 0x233   : > { %9192 = vmatmul.mubr.f32.gmra.mrb[24].mxu1 %v2059_v25  ;;  %9363 = vmatmul.mubr.f32.gmra.mrb[26].mxu0 %v2077_v10  ;;  %v2109_v26 = vand.u32 4294901760, %v2108_v53  ;;  %v12309_v10 = vld [vmem:[%s14666_s8] sm:$0xff]  ;;  %v15008_v25 = vld [vmem:[#allocation11_spill] sm:$0xff]  ;;  %v527_v53 = vld [vmem:[%s14660_s2 + $0x30] sm:$0xff] }
 0x234   : > { %9194 = vmatprep.mubr.f32.mxu1 %v2069_v22  ;;  %9365 = vmatprep.mubr.f32.mxu0 %v2087_v16  ;;  %v2119_v22 = vand.u32 4294901760, %v2118_v40 }
 0x237   : > { %9195 = vmatmul.mubr.f32.gmra.mrb[26].mxu1 %v2079_v52  ;;  %9366 = vmatmul.mubr.f32.gmra.mrb[28].mxu0 %v2097_v21  ;;  %v12314_v21 = vld [vmem:[%s14666_s8 + $0x8] sm:$0xff] }
 0x238   : > { %9197 = vmatprep.mubr.f32.mxu1 %v2089_v28  ;;  %9368 = vmatprep.mubr.f32.mxu0 %v2107_v57  ;;  %v3724_v57 = vand.u32 4294901760, %v12309_v10  ;;  %v3727_v16 = vand.u32 4294901760, %v12314_v21 }
 0x23b   : > { %9198 = vmatmul.mubr.f32.gmra.mrb[28].mxu1 %v2099_v17  ;;  %9369 = vmatmul.mubr.f32.gmra.mrb[30].mxu0 %v2117_v56  ;;  %v12541_v56 = vld [vmem:[%s482_s30 + $0x8] sm:$0xff]  ;;  %v15034_v17 = vld [vmem:[#allocation6_spill] sm:$0xff] }
 0x23c   : > { %9200 = vmatprep.mubr.f32.mxu1 %v2109_v26  ;;  %9379 = vmatprep.mubr.f32.mxu0 %v11676_v27  ;;  %v15007_v26 = vld [vmem:[#allocation10_spill] sm:$0xff] }
 0x23f   : > { %9201 = vmatmul.mubr.f32.gmra.mrb[30].mxu1 %v2119_v22  ;;  %9380 = vmatmul.mubr.f32.vlgmr.msra.gmra.mrb[0].mxu0 %v11674_v18  ;;  %v15035_v22 = vld [vmem:[#allocation7_spill] sm:$0xff] }
 0x240   : > { %9211 = vmatprep.mubr.f32.mxu1 %v11676_v27  ;;  %9382 = vmatprep.mubr.f32.mxu0 %v11661_v30 }
 0x241   : > { %10198 = vmatpush3.bf16.msra.mxu0 %v11333_v24  ;;  %v12333_v24 = vpack.c.bf16 %v3727_v16, %v3724_v57 }
 0x242   : > { %10200 = vmatprep.subr.bf16.mxu0 %v15007_v26 }
 0x243   : > { %9212 = vmatmul.mubr.f32.vlgmr.msra.gmra.mrb[0].mxu1 %v11674_v18  ;;  %9383 = vmatmul.mubr.f32.gmra.mrb[2].mxu0 %v15008_v25 }
 0x244   : > { %10174 = vmatpush3.bf16.msra.mxu1 %v12069_v1  ;;  %9214 = vmatprep.mubr.f32.mxu1 %v11661_v30  ;;  %v12394_v1 = vld [vmem:[%s14666_s8 + $0x10] sm:$0xff] }
 0x245   : > { %9385 = vmatprep.mubr.f32.mxu0 %v11702_v45  ;;  %10176 = vmatprep.subr.bf16.mxu1 %v12090_v46  ;;  %v3730_v49 = vand.u32 4294901760, %v12394_v1 }
 0x246   : > { %10202 = vmatpush3.bf16.msra.mxu0 %v15007_v26 }
 0x247   : > { %9215 = vmatmul.mubr.f32.gmra.mrb[2].mxu1 %v15008_v25  ;;  %9386 = vmatmul.mubr.f32.gmra.mrb[4].mxu0 %v11700_v2 }
 0x248   : > { %9217 = vmatprep.mubr.f32.mxu1 %v11702_v45  ;;  %9388 = vmatprep.mubr.f32.mxu0 %v11716_v31 }
 0x249   : > { %10178 = vmatpush3.bf16.msra.mxu1 %v12090_v46  ;;  %v12399_v46 = vld [vmem:[%s14666_s8 + $0x18] sm:$0xff] }
 0x24a   : > { %10204 = vmatprep.subr.bf16.mxu1 %v12333_v24  ;;  %v3733_v6 = vand.u32 4294901760, %v12399_v46 }
 0x24b   : > { %9218 = vmatmul.mubr.f32.gmra.mrb[4].mxu1 %v11700_v2  ;;  %9389 = vmatmul.mubr.f32.gmra.mrb[6].mxu0 %v11714_v41 }
 0x24c   : > { %9220 = vmatprep.mubr.f32.mxu1 %v11716_v31  ;;  %9391 = vmatprep.mubr.f32.mxu0 %v11808_v61  ;;  %v12413_v52 = vpack.c.bf16 %v3733_v6, %v3730_v49 }
 0x24e   : > { %15009 = vst [vmem:[#allocation10_spill] sm:$0xff] %v12413_v52 }
 0x24f   : > { %9221 = vmatmul.mubr.f32.gmra.mrb[6].mxu1 %v11714_v41  ;;  %9392 = vmatmul.mubr.f32.gmra.mrb[8].mxu0 %v11806_v63 }
 0x250   : > { %9223 = vmatprep.mubr.f32.mxu1 %v11808_v61  ;;  %9394 = vmatprep.mubr.f32.mxu0 %v11827_v50 }
 0x253   : > { %9224 = vmatmul.mubr.f32.gmra.mrb[8].mxu1 %v11806_v63  ;;  %9395 = vmatmul.mubr.f32.gmra.mrb[10].mxu0 %v11825_v54 }
 0x254   : > { %9226 = vmatprep.mubr.f32.mxu1 %v11827_v50  ;;  %9397 = vmatprep.mubr.f32.mxu0 %v11887_v33 }
 0x257   : > { %9227 = vmatmul.mubr.f32.gmra.mrb[10].mxu1 %v11825_v54  ;;  %9398 = vmatmul.mubr.f32.gmra.mrb[12].mxu0 %v11885_v58 }
 0x258   : > { %9229 = vmatprep.mubr.f32.mxu1 %v11887_v33  ;;  %9400 = vmatprep.mubr.f32.mxu0 %v12001_v37 }
 0x25b   : > { %9230 = vmatmul.mubr.f32.gmra.mrb[12].mxu1 %v11885_v58  ;;  %9401 = vmatmul.mubr.f32.gmra.mrb[14].mxu0 %v11999_v14 }
 0x25c   : > { %9232 = vmatprep.mubr.f32.mxu1 %v12001_v37  ;;  %9403 = vmatprep.mubr.f32.mxu0 %v12055_v4 }
 0x25f   : > { %9233 = vmatmul.mubr.f32.gmra.mrb[14].mxu1 %v11999_v14  ;;  %9404 = vmatmul.mubr.f32.gmra.mrb[16].mxu0 %v12053_v5 }
 0x260   : > { %9235 = vmatprep.mubr.f32.mxu1 %v12055_v4  ;;  %9406 = vmatprep.mubr.f32.mxu0 %v12096_v12 }
 0x263   : > { %9236 = vmatmul.mubr.f32.gmra.mrb[16].mxu1 %v12053_v5  ;;  %9407 = vmatmul.mubr.f32.gmra.mrb[18].mxu0 %v12094_v9 }
 0x264   : > { %9238 = vmatprep.mubr.f32.mxu1 %v12096_v12  ;;  %9409 = vmatprep.mubr.f32.mxu0 %v12124_v8 }
 0x267   : > { %9239 = vmatmul.mubr.f32.gmra.mrb[18].mxu1 %v12094_v9  ;;  %9410 = vmatmul.mubr.f32.gmra.mrb[20].mxu0 %v12126_v43 }
 0x268   : > { %9241 = vmatprep.mubr.f32.mxu1 %v12124_v8  ;;  %9412 = vmatprep.mubr.f32.mxu0 %v12182_v44 }
 0x26b   : > { %9242 = vmatmul.mubr.f32.gmra.mrb[20].mxu1 %v12126_v43  ;;  %9413 = vmatmul.mubr.f32.gmra.mrb[22].mxu0 %v12180_v20 }
 0x26c   : > { %9244 = vmatprep.mubr.f32.mxu1 %v12182_v44  ;;  %9415 = vmatprep.mubr.f32.mxu0 %v12256_v48 }
 0x26f   : > { %9245 = vmatmul.mubr.f32.gmra.mrb[22].mxu1 %v12180_v20  ;;  %9416 = vmatmul.mubr.f32.gmra.mrb[24].mxu0 %v12258_v35 }
 0x270   : > { %9247 = vmatprep.mubr.f32.mxu1 %v12256_v48  ;;  %9418 = vmatprep.mubr.f32.mxu0 %v12231_v34 }
 0x273   : > { %9248 = vmatmul.mubr.f32.gmra.mrb[24].mxu1 %v12258_v35  ;;  %9419 = vmatmul.mubr.f32.gmra.mrb[26].mxu0 %v12241_v11 }
 0x274   : > { %9250 = vmatprep.mubr.f32.mxu1 %v12231_v34  ;;  %9421 = vmatprep.mubr.f32.mxu0 %v12246_v60 }
 0x277   : > { %9251 = vmatmul.mubr.f32.gmra.mrb[26].mxu1 %v12241_v11  ;;  %9422 = vmatmul.mubr.f32.gmra.mrb[28].mxu0 %v12263_v39 }
 0x278   : > { %9253 = vmatprep.mubr.f32.mxu1 %v12246_v60  ;;  %9424 = vmatprep.mubr.f32.mxu0 %v12268_v62 }
 0x27b   : > { %9254 = vmatmul.mubr.f32.gmra.mrb[28].mxu1 %v12263_v39  ;;  %9425 = vmatmul.mubr.f32.gmra.mrb[30].mxu0 %v12283_v23 }
 0x27c   : > { %9256 = vmatprep.mubr.f32.mxu1 %v12268_v62  ;;  %9435 = vmatprep.mubr.f32.mxu0 %v11676_v27  ;;  %v15011_v27 = vld [vmem:[#allocation12_spill] sm:$0xff] }
 0x27f   : > { %9257 = vmatmul.mubr.f32.gmra.mrb[30].mxu1 %v12283_v23  ;;  %9436 = vmatmul.mubr.f32.vlgmr.msra.gmra.mrb[0].mxu0 %v11674_v18  ;;  %v15014_v18 = vld [vmem:[#allocation16_spill] sm:$0xff] }
 0x280   : > { %9267 = vmatprep.mubr.f32.mxu1 %v11693_v7  ;;  %9438 = vmatprep.mubr.f32.mxu0 %v11661_v30  ;;  %v15013_v7 = vld [vmem:[#allocation15_spill] sm:$0xff] }
 0x281   : > { %v15017_v30 = vld [vmem:[#allocation19_spill] sm:$0xff] }
 0x283   : > { %9268 = vmatmul.mubr.f32.vlgmr.msra.gmra.mrb[0].mxu1 %v15010_v36  ;;  %9439 = vmatmul.mubr.f32.gmra.mrb[2].mxu0 %v15008_v25  ;;  %v532_v25 = vld [vmem:[%s14660_s2 + $0x58] sm:$0xff] }
 0x284   : > { %9270 = vmatprep.mubr.f32.mxu1 %v15011_v27  ;;  %9441 = vmatprep.mubr.f32.mxu0 %v11702_v45  ;;  %v15020_v45 = vld [vmem:[#allocation22_spill] sm:$0xff] }
 0x285   : > { %10206 = vmatpush3.bf16.msra.mxu1 %v12333_v24 }
 0x286   : > { %10208 = vmatprep.subr.bf16.mxu1 %v12413_v52 }
 0x287   : > { %9271 = vmatmul.mubr.f32.gmra.mrb[2].mxu1 %v11688_v47  ;;  %9442 = vmatmul.mubr.f32.gmra.mrb[4].mxu0 %v11700_v2  ;;  %v15012_v2 = vld [vmem:[#allocation14_spill] sm:$0xff]  ;;  %v15019_v47 = vld [vmem:[#allocation21_spill] sm:$0xff] }
 0x288   : > { %9273 = vmatprep.mubr.f32.mxu1 %v11720_v51  ;;  %9444 = vmatprep.mubr.f32.mxu0 %v11716_v31  ;;  %v15015_v31 = vld [vmem:[#allocation17_spill] sm:$0xff]  ;;  %v15021_v51 = vld [vmem:[#allocation23_spill] sm:$0xff] }
 0x289   : > { %10210 = vmatpush3.bf16.msra.mxu1 %v12413_v52 }
 0x28b   : > { %9274 = vmatmul.mubr.f32.gmra.mrb[4].mxu1 %v11725_v59  ;;  %9445 = vmatmul.mubr.f32.gmra.mrb[6].mxu0 %v11714_v41  ;;  %v15016_v41 = vld [vmem:[#allocation18_spill] sm:$0xff]  ;;  %v15022_v59 = vld [vmem:[#allocation24_spill] sm:$0xff] }
 0x28c   : > { %9276 = vmatprep.mubr.f32.mxu1 %v11730_v55  ;;  %9447 = vmatprep.mubr.f32.mxu0 %v11808_v61  ;;  %v15023_v55 = vld [vmem:[#allocation25_spill] sm:$0xff]  ;;  %v15025_v61 = vld [vmem:[#allocation27_spill] sm:$0xff] }
 0x28f   : > { %9277 = vmatmul.mubr.f32.gmra.mrb[6].mxu1 %v11733_v15  ;;  %9448 = vmatmul.mubr.f32.gmra.mrb[8].mxu0 %v11806_v63  ;;  %v15018_v15 = vld [vmem:[#allocation20_spill] sm:$0xff]  ;;  %v15024_v63 = vld [vmem:[#allocation26_spill] sm:$0xff] }
 0x290   : > { %9279 = vmatprep.mubr.f32.mxu1 %v11816_v0  ;;  %9450 = vmatprep.mubr.f32.mxu0 %v11827_v50  ;;  %v15026_v0 = vld [vmem:[#allocation29_spill] sm:$0xff]  ;;  %v12486_v50 = vsub.f32 %v12314_v21, %v3727_v16  ;;  %v529_v16 = vld [vmem:[%s14660_s2 + $0x40] sm:$0xff] }
 0x292   : > { %15029 = vst [vmem:[#allocation13_spill] sm:$0xff] %v12486_v50 }
 0x293   : > { %9280 = vmatmul.mubr.f32.gmra.mrb[8].mxu1 %v11819_v29  ;;  %9451 = vmatmul.mubr.f32.gmra.mrb[10].mxu0 %v11825_v54  ;;  %v15027_v29 = vld [vmem:[#allocation28_spill] sm:$0xff]  ;;  %v12481_v54 = vsub.f32 %v12309_v10, %v3724_v57  ;;  %v530_v57 = vld [vmem:[%s14660_s2 + $0x48] sm:$0xff] }
 0x294   : > { %9282 = vmatprep.mubr.f32.mxu1 %v15012_v2  ;;  %9453 = vmatprep.mubr.f32.mxu0 %v11887_v33 }
 0x295   : > { %15028 = vst [vmem:[#allocation11_spill] sm:$0xff] %v12481_v54  ;;  %v14718_v33 = vand.u32 4294901760, %v12481_v54 }
 0x297   : > { %9283 = vmatmul.mubr.f32.gmra.mrb[10].mxu1 %v15013_v7  ;;  %9454 = vmatmul.mubr.f32.gmra.mrb[12].mxu0 %v11885_v58  ;;  %v14717_v58 = vand.u32 4294901760, %v12486_v50  ;;  %v531_v7 = vld [vmem:[%s14660_s2 + $0x50] sm:$0xff] }
 0x298   : > { %9285 = vmatprep.mubr.f32.mxu1 %v15014_v18  ;;  %9456 = vmatprep.mubr.f32.mxu0 %v12001_v37 }
 0x299   : > { %v4123_v37 = vsub.f32 %v12486_v50, %v14717_v58 }
 0x29b   : > { %9286 = vmatmul.mubr.f32.gmra.mrb[12].mxu1 %v15015_v31  ;;  %9457 = vmatmul.mubr.f32.gmra.mrb[14].mxu0 %v11999_v14  ;;  %v4116_v14 = vsub.f32 %v12481_v54, %v14718_v33 }
 0x29c   : > { %9288 = vmatprep.mubr.f32.mxu1 %v15016_v41  ;;  %9459 = vmatprep.mubr.f32.mxu0 %v12055_v4  ;;  %v15036_v41 = vld [vmem:[#allocation8_spill] sm:$0xff] }
 0x29f   : > { %9289 = vmatmul.mubr.f32.gmra.mrb[14].mxu1 %v15017_v30  ;;  %9460 = vmatmul.mubr.f32.gmra.mrb[16].mxu0 %v12053_v5  ;;  %v4124_v5 = vand.u32 4294901760, %v4123_v37 }
 0x2a0   : > { %9291 = vmatprep.mubr.f32.mxu1 %v15018_v15  ;;  %9462 = vmatprep.mubr.f32.mxu0 %v12096_v12  ;;  %v553_v12 = vld [vmem:[%s12507_s25] sm:$0xff]  ;;  %v12565_v15 = vld [vmem:[%s12507_s25 + $0x8] sm:$0xff] }
 0x2a1   : > { %v574_v40 = vrot.slane %v553_v12, %v15034_v17  ;;  %v578_v10 = vrot.slane %v553_v12, %v15035_v22  ;;  %v582_v30 = vrot.slane %v553_v12, %v15036_v41 }
 0x2a3   : > { %9292 = vmatmul.mubr.f32.gmra.mrb[16].mxu1 %v15019_v47  ;;  %9463 = vmatmul.mubr.f32.gmra.mrb[18].mxu0 %v12094_v9  ;;  %v12501_v9 = vpack.c.bf16 %v12486_v50, %v12481_v54 }
 0x2a4   : > { %9294 = vmatprep.mubr.f32.mxu1 %v15020_v45  ;;  %9465 = vmatprep.mubr.f32.mxu0 %v12124_v8  ;;  %v15030_v8 = vld [vmem:[#allocation3_spill] sm:$0xff]  ;;  %v628_v45 = vadd.f32 %v574_v40, %v530_v57 }
 0x2a7   : > { %9295 = vmatmul.mubr.f32.gmra.mrb[18].mxu1 %v15021_v51  ;;  %9466 = vmatmul.mubr.f32.gmra.mrb[20].mxu0 %v12126_v43  ;;  %v558_v43 = vrot.slane %v553_v12, %v15030_v8  ;;  %v627_v51 = vadd.f32 %v574_v40, %v529_v16  ;;  %v539_v40 = vld [vmem:[%s14660_s2 + $0x90] sm:$0xff] }
 0x2a8   : > { %9297 = vmatprep.mubr.f32.mxu1 %v15022_v59  ;;  %9468 = vmatprep.mubr.f32.mxu0 %v12182_v44  ;;  %v15031_v44 = vld [vmem:[#allocation2_spill] sm:$0xff]  ;;  %v630_v59 = vadd.f32 %v578_v10, %v532_v25 }
 0x2a9   : > { %v541_v25 = vld [vmem:[%s14660_s2 + $0xa0] sm:$0xff] }
 0x2ab   : > { %9298 = vmatmul.mubr.f32.gmra.mrb[20].mxu1 %v15023_v55  ;;  %9469 = vmatmul.mubr.f32.gmra.mrb[22].mxu0 %v12180_v20  ;;  %v521_v20 = vld [vmem:[%s14660_s2] sm:$0xff]  ;;  %v534_v55 = vld [vmem:[%s14660_s2 + $0x68] sm:$0xff] }
 0x2ac   : > { %9300 = vmatprep.mubr.f32.mxu1 %v15024_v63  ;;  %9471 = vmatprep.mubr.f32.mxu0 %v12256_v48  ;;  %v619_v28 = vadd.f32 %v558_v43, %v521_v20  ;;  %v533_v63 = vld [vmem:[%s14660_s2 + $0x60] sm:$0xff]  ;;  %v590_v20 = vrot.slane %v12565_v15, %v15030_v8  ;;  %v594_v8 = vrot.slane %v12565_v15, %v15031_v44 }
 0x2af   : > { %9301 = vmatmul.mubr.f32.gmra.mrb[22].mxu1 %v15025_v61  ;;  %9472 = vmatmul.mubr.f32.gmra.mrb[24].mxu0 %v12258_v35  ;;  %v524_v35 = vld [vmem:[%s14660_s2 + $0x18] sm:$0xff] }
 0x2b0   : > { %9303 = vmatprep.mubr.f32.mxu1 %v12272_v42  ;;  %9474 = vmatprep.mubr.f32.mxu0 %v12231_v34  ;;  %v522_v34 = vld [vmem:[%s14660_s2 + $0x8] sm:$0xff] }
 0x2b1   : > { %v526_v42 = vld [vmem:[%s14660_s2 + $0x28] sm:$0xff] }
 0x2b3   : > { %9304 = vmatmul.mubr.f32.gmra.mrb[24].mxu1 %v15026_v0  ;;  %9475 = vmatmul.mubr.f32.gmra.mrb[26].mxu0 %v12241_v11  ;;  %v523_v11 = vld [vmem:[%s14660_s2 + $0x10] sm:$0xff] }
 0x2b4   : > { %9306 = vmatprep.mubr.f32.mxu1 %v12244_v3  ;;  %9477 = vmatprep.mubr.f32.mxu0 %v12246_v60  ;;  %v4117_v60 = vand.u32 4294901760, %v4116_v14  ;;  %v15032_v3 = vld [vmem:[#allocation4_spill] sm:$0xff]  ;;  %v15037_v14 = vld [vmem:[#allocation9_spill] sm:$0xff] }
 0x2b5   : > { %v566_v48 = vrot.slane %v553_v12, %v15032_v3  ;;  %v586_v37 = vrot.slane %v553_v12, %v15037_v14 }
 0x2b6   : > { %v12496_v4 = vpack.c.bf16 %v4124_v5, %v4117_v60 }
 0x2b7   : > { %9307 = vmatmul.mubr.f32.gmra.mrb[26].mxu1 %v12261_v38  ;;  %9478 = vmatmul.mubr.f32.gmra.mrb[28].mxu0 %v12263_v39  ;;  %v15033_v38 = vld [vmem:[#allocation5_spill] sm:$0xff]  ;;  %v624_v36 = vadd.f32 %v566_v48, %v526_v42 }
 0x2b8   : > { %9309 = vmatprep.mubr.f32.mxu1 %v15027_v29  ;;  %9480 = vmatprep.mubr.f32.mxu0 %v12268_v62  ;;  %v570_v39 = vrot.slane %v553_v12, %v15033_v38  ;;  %v620_v62 = vadd.f32 %v558_v43, %v522_v34  ;;  %v629_v29 = vadd.f32 %v578_v10, %v531_v7  ;;  %v536_v34 = vld [vmem:[%s14660_s2 + $0x78] sm:$0xff]  ;;  %v542_v10 = vld [vmem:[%s14660_s2 + $0xa8] sm:$0xff] }
 0x2b9   : > { %10212 = vmatprep.subr.bf16.mxu1 %v12496_v4  ;;  %v12584_v60 = vadd.f32 %v12541_v56, %v624_v36  ;;  %v602_v36 = vrot.slane %v12565_v15, %v15033_v38  ;;  %v637_v7 = vadd.f32 %v594_v8, %v539_v40  ;;  %v543_v38 = vld [vmem:[%s14660_s2 + $0xb0] sm:$0xff] }
 0x2ba   : > { %v12561_v18 = vadd.f32 %v12541_v56, %v620_v62  ;;  %v625_v31 = vadd.f32 %v570_v39, %v527_v53  ;;  %v12612_v62 = vadd.f32 %v12541_v56, %v628_v45  ;;  %v610_v45 = vrot.slane %v12565_v15, %v15035_v22  ;;  %v548_v22 = vld [vmem:[%s14660_s2 + $0xd8] sm:$0xff] }
 0x2bb   : > { %9310 = vmatmul.mubr.f32.gmra.mrb[28].mxu1 %v12281_v32  ;;  %9481 = vmatmul.mubr.f32.gmra.mrb[30].mxu0 %v12283_v23  ;;  %v525_v32 = vld [vmem:[%s14660_s2 + $0x20] sm:$0xff]  ;;  %v528_v23 = vld [vmem:[%s14660_s2 + $0x38] sm:$0xff] }
 0x2bc   : > { %9312 = vmatprep.mubr.f32.mxu1 %v12286_v13  ;;  %v12539_v13 = vld [vmem:[%s482_s30] sm:$0xff]  ;;  %v623_v27 = vadd.f32 %v566_v48, %v525_v32  ;;  %v626_v2 = vadd.f32 %v570_v39, %v528_v23  ;;  %v538_v48 = vld [vmem:[%s14660_s2 + $0x88] sm:$0xff]  ;;  %v12618_v32 = vadd.f32 %v12541_v56, %v630_v59  ;;  %v540_v23 = vld [vmem:[%s14660_s2 + $0x98] sm:$0xff] }
 0x2bd   : > { %v12568_v47 = vadd.f32 %v12539_v13, %v619_v28  ;;  %v537_v39 = vld [vmem:[%s14660_s2 + $0x80] sm:$0xff]  ;;  %v12615_v42 = vadd.f32 %v12539_v13, %v627_v51  ;;  %v598_v28 = vrot.slane %v12565_v15, %v15032_v3  ;;  %v12626_v53 = vadd.f32 %v12539_v13, %v629_v29 }
 0x2be   : > { %v12587_v5 = vadd.f32 %v12539_v13, %v623_v27  ;;  %v12590_v43 = vadd.f32 %v12541_v56, %v626_v2  ;;  %v12642_v3 = vsub.f32 %v12399_v46, %v3733_v6  ;;  %v636_v57 = vadd.f32 %v590_v20, %v538_v48  ;;  %v544_v46 = vld [vmem:[%s14660_s2 + $0xb8] sm:$0xff] }
 0x2bf   : > { %9313 = vmatmul.mubr.f32.gmra.mrb[30].mxu1 %v12294_v19  ;;  %v562_v19 = vrot.slane %v553_v12, %v15031_v44  ;;  %v632_v12 = vadd.f32 %v582_v30, %v534_v55  ;;  %v634_v44 = vadd.f32 %v586_v37, %v536_v34  ;;  %v635_v16 = vadd.f32 %v590_v20, %v537_v39 }
 0x2c0   : > { %15039 = vst [vmem:[#allocation14_spill] sm:$0xff] %v12642_v3  ;;  %v606_v6 = vrot.slane %v12565_v15, %v15034_v17  ;;  %v639_v55 = vadd.f32 %v598_v28, %v541_v25  ;;  %v12687_v20 = vadd.f32 %v12541_v56, %v636_v57  ;;  %v641_v48 = vadd.f32 %v602_v36, %v543_v38 }
 0x2c1   : > { %v622_v21 = vadd.f32 %v562_v19, %v524_v35  ;;  %v621_v26 = vadd.f32 %v562_v19, %v523_v11  ;;  %v12598_v19 = vadd.f32 %v12539_v13, %v625_v31  ;;  %v631_v35 = vadd.f32 %v582_v30, %v533_v63  ;;  %v535_v11 = vld [vmem:[%s14660_s2 + $0x70] sm:$0xff]  ;;  %v546_v30 = vld [vmem:[%s14660_s2 + $0xc8] sm:$0xff]  ;;  %v545_v63 = vld [vmem:[%s14660_s2 + $0xc0] sm:$0xff] }
 0x2c2   : > { %v12650_v27 = vadd.f32 %v12541_v56, %v632_v12  ;;  %v640_v31 = vadd.f32 %v598_v28, %v542_v10  ;;  %v12673_v17 = vadd.f32 %v12541_v56, %v634_v44  ;;  %v12690_v12 = vadd.f32 %v12539_v13, %v635_v16  ;;  %v550_v16 = vld [vmem:[%s14660_s2 + $0xe8] sm:$0xff] }
 0x2c3   : > { %v12577_v61 = vadd.f32 %v12541_v56, %v622_v21  ;;  %v12580_v0 = vadd.f32 %v12539_v13, %v621_v26  ;;  %v12637_v21 = vsub.f32 %v12394_v1, %v3730_v49  ;;  %v633_v26 = vadd.f32 %v586_v37, %v535_v11 }
 0x2c4   : > { %v12653_v1 = vadd.f32 %v12539_v13, %v631_v35  ;;  %v638_v49 = vadd.f32 %v594_v8, %v540_v23  ;;  %v14715_v37 = vand.u32 4294901760, %v12642_v3  ;;  %v642_v35 = vadd.f32 %v602_v36, %v544_v46  ;;  %v547_v8 = vld [vmem:[%s14660_s2 + $0xd0] sm:$0xff] }
 0x2c5   : > { %15038 = vst [vmem:[#allocation12_spill] sm:$0xff] %v12637_v21  ;;  %v12670_v51 = vpack.c.bf16 %v12642_v3, %v12637_v21  ;;  %v14716_v29 = vand.u32 4294901760, %v12637_v21  ;;  %v12684_v34 = vadd.f32 %v12539_v13, %v633_v26  ;;  %v644_v39 = vadd.f32 %v606_v6, %v546_v30 }
 0x2c6   : > { %v12693_v11 = vadd.f32 %v12541_v56, %v638_v49  ;;  %v614_v23 = vrot.slane %v12565_v15, %v15036_v41  ;;  %v12701_v40 = vadd.f32 %v12539_v13, %v637_v7  ;;  %v12704_v10 = vadd.f32 %v12541_v56, %v640_v31 }
 0x2c7   : > { %v643_v26 = vadd.f32 %v606_v6, %v545_v63  ;;  %v646_v57 = vadd.f32 %v610_v45, %v548_v22  ;;  %v12710_v46 = vadd.f32 %v12539_v13, %v639_v55  ;;  %v4130_v41 = vsub.f32 %v12637_v21, %v14716_v29  ;;  %v549_v6 = vld [vmem:[%s14660_s2 + $0xe0] sm:$0xff] }
 0x2c8   : > { %v4137_v7 = vsub.f32 %v12642_v3, %v14715_v37  ;;  %v645_v38 = vadd.f32 %v610_v45, %v547_v8  ;;  %v618_v30 = vrot.slane %v12565_v15, %v15037_v14  ;;  %v12728_v63 = vadd.f32 %v12539_v13, %v641_v48  ;;  %v551_v14 = vld [vmem:[%s14660_s2 + $0xf0] sm:$0xff] }
 0x2c9   : > { %v12731_v22 = vadd.f32 %v12541_v56, %v644_v39  ;;  %v12738_v8 = vadd.f32 %v12539_v13, %v643_v26  ;;  %v647_v15 = vadd.f32 %v614_v23, %v549_v6  ;;  %v4131_v37 = vand.u32 4294901760, %v4130_v41 }
 0x2ca   : > { %v4138_v29 = vand.u32 4294901760, %v4137_v7  ;;  %v12747_v58 = vadd.f32 %v12539_v13, %v645_v38  ;;  %v649_v33 = vadd.f32 %v618_v30, %v551_v14 }
 0x2cb   : > { %v12759_v38 = vadd.f32 %v12539_v13, %v647_v15 }
 0x352   : > { %v9437_v2 = vpop.f32.mrb[0].mxu0 }
 0x353   : > { %v3364_v59 = vpop.f32.mrb[1].mxu0 }
 0x356   : > { %v9269_v28 = vpop.f32.mrb[0].mxu1  ;;  %v9440_v44 = vpop.f32.mrb[2].mxu0 }
 0x357   : > { %v10299_v25 = vadd.f32 %v9437_v2, %v9269_v28  ;;  %v2478_v36 = vpop.f32.mrb[1].mxu1  ;;  %v3376_v49 = vpop.f32.mrb[3].mxu0  ;;  %v12722_v2 = vadd.f32 %v12541_v56, %v642_v35  ;;  %v648_v28 = vadd.f32 %v614_v23, %v550_v16 }
 0x358   : > { %v10300_v31 = vadd.f32 %v3364_v59, %v2478_v36  ;;  %v552_v59 = vld [vmem:[%s14660_s2 + $0xf8] sm:$0xff] }
 0x359   : > { %v3555_v55 = vadd.f32 %v10299_v25, %v12561_v18  ;;  %v12741_v18 = vadd.f32 %v12541_v56, %v646_v57  ;;  %v650_v26 = vadd.f32 %v618_v30, %v552_v59  ;;  %v12752_v6 = vadd.f32 %v12541_v56, %v648_v28 }
 0x35a   : > { %v3554_v35 = vadd.f32 %v10300_v31, %v12568_v47  ;;  %v9272_v36 = vpop.f32.mrb[2].mxu1  ;;  %v9443_v45 = vpop.f32.mrb[4].mxu0  ;;  %v12763_v28 = vpack.c.bf16 %v4138_v29, %v4131_v37 }
 0x35b   : > { %v3587_v48 = vmax.f32 %v3555_v55, 0.0  ;;  %v10301_v39 = vadd.f32 %v9440_v44, %v9272_v36  ;;  %v2492_v16 = vpop.f32.mrb[3].mxu1  ;;  %v3388_v25 = vpop.f32.mrb[5].mxu0 }
 0x35c   : > { %v3586_v47 = vmax.f32 %v3554_v35, 0.0  ;;  %v10302_v31 = vadd.f32 %v3376_v49, %v2492_v16 }
 0x35d   : > { %v3631_v57 = vsel %vm15040_vm11, %v3587_v48, 0  ;;  %v3557_v23 = vadd.f32 %v10301_v39, %v12577_v61  ;;  %vm15071_vm11 = vmmov %vm15056_vm0 }
 0x35e   : > { %v12754_v55 = vand.u32 4294901760, %v3631_v57  ;;  %v3628_v44 = vsel %vm15041_vm14, %v3586_v47, 0  ;;  %v3556_v41 = vadd.f32 %v10302_v31, %v12580_v0  ;;  %v9275_v7 = vpop.f32.mrb[4].mxu1  ;;  %v9446_v49 = vpop.f32.mrb[6].mxu0  ;;  %v12769_v0 = vadd.f32 %v12541_v56, %v650_v26  ;;  %vm15072_vm14 = vmmov %vm15056_vm0 }
 0x35f   : > { %v12761_v59 = vand.u32 4294901760, %v3628_v44  ;;  %v3589_v35 = vmax.f32 %v3557_v23, 0.0  ;;  %v10303_v36 = vadd.f32 %v9443_v45, %v9275_v7  ;;  %v2506_v61 = vpop.f32.mrb[5].mxu1  ;;  %v3400_v48 = vpop.f32.mrb[7].mxu0  ;;  %v12777_v45 = vadd.f32 %v12539_v13, %v649_v33 }
 0x360   : > { %v12766_v30 = vsub.f32 %v3631_v57, %v12754_v55  ;;  %v3588_v14 = vmax.f32 %v3556_v41, 0.0  ;;  %v10304_v39 = vadd.f32 %v3388_v25, %v2506_v61 }
 0x361   : > { %v12772_v16 = vsub.f32 %v3628_v44, %v12761_v59  ;;  %v3637_v15 = vsel %vm15044_vm15, %v3589_v35, 0  ;;  %v3559_v47 = vadd.f32 %v10303_v36, %v12584_v60  ;;  %vm15075_vm15 = vmmov %vm15056_vm0 }
 0x362   : > { %15042 = vst [vmem:[#allocation15_spill] sm:$0xff] %v12766_v30  ;;  %v14719_v29 = vand.u32 4294901760, %v12766_v30  ;;  %v12780_v37 = vand.u32 4294901760, %v3637_v15  ;;  %v3634_v31 = vsel %vm15045_vm13, %v3588_v14, 0  ;;  %v3558_v25 = vadd.f32 %v10304_v39, %v12587_v5  ;;  %v9278_v56 = vpop.f32.mrb[6].mxu1  ;;  %v9449_v26 = vpop.f32.mrb[8].mxu0  ;;  %vm15077_vm13 = vmmov %vm15056_vm0 }
 0x363   : > { %15043 = vst [vmem:[#allocation16_spill] sm:$0xff] %v12772_v16  ;;  %v12784_v57 = vand.u32 4294901760, %v3634_v31  ;;  %v3591_v23 = vmax.f32 %v3559_v47, 0.0  ;;  %v10305_v44 = vadd.f32 %v9446_v49, %v9278_v56  ;;  %v2520_v41 = vpop.f32.mrb[7].mxu1  ;;  %v3412_v7 = vpop.f32.mrb[9].mxu0  ;;  %v14721_v60 = vand.u32 4294901760, %v12772_v16 }
 0x364   : > { %v3805_v33 = vsub.f32 %v12766_v30, %v14719_v29  ;;  %v12791_v13 = vsub.f32 %v3637_v15, %v12780_v37  ;;  %v3590_v35 = vmax.f32 %v3558_v25, 0.0  ;;  %v10306_v36 = vadd.f32 %v3400_v48, %v2520_v41 }
 0x365   : > { %v12794_v5 = vsub.f32 %v3634_v31, %v12784_v57  ;;  %v3643_v61 = vsel %vm15048_vm12, %v3591_v23, 0  ;;  %v3561_v49 = vadd.f32 %v10305_v44, %v12590_v43  ;;  %v3795_v14 = vsub.f32 %v12772_v16, %v14721_v60  ;;  %vm15078_vm12 = vmmov %vm15056_vm0 }
 0x366   : > { %15046 = vst [vmem:[#allocation17_spill] sm:$0xff] %v12791_v13  ;;  %v3806_v39 = vand.u32 4294901760, %v3805_v33  ;;  %v12801_v47 = vand.u32 4294901760, %v3643_v61  ;;  %v3640_v56 = vsel %vm15049_vm8, %v3590_v35, 0  ;;  %v3560_v15 = vadd.f32 %v10306_v36, %v12598_v19  ;;  %v9281_v25 = vpop.f32.mrb[8].mxu1  ;;  %v9452_v48 = vpop.f32.mrb[10].mxu0  ;;  %vm15080_vm8 = vmmov %vm15056_vm0 }
 0x367   : > { %15047 = vst [vmem:[#allocation18_spill] sm:$0xff] %v12794_v5  ;;  %v12805_v41 = vand.u32 4294901760, %v3640_v56  ;;  %v3593_v31 = vmax.f32 %v3561_v49, 0.0  ;;  %v10307_v29 = vadd.f32 %v9449_v26, %v9281_v25  ;;  %v2534_v23 = vpop.f32.mrb[9].mxu1  ;;  %v3424_v3 = vpop.f32.mrb[11].mxu0  ;;  %v3796_v43 = vand.u32 4294901760, %v3795_v14 }
 0x368   : > { %v12808_v44 = vsub.f32 %v3643_v61, %v12801_v47  ;;  %v3592_v60 = vmax.f32 %v3560_v15, 0.0  ;;  %v10308_v33 = vadd.f32 %v3412_v7, %v2534_v23  ;;  %v14723_v21 = vand.u32 4294901760, %v12794_v5 }
 0x369   : > { %v12812_v35 = vsub.f32 %v3640_v56, %v12805_v41  ;;  %v3649_v19 = vsel %vm15052_vm10, %v3593_v31, 0  ;;  %v3563_v36 = vadd.f32 %v10307_v29, %v12612_v62  ;;  %9491 = vmatprep.mubr.f32.mxu1 %v3796_v43  ;;  %v14724_v26 = vand.u32 4294901760, %v12791_v13  ;;  %vm15082_vm10 = vmmov %vm15056_vm0 }
 0x36a   : > { %15050 = vst [vmem:[#allocation19_spill] sm:$0xff] %v12808_v44  ;;  %v12817_v49 = vand.u32 4294901760, %v3649_v19  ;;  %v3646_v14 = vsel %vm15053_vm3, %v3592_v60, 0  ;;  %v3562_v61 = vadd.f32 %v10308_v33, %v12615_v42  ;;  %v9284_v15 = vpop.f32.mrb[10].mxu1  ;;  %v9455_v7 = vpop.f32.mrb[12].mxu0  ;;  %9492 = vmatmul.mubr.f32.vlgmr.msra.gmra.mrb[32].mxu1 %v3806_v39  ;;  %v3815_v56 = vsub.f32 %v12794_v5, %v14723_v21  ;;  %vm15084_vm3 = vmmov %vm15056_vm0 }
 0x36b   : > { %15051 = vst [vmem:[#allocation20_spill] sm:$0xff] %v12812_v35  ;;  %v12824_v25 = vand.u32 4294901760, %v3646_v14  ;;  %v3595_v31 = vmax.f32 %v3563_v36, 0.0  ;;  %v10309_v62 = vadd.f32 %v9452_v48, %v9284_v15  ;;  %10214 = vmatpush3.bf16.msra.mxu1 %v12496_v4  ;;  %v2548_v29 = vpop.f32.mrb[11].mxu1  ;;  %v3436_v23 = vpop.f32.mrb[13].mxu0  ;;  %v3825_v60 = vsub.f32 %v12791_v13, %v14724_v26 }
 0x36c   : > { %v12831_v42 = vsub.f32 %v3649_v19, %v12817_v49  ;;  %v3594_v39 = vmax.f32 %v3562_v61, 0.0  ;;  %v10310_v43 = vadd.f32 %v3424_v3, %v2548_v29  ;;  %v3816_v33 = vand.u32 4294901760, %v3815_v56  ;;  %10216 = vmatprep.subr.bf16.mxu1 %v12763_v28 }
 0x36d   : > { %v12835_v21 = vsub.f32 %v3646_v14, %v12824_v25  ;;  %v3655_v48 = vsel %vm15056_vm0, %v3595_v31, 0  ;;  %v3565_v4 = vadd.f32 %v10309_v62, %v12618_v32  ;;  %v3826_v36 = vand.u32 4294901760, %v3825_v60 }
 0x36e   : > { %15054 = vst [vmem:[#allocation21_spill] sm:$0xff] %v12831_v42  ;;  %v12839_v15 = vand.u32 4294901760, %v3655_v48  ;;  %v3652_v26 = vsel %vm15057_vm5, %v3594_v39, 0  ;;  %v3564_v19 = vadd.f32 %v10310_v43, %v12626_v53  ;;  %9494 = vmatprep.mubr.f32.mxu1 %v3816_v33  ;;  %v9287_v61 = vpop.f32.mrb[12].mxu1  ;;  %v9458_v3 = vpop.f32.mrb[14].mxu0  ;;  %v14728_v56 = vand.u32 4294901760, %v12812_v35  ;;  %vm15087_vm5 = vmmov %vm15056_vm0 }
 0x36f   : > { %15055 = vst [vmem:[#allocation22_spill] sm:$0xff] %v12835_v21  ;;  %v12844_v29 = vand.u32 4294901760, %v3652_v26  ;;  %v3597_v14 = vmax.f32 %v3565_v4, 0.0  ;;  %v10311_v13 = vadd.f32 %v9455_v7, %v9287_v61  ;;  %9495 = vmatmul.mubr.f32.gmra.mrb[34].mxu1 %v3826_v36  ;;  %v2562_v31 = vpop.f32.mrb[13].mxu1  ;;  %v3448_v50 = vpop.f32.mrb[15].mxu0  ;;  %v14729_v32 = vand.u32 4294901760, %v12808_v44 }
 0x370   : > { %v12848_v62 = vsub.f32 %v3655_v48, %v12839_v15  ;;  %v3596_v60 = vmax.f32 %v3564_v19, 0.0  ;;  %v10312_v39 = vadd.f32 %v3436_v23, %v2562_v31  ;;  %v3835_v53 = vsub.f32 %v12812_v35, %v14728_v56  ;;  %10218 = vmatpush3.bf16.msra.mxu1 %v12763_v28 }
 0x371   : > { %v12855_v43 = vsub.f32 %v3652_v26, %v12844_v29  ;;  %v3661_v7 = vsel %vm15060_vm1, %v3597_v14, 0  ;;  %v3567_v33 = vadd.f32 %v10311_v13, %v12650_v27  ;;  %v3845_v48 = vsub.f32 %v12808_v44, %v14729_v32  ;;  %10220 = vmatprep.subr.bf16.mxu1 %v12501_v9  ;;  %vm15088_vm1 = vmmov %vm15056_vm0 }
 0x372   : > { %15058 = vst [vmem:[#allocation23_spill] sm:$0xff] %v12848_v62  ;;  %v12863_v23 = vand.u32 4294901760, %v3661_v7  ;;  %v3658_v4 = vsel %vm15061_vm4, %v3596_v60, 0  ;;  %v3566_v36 = vadd.f32 %v10312_v39, %v12653_v1  ;;  %v3836_v28 = vand.u32 4294901760, %v3835_v53  ;;  %v9290_v19 = vpop.f32.mrb[14].mxu1  ;;  %v9461_v26 = vpop.f32.mrb[16].mxu0  ;;  %vm15091_vm4 = vmmov %vm15056_vm0 }
 0x373   : > { %15059 = vst [vmem:[#allocation24_spill] sm:$0xff] %v12855_v43  ;;  %v12867_v61 = vand.u32 4294901760, %v3658_v4  ;;  %v3599_v14 = vmax.f32 %v3567_v33, 0.0  ;;  %v10313_v31 = vadd.f32 %v9458_v3, %v9290_v19  ;;  %v3846_v27 = vand.u32 4294901760, %v3845_v48  ;;  %v2576_v13 = vpop.f32.mrb[15].mxu1  ;;  %v3460_v56 = vpop.f32.mrb[17].mxu0 }
 0x374   : > { %v12870_v32 = vsub.f32 %v3661_v7, %v12863_v23  ;;  %v3598_v44 = vmax.f32 %v3566_v36, 0.0  ;;  %9497 = vmatprep.mubr.f32.mxu1 %v3836_v28  ;;  %v10314_v35 = vadd.f32 %v3448_v50, %v2576_v13  ;;  %v14734_v60 = vand.u32 4294901760, %v12835_v21 }
 0x375   : > { %v12874_v1 = vsub.f32 %v3658_v4, %v12867_v61  ;;  %v3667_v39 = vsel %vm15064_vm6, %v3599_v14, 0  ;;  %v3569_v53 = vadd.f32 %v10313_v31, %v12673_v17  ;;  %9498 = vmatmul.mubr.f32.gmra.mrb[36].mxu1 %v3846_v27  ;;  %v14737_v3 = vand.u32 4294901760, %v12831_v42  ;;  %vm15093_vm6 = vmmov %vm15056_vm0 }
 0x376   : > { %15062 = vst [vmem:[#allocation25_spill] sm:$0xff] %v12870_v32  ;;  %v12879_v33 = vand.u32 4294901760, %v3667_v39  ;;  %v3664_v7 = vsel %vm15065_vm7, %v3598_v44, 0  ;;  %v3568_v48 = vadd.f32 %v10314_v35, %v12684_v34  ;;  %v3855_v50 = vsub.f32 %v12835_v21, %v14734_v60  ;;  %v9293_v36 = vpop.f32.mrb[16].mxu1  ;;  %v9464_v4 = vpop.f32.mrb[18].mxu0  ;;  %vm15095_vm7 = vmmov %vm15056_vm0 }
 0x377   : > { %15063 = vst [vmem:[#allocation26_spill] sm:$0xff] %v12874_v1  ;;  %v12886_v28 = vand.u32 4294901760, %v3664_v7  ;;  %v3601_v19 = vmax.f32 %v3569_v53, 0.0  ;;  %v10315_v14 = vadd.f32 %v9461_v26, %v9293_v36  ;;  %v3865_v17 = vsub.f32 %v12831_v42, %v14737_v3  ;;  %v2590_v31 = vpop.f32.mrb[17].mxu1  ;;  %v3472_v27 = vpop.f32.mrb[19].mxu0 }
 0x378   : > { %v12892_v44 = vsub.f32 %v3667_v39, %v12879_v33  ;;  %v3600_v34 = vmax.f32 %v3568_v48, 0.0  ;;  %v3856_v35 = vand.u32 4294901760, %v3855_v50  ;;  %v10316_v13 = vadd.f32 %v3460_v56, %v2590_v31 }
 0x379   : > { %v12895_v60 = vsub.f32 %v3664_v7, %v12886_v28  ;;  %v3673_v21 = vsel %vm15068_vm9, %v3601_v19, 0  ;;  %v3571_v53 = vadd.f32 %v10315_v14, %v12687_v20  ;;  %v3866_v26 = vand.u32 4294901760, %v3865_v17  ;;  %vm15097_vm9 = vmmov %vm15056_vm0 }
 0x37a   : > { %15066 = vst [vmem:[#allocation27_spill] sm:$0xff] %v12892_v44  ;;  %v12899_v36 = vand.u32 4294901760, %v3673_v21  ;;  %v3670_v3 = vsel %vm15069_vm2, %v3600_v34, 0  ;;  %9500 = vmatprep.mubr.f32.mxu1 %v3856_v35  ;;  %v3570_v42 = vadd.f32 %v10316_v13, %v12690_v12  ;;  %v14741_v39 = vand.u32 4294901760, %v12855_v43  ;;  %v9296_v48 = vpop.f32.mrb[18].mxu1  ;;  %v9467_v50 = vpop.f32.mrb[20].mxu0  ;;  %vm15099_vm2 = vmmov %vm15056_vm0 }
 0x37b   : > { %15067 = vst [vmem:[#allocation29_spill] sm:$0xff] %v12895_v60  ;;  %v12904_v56 = vand.u32 4294901760, %v3670_v3  ;;  %v3603_v7 = vmax.f32 %v3571_v53, 0.0  ;;  %9501 = vmatmul.mubr.f32.gmra.mrb[38].mxu1 %v3866_v26  ;;  %v10317_v31 = vadd.f32 %v9464_v4, %v9296_v48  ;;  %v14746_v19 = vand.u32 4294901760, %v12848_v62  ;;  %v2604_v20 = vpop.f32.mrb[19].mxu1  ;;  %v3484_v14 = vpop.f32.mrb[21].mxu0 }
 0x37c   : > { %v12908_v17 = vsub.f32 %v3673_v21, %v12899_v36  ;;  %v3602_v34 = vmax.f32 %v3570_v42, 0.0  ;;  %v3875_v12 = vsub.f32 %v12855_v43, %v14741_v39  ;;  %v10318_v35 = vadd.f32 %v3472_v27, %v2604_v20 }
 0x37d   : > { %v12914_v13 = vsub.f32 %v3670_v3, %v12904_v56  ;;  %v3679_v53 = vsel %vm15071_vm11, %v3603_v7, 0  ;;  %v3573_v4 = vadd.f32 %v10317_v31, %v12693_v11  ;;  %v3885_v26 = vsub.f32 %v12848_v62, %v14746_v19  ;;  %vm15174_vm11 = vmmov %vm15056_vm0 }
 0x37e   : > { %15070 = vst [vmem:[#allocation28_spill] sm:$0xff] %v12908_v17  ;;  %v12921_v48 = vand.u32 4294901760, %v3679_v53  ;;  %v3676_v21 = vsel %vm15072_vm14, %v3602_v34, 0  ;;  %v3876_v42 = vand.u32 4294901760, %v3875_v12  ;;  %v3572_v54 = vadd.f32 %v10318_v35, %v12701_v40  ;;  %v9299_v39 = vpop.f32.mrb[20].mxu1  ;;  %v9470_v27 = vpop.f32.mrb[22].mxu0  ;;  %vm15175_vm14 = vmmov %vm15056_vm0 }
 0x37f   : > { %v12925_v20 = vand.u32 4294901760, %v3676_v21  ;;  %v3605_v3 = vmax.f32 %v3573_v4, 0.0  ;;  %v3886_v43 = vand.u32 4294901760, %v3885_v26  ;;  %v14749_v7 = vand.u32 4294901760, %v12874_v1  ;;  %v2618_v11 = vpop.f32.mrb[21].mxu1  ;;  %v3496_v31 = vpop.f32.mrb[23].mxu0 }
 0x380   : > { %v12929_v52 = vsub.f32 %v3679_v53, %v12921_v48  ;;  %9503 = vmatprep.mubr.f32.mxu1 %v3876_v42  ;;  %v3604_v19 = vmax.f32 %v3572_v54, 0.0  ;;  %v10319_v62 = vadd.f32 %v9467_v50, %v9299_v39  ;;  %v14754_v34 = vand.u32 4294901760, %v12870_v32 }
 0x381   : > { %v12933_v40 = vsub.f32 %v3676_v21, %v12925_v20  ;;  %v3685_v12 = vsel %vm15075_vm15, %v3605_v3, 0  ;;  %9504 = vmatmul.mubr.f32.gmra.mrb[40].mxu1 %v3886_v43  ;;  %v3895_v35 = vsub.f32 %v12874_v1, %v14749_v7  ;;  %v10320_v4 = vadd.f32 %v3484_v14, %v2618_v11  ;;  %vm15176_vm15 = vmmov %vm15056_vm0 }
 0x382   : > { %15073 = vst [vmem:[#allocation3_spill] sm:$0xff] %v12929_v52  ;;  %v12939_v26 = vand.u32 4294901760, %v3685_v12  ;;  %v3682_v53 = vsel %vm15077_vm13, %v3604_v19, 0  ;;  %v3575_v54 = vadd.f32 %v10319_v62, %v12704_v10  ;;  %v3905_v39 = vsub.f32 %v12870_v32, %v14754_v34  ;;  %v9302_v50 = vpop.f32.mrb[22].mxu1  ;;  %v9473_v21 = vpop.f32.mrb[24].mxu0  ;;  %vm15177_vm13 = vmmov %vm15056_vm0 }
 0x383   : > { %15074 = vst [vmem:[#allocation2_spill] sm:$0xff] %v12933_v40  ;;  %v12946_v42 = vand.u32 4294901760, %v3682_v53  ;;  %v3896_v43 = vand.u32 4294901760, %v3895_v35  ;;  %v3574_v3 = vadd.f32 %v10320_v4, %v12710_v46  ;;  %v14757_v7 = vand.u32 4294901760, %v12895_v60  ;;  %v2632_v14 = vpop.f32.mrb[23].mxu1  ;;  %v3508_v11 = vpop.f32.mrb[25].mxu0 }
 0x384   : > { %15076 = vst [vmem:[#allocation4_spill] sm:$0xff] %v12939_v26  ;;  %v12951_v1 = vsub.f32 %v3685_v12, %v12939_v26  ;;  %v3607_v19 = vmax.f32 %v3575_v54, 0.0  ;;  %v3906_v10 = vand.u32 4294901760, %v3905_v39  ;;  %v10321_v62 = vadd.f32 %v9470_v27, %v9302_v50 }
 0x385   : > { %v12954_v5 = vsub.f32 %v3682_v53, %v12946_v42  ;;  %9506 = vmatprep.mubr.f32.mxu1 %v3896_v43  ;;  %v3606_v34 = vmax.f32 %v3574_v3, 0.0  ;;  %v3915_v35 = vsub.f32 %v12895_v60, %v14757_v7  ;;  %v14760_v46 = vand.u32 4294901760, %v12892_v44 }
 0x386   : > { %v3691_v4 = vsel %vm15078_vm12, %v3607_v19, 0  ;;  %9507 = vmatmul.mubr.f32.gmra.mrb[42].mxu1 %v3906_v10  ;;  %v3577_v12 = vadd.f32 %v10321_v62, %v12722_v2  ;;  %v10322_v32 = vadd.f32 %v3496_v31, %v2632_v14  ;;  %v14767_v54 = vand.u32 4294901760, %v12914_v13  ;;  %v9305_v27 = vpop.f32.mrb[24].mxu1  ;;  %v9476_v39 = vpop.f32.mrb[26].mxu0  ;;  %vm15178_vm12 = vmmov %vm15056_vm0 }
 0x387   : > { %v12963_v53 = vand.u32 4294901760, %v3691_v4  ;;  %v3688_v50 = vsel %vm15080_vm8, %v3606_v34, 0  ;;  %v3916_v43 = vand.u32 4294901760, %v3915_v35  ;;  %v3925_v3 = vsub.f32 %v12892_v44, %v14760_v46  ;;  %v2646_v7 = vpop.f32.mrb[25].mxu1  ;;  %v3520_v60 = vpop.f32.mrb[27].mxu0  ;;  %vm15179_vm8 = vmmov %vm15056_vm0 }
 0x388   : > { %v12969_v19 = vand.u32 4294901760, %v3688_v50  ;;  %v3609_v10 = vmax.f32 %v3577_v12, 0.0  ;;  %v3576_v2 = vadd.f32 %v10322_v32, %v12728_v63  ;;  %v3935_v31 = vsub.f32 %v12914_v13, %v14767_v54 }
 0x389   : > { %15079 = vst [vmem:[#allocation5_spill] sm:$0xff] %v12963_v53  ;;  %v12976_v14 = vsub.f32 %v3691_v4, %v12963_v53  ;;  %9509 = vmatprep.mubr.f32.mxu1 %v3916_v43  ;;  %v3926_v34 = vand.u32 4294901760, %v3925_v3  ;;  %v10323_v62 = vadd.f32 %v9473_v21, %v9305_v27  ;;  %v14768_v35 = vand.u32 4294901760, %v12908_v17 }
 0x38a   : > { %15081 = vst [vmem:[#allocation6_spill] sm:$0xff] %v12969_v19  ;;  %v12980_v46 = vsub.f32 %v3688_v50, %v12969_v19  ;;  %v3697_v44 = vsel %vm15082_vm10, %v3609_v10, 0  ;;  %v3608_v12 = vmax.f32 %v3576_v2, 0.0  ;;  %v3936_v30 = vand.u32 4294901760, %v3935_v31  ;;  %v9308_v63 = vpop.f32.mrb[26].mxu1  ;;  %v9479_v32 = vpop.f32.mrb[28].mxu0  ;;  %vm15180_vm10 = vmmov %vm15056_vm0 }
 0x38b   : > { %v12983_v16 = vand.u32 4294901760, %v3697_v44  ;;  %9510 = vmatmul.mubr.f32.gmra.mrb[44].mxu1 %v3926_v34  ;;  %v3579_v4 = vadd.f32 %v10323_v62, %v12731_v22  ;;  %v3945_v21 = vsub.f32 %v12908_v17, %v14768_v35  ;;  %v10324_v27 = vadd.f32 %v3508_v11, %v2646_v7  ;;  %v2660_v43 = vpop.f32.mrb[27].mxu1  ;;  %v3532_v3 = vpop.f32.mrb[29].mxu0 }
 0x38c   : > { %v3694_v50 = vsel %vm15084_vm3, %v3608_v12, 0  ;;  %9512 = vmatprep.mubr.f32.mxu1 %v3936_v30  ;;  %v14769_v10 = vand.u32 4294901760, %v12933_v40  ;;  %v10325_v2 = vadd.f32 %v9476_v39, %v9308_v63  ;;  %v14774_v31 = vand.u32 4294901760, %v12929_v52  ;;  %vm15181_vm3 = vmmov %vm15056_vm0 }
 0x38d   : > { %15083 = vst [vmem:[#allocation7_spill] sm:$0xff] %v12983_v16  ;;  %v12993_v54 = vsub.f32 %v3697_v44, %v12983_v16  ;;  %v12995_v34 = vand.u32 4294901760, %v3694_v50  ;;  %v3611_v22 = vmax.f32 %v3579_v4, 0.0  ;;  %v3946_v62 = vand.u32 4294901760, %v3945_v21 }
 0x38e   : > { %v3578_v35 = vadd.f32 %v10324_v27, %v12738_v8  ;;  %v3955_v7 = vsub.f32 %v12933_v40, %v14769_v10  ;;  %v3581_v30 = vadd.f32 %v10325_v2, %v12741_v18  ;;  %v3965_v11 = vsub.f32 %v12929_v52, %v14774_v31  ;;  %v9311_v39 = vpop.f32.mrb[28].mxu1  ;;  %v9482_v12 = vpop.f32.mrb[30].mxu0 }
 0x38f   : > { %15085 = vst [vmem:[#allocation8_spill] sm:$0xff] %v12995_v34  ;;  %v13006_v44 = vsub.f32 %v3694_v50, %v12995_v34  ;;  %v3703_v63 = vsel %vm15056_vm0, %v3611_v22, 0  ;;  %9513 = vmatmul.mubr.f32.gmra.mrb[46].mxu1 %v3946_v62  ;;  %v10326_v4 = vadd.f32 %v3520_v60, %v2660_v43  ;;  %v14777_v8 = vand.u32 4294901760, %v12954_v5  ;;  %v2674_v21 = vpop.f32.mrb[29].mxu1  ;;  %v3544_v27 = vpop.f32.mrb[31].mxu0 }
 0x390   : > { %v13010_v10 = vand.u32 4294901760, %v3703_v63  ;;  %v3610_v18 = vmax.f32 %v3578_v35, 0.0  ;;  %v3956_v2 = vand.u32 4294901760, %v3955_v7  ;;  %v3613_v40 = vmax.f32 %v3581_v30, 0.0 }
 0x391   : > { %v3966_v17 = vand.u32 4294901760, %v3965_v11  ;;  %v3580_v31 = vadd.f32 %v10326_v4, %v12747_v58  ;;  %v3975_v50 = vsub.f32 %v12954_v5, %v14777_v8  ;;  %v10327_v52 = vadd.f32 %v9479_v32, %v9311_v39 }
 0x392   : > { %15086 = vst [vmem:[#allocation9_spill] sm:$0xff] %v13010_v10  ;;  %v13017_v22 = vsub.f32 %v3703_v63, %v13010_v10  ;;  %v3700_v60 = vsel %vm15087_vm5, %v3610_v18, 0  ;;  %9515 = vmatprep.mubr.f32.mxu1 %v3956_v2  ;;  %v3709_v43 = vsel %vm15088_vm1, %v3613_v40, 0  ;;  %v14778_v35 = vand.u32 4294901760, %v12951_v1  ;;  %v9314_v62 = vpop.f32.mrb[30].mxu1  ;;  %vm15182_vm5 = vmmov %vm15056_vm0 }
 0x393   : > { %v13022_v7 = vand.u32 4294901760, %v3700_v60  ;;  %v13024_v30 = vand.u32 4294901760, %v3709_v43  ;;  %9516 = vmatmul.mubr.f32.gmra.mrb[48].mxu1 %v3966_v17  ;;  %v3612_v58 = vmax.f32 %v3580_v31, 0.0  ;;  %v3976_v11 = vand.u32 4294901760, %v3975_v50  ;;  %v2688_v4 = vpop.f32.mrb[31].mxu1  ;;  %vm15185_vm1 = vmmov %vm15056_vm0 }
 0x394   : > { %v3583_v32 = vadd.f32 %v10327_v52, %v12752_v6  ;;  %v3985_v39 = vsub.f32 %v12951_v1, %v14778_v35  ;;  %v10328_v63 = vadd.f32 %v3532_v3, %v2674_v21  ;;  %v14785_v40 = vand.u32 4294901760, %v12980_v46 }
 0x395   : > { %15089 = vst [vmem:[#allocation30_spill] sm:$0xff] %v13022_v7  ;;  %15090 = vst [vmem:[#allocation31_spill] sm:$0xff] %v13024_v30  ;;  %v13032_v18 = vsub.f32 %v3700_v60, %v13022_v7  ;;  %v13035_v2 = vsub.f32 %v3709_v43, %v13024_v30  ;;  %v3706_v17 = vsel %vm15091_vm4, %v3612_v58, 0  ;;  %9518 = vmatprep.mubr.f32.mxu1 %v3976_v11  ;;  %v14781_v60 = vand.u32 4294901760, %v12976_v14 }
 0x396   : > { %v10329_v31 = vadd.f32 %v9482_v12, %v9314_v62  ;;  %v13038_v50 = vand.u32 4294901760, %v3706_v17  ;;  %v3615_v52 = vmax.f32 %v3583_v32, 0.0  ;;  %v3986_v6 = vand.u32 4294901760, %v3985_v39  ;;  %vm15186_vm4 = vmmov %vm15056_vm0 }
 0x397   : > { %v3582_v8 = vadd.f32 %v10328_v63, %v12759_v38  ;;  %v3995_v3 = vsub.f32 %v12980_v46, %v14785_v40  ;;  %v10330_v43 = vadd.f32 %v3544_v27, %v2688_v4  ;;  %v14780_v58 = vand.u32 4294901760, %v13006_v44 }
 0x398   : > { %15092 = vst [vmem:[#allocation32_spill] sm:$0xff] %v13038_v50  ;;  %v3585_v21 = vadd.f32 %v10329_v31, %v12769_v0  ;;  %v13047_v35 = vsub.f32 %v3706_v17, %v13038_v50  ;;  %v3715_v12 = vsel %vm15093_vm6, %v3615_v52, 0  ;;  %9519 = vmatmul.mubr.f32.gmra.mrb[50].mxu1 %v3986_v6  ;;  %v4005_v0 = vsub.f32 %v12976_v14, %v14781_v60  ;;  %vm15189_vm6 = vmmov %vm15056_vm0 }
 0x399   : > { %v3614_v62 = vmax.f32 %v3582_v8, 0.0  ;;  %v13051_v11 = vand.u32 4294901760, %v3715_v12  ;;  %v3996_v38 = vand.u32 4294901760, %v3995_v3  ;;  %v3584_v27 = vadd.f32 %v10330_v43, %v12777_v45 }
 0x39a   : > { %v3617_v32 = vmax.f32 %v3585_v21, 0.0  ;;  %v4015_v4 = vsub.f32 %v13006_v44, %v14780_v58  ;;  %v14779_v8 = vand.u32 4294901760, %v12993_v54  ;;  %v4006_v31 = vand.u32 4294901760, %v4005_v0 }
 0x39b   : > { %15094 = vst [vmem:[#allocation33_spill] sm:$0xff] %v13051_v11  ;;  %v3712_v39 = vsel %vm15095_vm7, %v3614_v62, 0  ;;  %9521 = vmatprep.mubr.f32.mxu1 %v3996_v38  ;;  %v13066_v52 = vsub.f32 %v3715_v12, %v13051_v11  ;;  %v3616_v6 = vmax.f32 %v3584_v27, 0.0  ;;  %v14782_v43 = vand.u32 4294901760, %v13032_v18  ;;  %vm15190_vm7 = vmmov %vm15056_vm0 }
 0x39c   : > { %v13062_v63 = vand.u32 4294901760, %v3712_v39  ;;  %v3721_v17 = vsel %vm15097_vm9, %v3617_v32, 0  ;;  %v4016_v3 = vand.u32 4294901760, %v4015_v4  ;;  %v4025_v45 = vsub.f32 %v12993_v54, %v14779_v8  ;;  %9522 = vmatmul.mubr.f32.gmra.mrb[52].mxu1 %v4006_v31  ;;  %vm15193_vm9 = vmmov %vm15056_vm0 }
 0x39d   : > { %v14783_v62 = vand.u32 4294901760, %v13017_v22  ;;  %v14784_v38 = vand.u32 4294901760, %v13047_v35  ;;  %v13077_v32 = vand.u32 4294901760, %v3721_v17  ;;  %v3718_v12 = vsel %vm15099_vm2, %v3616_v6, 0  ;;  %vm15194_vm2 = vmmov %vm15056_vm0 }
 0x39e   : > { %15096 = vst [vmem:[#allocation34_spill] sm:$0xff] %v13062_v63  ;;  %v13072_v21 = vsub.f32 %v3712_v39, %v13062_v63  ;;  %9524 = vmatprep.mubr.f32.mxu1 %v4016_v3  ;;  %v4026_v0 = vand.u32 4294901760, %v4025_v45  ;;  %v14790_v27 = vand.u32 4294901760, %v13035_v2  ;;  %v13081_v4 = vand.u32 4294901760, %v3718_v12 }
 0x39f   : > { %15098 = vst [vmem:[#allocation35_spill] sm:$0xff] %v13077_v32  ;;  %v4035_v39 = vsub.f32 %v13032_v18, %v14782_v43  ;;  %v4045_v31 = vsub.f32 %v13017_v22, %v14783_v62  ;;  %v4055_v8 = vsub.f32 %v13047_v35, %v14784_v38  ;;  %v13097_v58 = vsub.f32 %v3721_v17, %v13077_v32 }
 0x3a0   : > { %15100 = vst [vmem:[#allocation36_spill] sm:$0xff] %v13081_v4  ;;  %v14786_v6 = vand.u32 4294901760, %v13072_v21  ;;  %v13094_v3 = vsub.f32 %v3718_v12, %v13081_v4  ;;  %9525 = vmatmul.mubr.f32.gmra.mrb[54].mxu1 %v4026_v0  ;;  %v4065_v38 = vsub.f32 %v13035_v2, %v14790_v27  ;;  %v14789_v40 = vand.u32 4294901760, %v13066_v52  ;;  %v15115_v27 = vld [vmem:[#allocation23_spill] sm:$0xff] }
 0x3a1   : > { %v4036_v45 = vand.u32 4294901760, %v4035_v39  ;;  %v4056_v60 = vand.u32 4294901760, %v4055_v8  ;;  %v4046_v62 = vand.u32 4294901760, %v4045_v31  ;;  %v14787_v31 = vand.u32 4294901760, %v13097_v58 }
 0x3a2   : > { %v4075_v43 = vsub.f32 %v13072_v21, %v14786_v6  ;;  %v14788_v12 = vand.u32 4294901760, %v13094_v3  ;;  %v4066_v17 = vand.u32 4294901760, %v4065_v38  ;;  %v4085_v39 = vsub.f32 %v13066_v52, %v14789_v40  ;;  %v15104_v38 = vld [vmem:[#allocation10_spill] sm:$0xff]  ;;  %v15114_v40 = vld [vmem:[#allocation24_spill] sm:$0xff] }
 0x3a3   : > { %9527 = vmatprep.mubr.f32.mxu1 %v4036_v45 }
 0x3a4   : > { %9528 = vmatmul.mubr.f32.gmra.mrb[56].mxu1 %v4046_v62  ;;  %v4076_v0 = vand.u32 4294901760, %v4075_v43  ;;  %v4095_v8 = vsub.f32 %v13094_v3, %v14788_v12  ;;  %v4086_v6 = vand.u32 4294901760, %v4085_v39  ;;  %v15103_v62 = vld [vmem:[#allocation18_spill] sm:$0xff]  ;;  %v15113_v12 = vld [vmem:[#allocation21_spill] sm:$0xff] }
 0x3a5   : > { %9530 = vmatprep.mubr.f32.mxu1 %v4056_v60  ;;  %v4105_v60 = vsub.f32 %v13097_v58, %v14787_v31  ;;  %v15112_v31 = vld [vmem:[#allocation22_spill] sm:$0xff] }
 0x3a6   : > { %v4096_v45 = vand.u32 4294901760, %v4095_v8  ;;  %v15107_v8 = vld [vmem:[#allocation13_spill] sm:$0xff] }
 0x3a7   : > { %v4106_v43 = vand.u32 4294901760, %v4105_v60  ;;  %v15110_v60 = vld [vmem:[#allocation20_spill] sm:$0xff] }
 0x3a8   : > { %9531 = vmatmul.mubr.f32.gmra.mrb[58].mxu1 %v4066_v17  ;;  %v15108_v17 = vand.u32 4294901760, %v15107_v8  ;;  %v15118_v8 = vld [vmem:[#allocation29_spill] sm:$0xff] }
 0x3a9   : > { %9533 = vmatprep.mubr.f32.mxu1 %v4076_v0 }
 0x3ac   : > { %9534 = vmatmul.mubr.f32.gmra.mrb[60].mxu1 %v4086_v6  ;;  %v15105_v6 = vld [vmem:[#allocation11_spill] sm:$0xff] }
 0x3ad   : > { %9536 = vmatprep.mubr.f32.mxu1 %v4096_v45  ;;  %v15106_v0 = vand.u32 4294901760, %v15105_v6  ;;  %v15109_v45 = vld [vmem:[#allocation17_spill] sm:$0xff]  ;;  %v15116_v6 = vld [vmem:[#allocation26_spill] sm:$0xff] }
 0x3af   : > { %v10235_v39 = vpack.c.bf16 %v15108_v17, %v15106_v0  ;;  %v15117_v0 = vld [vmem:[#allocation25_spill] sm:$0xff]  ;;  %v15119_v17 = vld [vmem:[#allocation27_spill] sm:$0xff] }
 0x3b0   : > { %9537 = vmatmul.mubr.f32.gmra.mrb[62].mxu1 %v4106_v43  ;;  %v15111_v43 = vld [vmem:[#allocation19_spill] sm:$0xff] }
 0x3b1   : > { %9547 = vmatprep.mubr.f32.mxu1 %v12761_v59 }
 0x3b4   : > { %9548 = vmatmul.mubr.f32.vlgmr.msra.gmra.mrb[32].mxu1 %v12754_v55 }
 0x3b5   : > { %10222 = vmatpush3.bf16.msra.mxu1 %v12501_v9  ;;  %9550 = vmatprep.mubr.f32.mxu1 %v12784_v57  ;;  %v15101_v9 = vld [vmem:[#allocation16_spill] sm:$0xff] }
 0x3b6   : > { %10224 = vmatprep.subr.bf16.mxu1 %v12670_v51 }
 0x3b8   : > { %9551 = vmatmul.mubr.f32.gmra.mrb[34].mxu1 %v12780_v37 }
 0x3b9   : > { %9553 = vmatprep.mubr.f32.mxu1 %v12805_v41  ;;  %10226 = vmatpush3.bf16.msra.mxu1 %v12670_v51  ;;  %v15102_v51 = vld [vmem:[#allocation15_spill] sm:$0xff] }
 0x3ba   : > { %10228 = vmatprep.subr.bf16.mxu1 %v12333_v24 }
 0x3bc   : > { %9554 = vmatmul.mubr.f32.gmra.mrb[36].mxu1 %v12801_v47 }
 0x3bd   : > { %9556 = vmatprep.mubr.f32.mxu1 %v12824_v25 }
 0x3c0   : > { %9557 = vmatmul.mubr.f32.gmra.mrb[38].mxu1 %v12817_v49 }
 0x3c1   : > { %9559 = vmatprep.mubr.f32.mxu1 %v12844_v29 }
 0x3c4   : > { %9560 = vmatmul.mubr.f32.gmra.mrb[40].mxu1 %v12839_v15 }
 0x3c5   : > { %9562 = vmatprep.mubr.f32.mxu1 %v12867_v61 }
 0x3c8   : > { %9563 = vmatmul.mubr.f32.gmra.mrb[42].mxu1 %v12863_v23 }
 0x3c9   : > { %9565 = vmatprep.mubr.f32.mxu1 %v12886_v28 }
 0x3cc   : > { %9566 = vmatmul.mubr.f32.gmra.mrb[44].mxu1 %v12879_v33 }
 0x3cd   : > { %9568 = vmatprep.mubr.f32.mxu1 %v12904_v56 }
 0x3d0   : > { %9569 = vmatmul.mubr.f32.gmra.mrb[46].mxu1 %v12899_v36 }
 0x3d1   : > { %9571 = vmatprep.mubr.f32.mxu1 %v12925_v20 }
 0x3d4   : > { %9572 = vmatmul.mubr.f32.gmra.mrb[48].mxu1 %v12921_v48 }
 0x3d5   : > { %9574 = vmatprep.mubr.f32.mxu1 %v12946_v42 }
 0x3d8   : > { %9575 = vmatmul.mubr.f32.gmra.mrb[50].mxu1 %v12939_v26  ;;  %v15131_v26 = vand.u32 4294901760, %v15110_v60 }
 0x3d9   : > { %9577 = vmatprep.mubr.f32.mxu1 %v12969_v19  ;;  %v15130_v19 = vand.u32 4294901760, %v15109_v45 }
 0x3dc   : > { %9578 = vmatmul.mubr.f32.gmra.mrb[52].mxu1 %v12963_v53  ;;  %v15129_v53 = vand.u32 4294901760, %v15103_v62 }
 0x3dd   : > { %9580 = vmatprep.mubr.f32.mxu1 %v12995_v34  ;;  %v15128_v34 = vand.u32 4294901760, %v15102_v51 }
 0x3e0   : > { %9581 = vmatmul.mubr.f32.gmra.mrb[54].mxu1 %v12983_v16 }
 0x3e1   : > { %9583 = vmatprep.mubr.f32.mxu1 %v13022_v7 }
 0x3e4   : > { %9584 = vmatmul.mubr.f32.gmra.mrb[56].mxu1 %v13010_v10  ;;  %v15126_v10 = vld [vmem:[#allocation14_spill] sm:$0xff] }
 0x3e5   : > { %9586 = vmatprep.mubr.f32.mxu1 %v13038_v50  ;;  %v15127_v7 = vand.u32 4294901760, %v15126_v10  ;;  %v15132_v10 = vand.u32 4294901760, %v15111_v43 }
 0x3e8   : > { %9587 = vmatmul.mubr.f32.gmra.mrb[58].mxu1 %v13024_v30  ;;  %v15124_v30 = vld [vmem:[#allocation12_spill] sm:$0xff] }
 0x3e9   : > { %9589 = vmatprep.mubr.f32.mxu1 %v13062_v63  ;;  %v15123_v63 = vand.u32 4294901760, %v15101_v9  ;;  %v15125_v50 = vand.u32 4294901760, %v15124_v30  ;;  %v15139_v30 = vand.u32 4294901760, %v15118_v8 }
 0x3eb   : > { %v10239_v16 = vpack.c.bf16 %v15127_v7, %v15125_v50  ;;  %v15133_v7 = vand.u32 4294901760, %v15112_v31  ;;  %v15140_v50 = vand.u32 4294901760, %v15119_v17 }
 0x3ec   : > { %9590 = vmatmul.mubr.f32.gmra.mrb[60].mxu1 %v13051_v11  ;;  %v15122_v11 = vld [vmem:[#allocation3_spill] sm:$0xff] }
 0x3ed   : > { %9592 = vmatprep.mubr.f32.mxu1 %v13081_v4  ;;  %v15121_v4 = vld [vmem:[#allocation2_spill] sm:$0xff] }
 0x3f0   : > { %9593 = vmatmul.mubr.f32.gmra.mrb[62].mxu1 %v13077_v32  ;;  %v15120_v32 = vld [vmem:[#allocation28_spill] sm:$0xff] }
 0x3f1   : > { %9603 = vmatprep.mubr.f32.mxu1 %v15101_v9  ;;  %v15146_v9 = vand.u32 4294901760, %v12951_v1 }
 0x3f4   : > { %9604 = vmatmul.mubr.f32.vlgmr.msra.gmra.mrb[32].mxu1 %v15102_v51  ;;  %v15147_v51 = vand.u32 4294901760, %v12980_v46 }
 0x3f5   : > { %10230 = vmatpush3.bf16.msra.mxu1 %v12333_v24  ;;  %9606 = vmatprep.mubr.f32.mxu1 %v15103_v62 }
 0x3f6   : > { %10232 = vmatprep.subr.bf16.mxu1 %v15104_v38 }
 0x3f8   : > { %9607 = vmatmul.mubr.f32.gmra.mrb[34].mxu1 %v15109_v45 }
 0x3f9   : > { %9609 = vmatprep.mubr.f32.mxu1 %v15110_v60  ;;  %10234 = vmatpush3.bf16.msra.mxu1 %v15104_v38  ;;  %v15161_v60 = vld [vmem:[#allocation5_spill] sm:$0xff] }
 0x3fa   : > { %10236 = vmatprep.subr.bf16.mxu1 %v10235_v39 }
 0x3fc   : > { %9610 = vmatmul.mubr.f32.gmra.mrb[36].mxu1 %v15111_v43  ;;  %v15162_v43 = vld [vmem:[#allocation8_spill] sm:$0xff] }
 0x3fd   : > { %9612 = vmatprep.mubr.f32.mxu1 %v15112_v31  ;;  %v15145_v31 = vand.u32 4294901760, %v12954_v5 }
 0x400   : > { %9613 = vmatmul.mubr.f32.gmra.mrb[38].mxu1 %v15113_v12 }
 0x401   : > { %9615 = vmatprep.mubr.f32.mxu1 %v15114_v40 }
 0x404   : > { %9616 = vmatmul.mubr.f32.gmra.mrb[40].mxu1 %v15115_v27 }
 0x405   : > { %9618 = vmatprep.mubr.f32.mxu1 %v15116_v6 }
 0x408   : > { %9619 = vmatmul.mubr.f32.gmra.mrb[42].mxu1 %v15117_v0 }
 0x409   : > { %9621 = vmatprep.mubr.f32.mxu1 %v15118_v8  ;;  %v15165_v8 = vld [vmem:[#allocation9_spill] sm:$0xff] }
 0x40c   : > { %9622 = vmatmul.mubr.f32.gmra.mrb[44].mxu1 %v15119_v17  ;;  %v15166_v17 = vld [vmem:[#allocation32_spill] sm:$0xff] }
 0x40d   : > { %9624 = vmatprep.mubr.f32.mxu1 %v12914_v13 }
 0x410   : > { %9625 = vmatmul.mubr.f32.gmra.mrb[46].mxu1 %v15120_v32 }
 0x411   : > { %9627 = vmatprep.mubr.f32.mxu1 %v15121_v4 }
 0x414   : > { %9628 = vmatmul.mubr.f32.gmra.mrb[48].mxu1 %v15122_v11 }
 0x415   : > { %9630 = vmatprep.mubr.f32.mxu1 %v12954_v5  ;;  %v15152_v5 = vand.u32 4294901760, %v13017_v22 }
 0x418   : > { %9631 = vmatmul.mubr.f32.gmra.mrb[50].mxu1 %v12951_v1  ;;  %v15153_v1 = vand.u32 4294901760, %v13047_v35 }
 0x419   : > { %9633 = vmatprep.mubr.f32.mxu1 %v12980_v46  ;;  %v15154_v46 = vand.u32 4294901760, %v13035_v2 }
 0x41c   : > { %9634 = vmatmul.mubr.f32.gmra.mrb[52].mxu1 %v12976_v14 }
 0x41d   : > { %9636 = vmatprep.mubr.f32.mxu1 %v13006_v44 }
 0x420   : > { %9637 = vmatmul.mubr.f32.gmra.mrb[54].mxu1 %v12993_v54 }
 0x421   : > { %9639 = vmatprep.mubr.f32.mxu1 %v13032_v18 }
 0x424   : > { %9640 = vmatmul.mubr.f32.gmra.mrb[56].mxu1 %v13017_v22  ;;  %v13264_v22 = vld [vmem:[%s14666_s8 + $0x20] sm:$0xff] }
 0x425   : > { %9642 = vmatprep.mubr.f32.mxu1 %v13047_v35  ;;  %v13269_v35 = vld [vmem:[%s14666_s8 + $0x28] sm:$0xff] }
 0x428   : > { %9643 = vmatmul.mubr.f32.gmra.mrb[58].mxu1 %v13035_v2  ;;  %v13274_v2 = vld [vmem:[%s14666_s8 + $0x30] sm:$0xff] }
 0x429   : > { %9645 = vmatprep.mubr.f32.mxu1 %v13072_v21 }
 0x42c   : > { %9646 = vmatmul.mubr.f32.gmra.mrb[60].mxu1 %v13066_v52 }
 0x42d   : > { %9648 = vmatprep.mubr.f32.mxu1 %v13094_v3 }
 0x430   : > { %9649 = vmatmul.mubr.f32.gmra.mrb[62].mxu1 %v13097_v58 }
 0x431   : > { %9659 = vmatprep.mubr.f32.mxu1 %v15123_v63  ;;  %v15141_v63 = vand.u32 4294901760, %v12914_v13  ;;  %v15148_v13 = vand.u32 4294901760, %v12976_v14  ;;  %v15155_v14 = vand.u32 4294901760, %v13072_v21  ;;  %v13282_v21 = vld [vmem:[%s14666_s8 + $0x38] sm:$0xff] }
 0x432   : > { %v5688_v62 = vand.u32 4294901760, %v13282_v21 }
 0x434   : > { %9660 = vmatmul.mubr.f32.vlgmr.msra.gmra.mrb[32].mxu1 %v15128_v34  ;;  %v15134_v34 = vand.u32 4294901760, %v15113_v12  ;;  %v15144_v12 = vand.u32 4294901760, %v15122_v11  ;;  %v15151_v11 = vand.u32 4294901760, %v13032_v18  ;;  %v15158_v18 = vand.u32 4294901760, %v13097_v58 }
 0x435   : > { %10238 = vmatpush3.bf16.msra.mxu1 %v10235_v39  ;;  %9662 = vmatprep.mubr.f32.mxu1 %v15129_v53  ;;  %v15135_v53 = vand.u32 4294901760, %v15114_v40  ;;  %v15142_v40 = vand.u32 4294901760, %v15120_v32  ;;  %v15149_v32 = vand.u32 4294901760, %v13006_v44  ;;  %v15156_v44 = vand.u32 4294901760, %v13066_v52 }
 0x436   : > { %10240 = vmatprep.subr.bf16.mxu1 %v10239_v16  ;;  %v5679_v58 = vand.u32 4294901760, %v13264_v22  ;;  %v5682_v52 = vand.u32 4294901760, %v13269_v35 }
 0x438   : > { %9663 = vmatmul.mubr.f32.gmra.mrb[34].mxu1 %v15130_v19  ;;  %v15136_v19 = vand.u32 4294901760, %v15115_v27  ;;  %v15143_v27 = vand.u32 4294901760, %v15121_v4  ;;  %v15150_v4 = vand.u32 4294901760, %v12993_v54  ;;  %v15157_v54 = vand.u32 4294901760, %v13094_v3 }
 0x439   : > { %9665 = vmatprep.mubr.f32.mxu1 %v15131_v26  ;;  %10242 = vmatpush3.bf16.msra.mxu1 %v10239_v16  ;;  %v15137_v26 = vand.u32 4294901760, %v15116_v6  ;;  %v15138_v16 = vand.u32 4294901760, %v15117_v0  ;;  %v5685_v3 = vand.u32 4294901760, %v13274_v2  ;;  %v13290_v39 = vpack.c.bf16 %v5682_v52, %v5679_v58  ;;  %v15163_v6 = vld [vmem:[#allocation7_spill] sm:$0xff]  ;;  %v15164_v0 = vld [vmem:[#allocation30_spill] sm:$0xff] }
 0x43a   : > { %10244 = vmatprep.subr.bf16.mxu1 %v12333_v24 }
 0x43b   : > { %v13297_v45 = vpack.c.bf16 %v5688_v62, %v5685_v3  ;;  %10252 = vmatprep.subr.bf16.mxu0 %v13290_v39 }
 0x43c   : > { %9666 = vmatmul.mubr.f32.gmra.mrb[36].mxu1 %v15132_v10  ;;  %10254 = vmatpush3.bf16.msra.mxu0 %v13290_v39  ;;  %v15167_v10 = vld [vmem:[#allocation31_spill] sm:$0xff] }
 0x43d   : > { %9668 = vmatprep.mubr.f32.mxu1 %v15133_v7  ;;  %10256 = vmatprep.subr.bf16.mxu0 %v13297_v45  ;;  %v15168_v7 = vld [vmem:[#allocation34_spill] sm:$0xff] }
 0x440   : > { %9669 = vmatmul.mubr.f32.gmra.mrb[38].mxu1 %v15134_v34  ;;  %10258 = vmatpush3.bf16.msra.mxu0 %v13297_v45  ;;  %v15169_v34 = vld [vmem:[#allocation33_spill] sm:$0xff] }
 0x441   : > { %9671 = vmatprep.mubr.f32.mxu1 %v15135_v53  ;;  %v15170_v53 = vld [vmem:[#allocation36_spill] sm:$0xff] }
 0x444   : > { %9672 = vmatmul.mubr.f32.gmra.mrb[40].mxu1 %v15136_v19  ;;  %v15171_v19 = vld [vmem:[#allocation35_spill] sm:$0xff] }
 0x445   : > { %9674 = vmatprep.mubr.f32.mxu1 %v15137_v26 }
 0x448   : > { %9675 = vmatmul.mubr.f32.gmra.mrb[42].mxu1 %v15138_v16 }
 0x449   : > { %9677 = vmatprep.mubr.f32.mxu1 %v15139_v30 }
 0x44c   : > { %9678 = vmatmul.mubr.f32.gmra.mrb[44].mxu1 %v15140_v50 }
 0x44d   : > { %9680 = vmatprep.mubr.f32.mxu1 %v15141_v63 }
 0x450   : > { %9681 = vmatmul.mubr.f32.gmra.mrb[46].mxu1 %v15142_v40 }
 0x451   : > { %9683 = vmatprep.mubr.f32.mxu1 %v15143_v27 }
 0x454   : > { %9684 = vmatmul.mubr.f32.gmra.mrb[48].mxu1 %v15144_v12 }
 0x455   : > { %9686 = vmatprep.mubr.f32.mxu1 %v15145_v31 }
 0x458   : > { %9687 = vmatmul.mubr.f32.gmra.mrb[50].mxu1 %v15146_v9 }
 0x459   : > { %9689 = vmatprep.mubr.f32.mxu1 %v15147_v51 }
 0x45c   : > { %9690 = vmatmul.mubr.f32.gmra.mrb[52].mxu1 %v15148_v13 }
 0x45d   : > { %9692 = vmatprep.mubr.f32.mxu1 %v15149_v32 }
 0x460   : > { %9693 = vmatmul.mubr.f32.gmra.mrb[54].mxu1 %v15150_v4 }
 0x461   : > { %9695 = vmatprep.mubr.f32.mxu1 %v15151_v11 }
 0x464   : > { %9696 = vmatmul.mubr.f32.gmra.mrb[56].mxu1 %v15152_v5 }
 0x465   : > { %9698 = vmatprep.mubr.f32.mxu1 %v15153_v1 }
 0x468   : > { %9699 = vmatmul.mubr.f32.gmra.mrb[58].mxu1 %v15154_v46 }
 0x469   : > { %9701 = vmatprep.mubr.f32.mxu1 %v15155_v14 }
 0x46c   : > { %9702 = vmatmul.mubr.f32.gmra.mrb[60].mxu1 %v15156_v44 }
 0x46d   : > { %9704 = vmatprep.mubr.f32.mxu1 %v15157_v54 }
 0x470   : > { %9705 = vmatmul.mubr.f32.gmra.mrb[62].mxu1 %v15158_v18 }
 0x471   : > { %9715 = vmatprep.mubr.f32.mxu1 %v12761_v59 }
 0x474   : > { %9716 = vmatmul.mubr.f32.vlgmr.msra.gmra.mrb[32].mxu1 %v12754_v55 }
 0x475   : > { %10246 = vmatpush3.bf16.msra.mxu1 %v12333_v24  ;;  %9718 = vmatprep.mubr.f32.mxu1 %v12784_v57  ;;  %v15159_v24 = vld [vmem:[#allocation4_spill] sm:$0xff] }
 0x476   : > { %10248 = vmatprep.subr.bf16.mxu1 %v15104_v38 }
 0x478   : > { %9719 = vmatmul.mubr.f32.gmra.mrb[34].mxu1 %v12780_v37 }
 0x479   : > { %9721 = vmatprep.mubr.f32.mxu1 %v12805_v41  ;;  %10250 = vmatpush3.bf16.msra.mxu1 %v15104_v38  ;;  %v15160_v38 = vld [vmem:[#allocation6_spill] sm:$0xff] }
 0x47c   : > { %9722 = vmatmul.mubr.f32.gmra.mrb[36].mxu1 %v12801_v47 }
 0x47d   : > { %9724 = vmatprep.mubr.f32.mxu1 %v12824_v25 }
 0x480   : > { %9725 = vmatmul.mubr.f32.gmra.mrb[38].mxu1 %v12817_v49 }
 0x481   : > { %9727 = vmatprep.mubr.f32.mxu1 %v12844_v29 }
 0x484   : > { %9728 = vmatmul.mubr.f32.gmra.mrb[40].mxu1 %v12839_v15 }
 0x485   : > { %9730 = vmatprep.mubr.f32.mxu1 %v12867_v61 }
 0x488   : > { %9731 = vmatmul.mubr.f32.gmra.mrb[42].mxu1 %v12863_v23 }
 0x489   : > { %9733 = vmatprep.mubr.f32.mxu1 %v12886_v28 }
 0x48c   : > { %9734 = vmatmul.mubr.f32.gmra.mrb[44].mxu1 %v12879_v33 }
 0x48d   : > { %9736 = vmatprep.mubr.f32.mxu1 %v12904_v56 }
 0x490   : > { %9737 = vmatmul.mubr.f32.gmra.mrb[46].mxu1 %v12899_v36 }
 0x491   : > { %9739 = vmatprep.mubr.f32.mxu1 %v12925_v20 }
 0x494   : > { %9740 = vmatmul.mubr.f32.gmra.mrb[48].mxu1 %v12921_v48 }
 0x495   : > { %9742 = vmatprep.mubr.f32.mxu1 %v12946_v42 }
 0x498   : > { %9743 = vmatmul.mubr.f32.gmra.mrb[50].mxu1 %v15159_v24 }
 0x499   : > { %9745 = vmatprep.mubr.f32.mxu1 %v15160_v38 }
 0x49c   : > { %9746 = vmatmul.mubr.f32.gmra.mrb[52].mxu1 %v15161_v60 }
 0x49d   : > { %9748 = vmatprep.mubr.f32.mxu1 %v15162_v43 }
 0x4a0   : > { %9749 = vmatmul.mubr.f32.gmra.mrb[54].mxu1 %v15163_v6 }
 0x4a1   : > { %9751 = vmatprep.mubr.f32.mxu1 %v15164_v0 }
 0x4a4   : > { %9752 = vmatmul.mubr.f32.gmra.mrb[56].mxu1 %v15165_v8 }
 0x4a5   : > { %9754 = vmatprep.mubr.f32.mxu1 %v15166_v17 }
 0x4a8   : > { %9755 = vmatmul.mubr.f32.gmra.mrb[58].mxu1 %v15167_v10 }
 0x4a9   : > { %9757 = vmatprep.mubr.f32.mxu1 %v15168_v7 }
 0x4ac   : > { %9758 = vmatmul.mubr.f32.gmra.mrb[60].mxu1 %v15169_v34 }
 0x4ad   : > { %9760 = vmatprep.mubr.f32.mxu1 %v15170_v53 }
 0x4b0   : > { %9761 = vmatmul.mubr.f32.gmra.mrb[62].mxu1 %v15171_v19 }
 0x4b1   : > { %9771 = vmatprep.mubr.f32.mxu1 %v12761_v59  ;;  %v13376_v59 = vsub.f32 %v13269_v35, %v5682_v52 }
 0x4b4   : > { %9772 = vmatmul.mubr.f32.vlgmr.msra.gmra.mrb[32].mxu1 %v12754_v55  ;;  %v13371_v55 = vsub.f32 %v13264_v22, %v5679_v58 }
 0x4b5   : > { %9774 = vmatprep.mubr.f32.mxu1 %v12784_v57  ;;  %v14834_v57 = vand.u32 4294901760, %v13376_v59 }
 0x4b8   : > { %9775 = vmatmul.mubr.f32.gmra.mrb[34].mxu1 %v12780_v37  ;;  %v14835_v37 = vand.u32 4294901760, %v13371_v55 }
 0x4b9   : > { %9777 = vmatprep.mubr.f32.mxu1 %v12805_v41  ;;  %v6078_v41 = vsub.f32 %v13376_v59, %v14834_v57 }
 0x4bc   : > { %9778 = vmatmul.mubr.f32.gmra.mrb[36].mxu1 %v12801_v47  ;;  %v6071_v47 = vsub.f32 %v13371_v55, %v14835_v37 }
 0x4bd   : > { %9780 = vmatprep.mubr.f32.mxu1 %v12824_v25  ;;  %v6079_v25 = vand.u32 4294901760, %v6078_v41 }
 0x4c0   : > { %9781 = vmatmul.mubr.f32.gmra.mrb[38].mxu1 %v12817_v49  ;;  %v6072_v49 = vand.u32 4294901760, %v6071_v47 }
 0x4c1   : > { %9783 = vmatprep.mubr.f32.mxu1 %v12844_v29  ;;  %v13391_v29 = vpack.c.bf16 %v13376_v59, %v13371_v55 }
 0x4c4   : > { %9784 = vmatmul.mubr.f32.gmra.mrb[40].mxu1 %v12839_v15  ;;  %v13386_v15 = vpack.c.bf16 %v6079_v25, %v6072_v49 }
 0x4c5   : > { %9786 = vmatprep.mubr.f32.mxu1 %v12867_v61  ;;  %v13401_v61 = vsub.f32 %v13282_v21, %v5688_v62 }
 0x4c6   : > { %10260 = vmatprep.subr.bf16.mxu0 %v13386_v15 }
 0x4c7   : > { %15173 = vst [vmem:[#allocation15_spill] sm:$0xff] %v13401_v61 }
 0x4c8   : > { %9787 = vmatmul.mubr.f32.gmra.mrb[42].mxu1 %v12863_v23  ;;  %v13396_v23 = vsub.f32 %v13274_v2, %v5685_v3 }
 0x4c9   : > { %9789 = vmatprep.mubr.f32.mxu1 %v12886_v28  ;;  %v13410_v28 = vld [vmem:[%s14667_s9] ss:$0 sm:$0xff] }
 0x4ca   : > { %15172 = vst [vmem:[#allocation16_spill] sm:$0xff] %v13396_v23 }
 0x4cc   : > { %9790 = vmatmul.mubr.f32.gmra.mrb[44].mxu1 %v12879_v33  ;;  %v13405_v33 = vpack.c.bf16 %v13401_v61, %v13396_v23 }
 0x4cd   : > { %9792 = vmatprep.mubr.f32.mxu1 %v12904_v56  ;;  %v14831_v56 = vand.u32 4294901760, %v13396_v23 }
 0x4cf   : > { %v6085_v63 = vsub.f32 %v13396_v23, %v14831_v56 }
 0x4d0   : > { %9793 = vmatmul.mubr.f32.gmra.mrb[46].mxu1 %v12899_v36 }
 0x4d1   : > { %9795 = vmatprep.mubr.f32.mxu1 %v12925_v20  ;;  %v6086_v46 = vand.u32 4294901760, %v6085_v63 }
 0x4d4   : > { %9796 = vmatmul.mubr.f32.gmra.mrb[48].mxu1 %v12921_v48 }
 0x4d5   : > { %9798 = vmatprep.mubr.f32.mxu1 %v12946_v42  ;;  %v14829_v42 = vand.u32 4294901760, %v13401_v61 }
 0x4d7   : > { %v6092_v31 = vsub.f32 %v13401_v61, %v14829_v42 }
 0x4d8   : > { %9799 = vmatmul.mubr.f32.gmra.mrb[50].mxu1 %v15159_v24 }
 0x4d9   : > { %9801 = vmatprep.mubr.f32.mxu1 %v15160_v38  ;;  %v6093_v22 = vand.u32 4294901760, %v6092_v31 }
 0x4dc   : > { %9802 = vmatmul.mubr.f32.gmra.mrb[52].mxu1 %v15161_v60 }
 0x4dd   : > { %9804 = vmatprep.mubr.f32.mxu1 %v15162_v43 }
 0x4e0   : > { %9805 = vmatmul.mubr.f32.gmra.mrb[54].mxu1 %v15163_v6 }
 0x4e1   : > { %9807 = vmatprep.mubr.f32.mxu1 %v15164_v0 }
 0x4e4   : > { %9808 = vmatmul.mubr.f32.gmra.mrb[56].mxu1 %v15165_v8 }
 0x4e5   : > { %9810 = vmatprep.mubr.f32.mxu1 %v15166_v17 }
 0x4e8   : > { %9811 = vmatmul.mubr.f32.gmra.mrb[58].mxu1 %v15167_v10 }
 0x4e9   : > { %9813 = vmatprep.mubr.f32.mxu1 %v15168_v7 }
 0x4ec   : > { %9814 = vmatmul.mubr.f32.gmra.mrb[60].mxu1 %v15169_v34 }
 0x4ed   : > { %9816 = vmatprep.mubr.f32.mxu1 %v15170_v53 }
 0x4f0   : > { %9817 = vmatmul.mubr.f32.gmra.mrb[62].mxu1 %v15171_v19  ;;  %v10263_v19 = vpack.c.bf16 %v6093_v22, %v6086_v46 }
 0x587   : > { %v9773_v36 = vpop.f32.mrb[32].mxu1 }
 0x588   : > { %v10331_v48 = vadd.f32 %v9773_v36, %v13410_v28  ;;  %v5351_v20 = vpop.f32.mrb[33].mxu1 }
 0x589   : > { %v10332_v26 = vadd.f32 %v13410_v28, %v5351_v20 }
 0x58a   : > { %v5542_v16 = vmax.f32 %v10331_v48, 0.0 }
 0x58b   : > { %v5541_v30 = vmax.f32 %v10332_v26, 0.0  ;;  %v9776_v50 = vpop.f32.mrb[34].mxu1 }
 0x58c   : > { %v5586_v40 = vsel %vm15174_vm11, %v5542_v16, 0  ;;  %v10333_v27 = vadd.f32 %v9776_v50, %v13410_v28  ;;  %v5363_v12 = vpop.f32.mrb[35].mxu1  ;;  %vm15197_vm11 = vmmov %vm15056_vm0 }
 0x58d   : > { %v13424_v9 = vand.u32 4294901760, %v5586_v40  ;;  %v5583_v51 = vsel %vm15175_vm14, %v5541_v30, 0  ;;  %v10334_v13 = vadd.f32 %v13410_v28, %v5363_v12  ;;  %vm15198_vm14 = vmmov %vm15056_vm0 }
 0x58e   : > { %v13428_v32 = vand.u32 4294901760, %v5583_v51  ;;  %v5544_v4 = vmax.f32 %v10333_v27, 0.0 }
 0x58f   : > { %v13431_v11 = vsub.f32 %v5586_v40, %v13424_v9  ;;  %v5543_v5 = vmax.f32 %v10334_v13, 0.0  ;;  %v9779_v1 = vpop.f32.mrb[36].mxu1 }
 0x590   : > { %v13434_v14 = vsub.f32 %v5583_v51, %v13428_v32  ;;  %v5592_v44 = vsel %vm15176_vm15, %v5544_v4, 0  ;;  %v10335_v54 = vadd.f32 %v9779_v1, %v13410_v28  ;;  %v5375_v18 = vpop.f32.mrb[37].mxu1  ;;  %vm15201_vm15 = vmmov %vm15056_vm0 }
 0x591   : > { %v14828_v35 = vand.u32 4294901760, %v13431_v11  ;;  %v13439_v2 = vand.u32 4294901760, %v5592_v44  ;;  %v5589_v58 = vsel %vm15177_vm13, %v5543_v5, 0  ;;  %v10336_v52 = vadd.f32 %v13410_v28, %v5375_v18  ;;  %vm15203_vm13 = vmmov %vm15056_vm0 }
 0x592   : > { %v13443_v21 = vand.u32 4294901760, %v5589_v58  ;;  %v5546_v3 = vmax.f32 %v10335_v54, 0.0  ;;  %v14832_v62 = vand.u32 4294901760, %v13434_v14 }
 0x593   : > { %v5760_v24 = vsub.f32 %v13431_v11, %v14828_v35  ;;  %v13450_v38 = vsub.f32 %v5592_v44, %v13439_v2  ;;  %v5545_v60 = vmax.f32 %v10336_v52, 0.0  ;;  %v9782_v43 = vpop.f32.mrb[38].mxu1 }
 0x594   : > { %v13453_v6 = vsub.f32 %v5589_v58, %v13443_v21  ;;  %v5598_v0 = vsel %vm15178_vm12, %v5546_v3, 0  ;;  %v10337_v8 = vadd.f32 %v9782_v43, %v13410_v28  ;;  %v5387_v17 = vpop.f32.mrb[39].mxu1  ;;  %v5750_v10 = vsub.f32 %v13434_v14, %v14832_v62  ;;  %vm15206_vm12 = vmmov %vm15056_vm0 }
 0x595   : > { %v13460_v7 = vand.u32 4294901760, %v5598_v0  ;;  %v5595_v34 = vsel %vm15179_vm8, %v5545_v60, 0  ;;  %v10338_v53 = vadd.f32 %v13410_v28, %v5387_v17  ;;  %v5761_v36 = vand.u32 4294901760, %v5760_v24  ;;  %vm15208_vm8 = vmmov %vm15056_vm0 }
 0x596   : > { %v13464_v47 = vand.u32 4294901760, %v5595_v34  ;;  %v5548_v41 = vmax.f32 %v10337_v8, 0.0  ;;  %v5751_v49 = vand.u32 4294901760, %v5750_v10  ;;  %v14826_v25 = vand.u32 4294901760, %v13453_v6 }
 0x597   : > { %v13468_v48 = vsub.f32 %v5598_v0, %v13460_v7  ;;  %v5547_v20 = vmax.f32 %v10338_v53, 0.0  ;;  %v9785_v26 = vpop.f32.mrb[40].mxu1  ;;  %v14825_v16 = vand.u32 4294901760, %v13450_v38 }
 0x598   : > { %v13472_v30 = vsub.f32 %v5595_v34, %v13464_v47  ;;  %v5604_v50 = vsel %vm15180_vm10, %v5548_v41, 0  ;;  %v10339_v63 = vadd.f32 %v9785_v26, %v13410_v28  ;;  %v5399_v40 = vpop.f32.mrb[41].mxu1  ;;  %9827 = vmatprep.mubr.f32.mxu0 %v5751_v49  ;;  %v5770_v27 = vsub.f32 %v13453_v6, %v14826_v25  ;;  %vm15212_vm10 = vmmov %vm15056_vm0 }
 0x599   : > { %v13479_v12 = vand.u32 4294901760, %v5604_v50  ;;  %v5601_v31 = vsel %vm15181_vm3, %v5547_v20, 0  ;;  %v10340_v51 = vadd.f32 %v13410_v28, %v5399_v40  ;;  %9828 = vmatmul.mubr.f32.vlgmr.msra.gmra.mrb[32].mxu0 %v5761_v36  ;;  %v5780_v13 = vsub.f32 %v13450_v38, %v14825_v16  ;;  %vm15214_vm3 = vmmov %vm15056_vm0 }
 0x59a   : > { %v13486_v4 = vand.u32 4294901760, %v5601_v31  ;;  %v5550_v5 = vmax.f32 %v10339_v63, 0.0  ;;  %10262 = vmatpush3.bf16.msra.mxu0 %v13386_v15  ;;  %v5771_v1 = vand.u32 4294901760, %v5770_v27  ;;  %v14823_v46 = vand.u32 4294901760, %v13472_v30 }
 0x59b   : > { %v13491_v44 = vsub.f32 %v5604_v50, %v13479_v12  ;;  %v5549_v54 = vmax.f32 %v10340_v51, 0.0  ;;  %v9788_v18 = vpop.f32.mrb[42].mxu1  ;;  %v5781_v22 = vand.u32 4294901760, %v5780_v13  ;;  %v14822_v58 = vand.u32 4294901760, %v13468_v48  ;;  %10264 = vmatprep.subr.bf16.mxu0 %v10263_v19 }
 0x59c   : > { %v13495_v52 = vsub.f32 %v5601_v31, %v13486_v4  ;;  %v5610_v3 = vsel %vm15056_vm0, %v5550_v5, 0  ;;  %v10341_v24 = vadd.f32 %v9788_v18, %v13410_v28  ;;  %v5411_v15 = vpop.f32.mrb[43].mxu1  ;;  %9830 = vmatprep.mubr.f32.mxu0 %v5771_v1  ;;  %v5790_v60 = vsub.f32 %v13472_v30, %v14823_v46 }
 0x59d   : > { %v13502_v43 = vand.u32 4294901760, %v5610_v3  ;;  %v5607_v0 = vsel %vm15182_vm5, %v5549_v54, 0  ;;  %v10342_v8 = vadd.f32 %v13410_v28, %v5411_v15  ;;  %9831 = vmatmul.mubr.f32.gmra.mrb[34].mxu0 %v5781_v22  ;;  %v5800_v17 = vsub.f32 %v13468_v48, %v14822_v58  ;;  %vm15219_vm5 = vmmov %vm15056_vm0 }
 0x59e   : > { %v13509_v10 = vand.u32 4294901760, %v5607_v0  ;;  %v5552_v34 = vmax.f32 %v10341_v24, 0.0  ;;  %v5791_v53 = vand.u32 4294901760, %v5790_v60  ;;  %v14820_v41 = vand.u32 4294901760, %v13495_v52  ;;  %10266 = vmatpush3.bf16.msra.mxu0 %v10263_v19 }
 0x59f   : > { %v13513_v49 = vsub.f32 %v5610_v3, %v13502_v43  ;;  %v5551_v36 = vmax.f32 %v10342_v8, 0.0  ;;  %v9791_v20 = vpop.f32.mrb[44].mxu1  ;;  %v5801_v26 = vand.u32 4294901760, %v5800_v17  ;;  %v14819_v50 = vand.u32 4294901760, %v13491_v44  ;;  %10268 = vmatprep.subr.bf16.mxu0 %v13391_v29 }
 0x5a0   : > { %v13518_v63 = vsub.f32 %v5607_v0, %v13509_v10  ;;  %v5616_v40 = vsel %vm15185_vm1, %v5552_v34, 0  ;;  %v10343_v27 = vadd.f32 %v9791_v20, %v13410_v28  ;;  %v5423_v31 = vpop.f32.mrb[45].mxu1  ;;  %9833 = vmatprep.mubr.f32.mxu0 %v5791_v53  ;;  %v5810_v19 = vsub.f32 %v13495_v52, %v14820_v41  ;;  %vm15222_vm1 = vmmov %vm15056_vm0 }
 0x5a1   : > { %15183 = vst [vmem:[#allocation18_spill] sm:$0xff] %v13513_v49  ;;  %v13525_v51 = vand.u32 4294901760, %v5616_v40  ;;  %v5613_v13 = vsel %vm15186_vm4, %v5551_v36, 0  ;;  %v10344_v5 = vadd.f32 %v13410_v28, %v5423_v31  ;;  %9834 = vmatmul.mubr.f32.gmra.mrb[36].mxu0 %v5801_v26  ;;  %v5820_v1 = vsub.f32 %v13491_v44, %v14819_v50  ;;  %vm15224_vm4 = vmmov %vm15056_vm0 }
 0x5a2   : > { %15184 = vst [vmem:[#allocation10_spill] sm:$0xff] %v13518_v63  ;;  %v13532_v54 = vand.u32 4294901760, %v5613_v13  ;;  %v5554_v18 = vmax.f32 %v10343_v27, 0.0  ;;  %v5811_v22 = vand.u32 4294901760, %v5810_v19  ;;  %v14817_v3 = vand.u32 4294901760, %v13518_v63 }
 0x5a3   : > { %v13536_v24 = vsub.f32 %v5616_v40, %v13525_v51  ;;  %v5553_v15 = vmax.f32 %v10344_v5, 0.0  ;;  %v9794_v60 = vpop.f32.mrb[46].mxu1  ;;  %v5821_v0 = vand.u32 4294901760, %v5820_v1  ;;  %v14818_v8 = vand.u32 4294901760, %v13513_v49 }
 0x5a4   : > { %v13540_v17 = vsub.f32 %v5613_v13, %v13532_v54  ;;  %v5622_v34 = vsel %vm15189_vm6, %v5554_v18, 0  ;;  %v10345_v53 = vadd.f32 %v9794_v60, %v13410_v28  ;;  %v5435_v36 = vpop.f32.mrb[47].mxu1  ;;  %9836 = vmatprep.mubr.f32.mxu0 %v5811_v22  ;;  %v5830_v20 = vsub.f32 %v13518_v63, %v14817_v3  ;;  %vm15227_vm6 = vmmov %vm15056_vm0 }
 0x5a5   : > { %15187 = vst [vmem:[#allocation11_spill] sm:$0xff] %v13536_v24  ;;  %v13547_v26 = vand.u32 4294901760, %v5622_v34  ;;  %v5619_v40 = vsel %vm15190_vm7, %v5553_v15, 0  ;;  %v10346_v27 = vadd.f32 %v13410_v28, %v5435_v36  ;;  %9837 = vmatmul.mubr.f32.gmra.mrb[38].mxu0 %v5821_v0  ;;  %v5840_v31 = vsub.f32 %v13513_v49, %v14818_v8  ;;  %vm15229_vm7 = vmmov %vm15056_vm0 }
 0x5a6   : > { %15188 = vst [vmem:[#allocation13_spill] sm:$0xff] %v13540_v17  ;;  %v13554_v19 = vand.u32 4294901760, %v5619_v40  ;;  %v5556_v13 = vmax.f32 %v10345_v53, 0.0  ;;  %v5831_v5 = vand.u32 4294901760, %v5830_v20  ;;  %v14821_v1 = vand.u32 4294901760, %v13540_v17 }
 0x5a7   : > { %v13558_v18 = vsub.f32 %v5622_v34, %v13547_v26  ;;  %v5555_v22 = vmax.f32 %v10346_v27, 0.0  ;;  %v9797_v60 = vpop.f32.mrb[48].mxu1  ;;  %v5841_v3 = vand.u32 4294901760, %v5840_v31  ;;  %v14824_v15 = vand.u32 4294901760, %v13536_v24 }
 0x5a8   : > { %v13562_v0 = vsub.f32 %v5619_v40, %v13554_v19  ;;  %v5628_v36 = vsel %vm15193_vm9, %v5556_v13, 0  ;;  %v10347_v8 = vadd.f32 %v9797_v60, %v13410_v28  ;;  %v5447_v50 = vpop.f32.mrb[49].mxu1  ;;  %9839 = vmatprep.mubr.f32.mxu0 %v5831_v5  ;;  %v5850_v53 = vsub.f32 %v13540_v17, %v14821_v1  ;;  %vm15231_vm9 = vmmov %vm15056_vm0 }
 0x5a9   : > { %15191 = vst [vmem:[#allocation17_spill] sm:$0xff] %v13558_v18  ;;  %v13569_v34 = vand.u32 4294901760, %v5628_v36  ;;  %v5625_v20 = vsel %vm15194_vm2, %v5555_v22, 0  ;;  %v10348_v27 = vadd.f32 %v13410_v28, %v5447_v50  ;;  %9840 = vmatmul.mubr.f32.gmra.mrb[40].mxu0 %v5841_v3  ;;  %v5860_v40 = vsub.f32 %v13536_v24, %v14824_v15  ;;  %vm15233_vm2 = vmmov %vm15056_vm0 }
 0x5aa   : > { %15192 = vst [vmem:[#allocation20_spill] sm:$0xff] %v13562_v0  ;;  %v13576_v31 = vand.u32 4294901760, %v5625_v20  ;;  %v5558_v13 = vmax.f32 %v10347_v8, 0.0  ;;  %v5851_v60 = vand.u32 4294901760, %v5850_v53  ;;  %v14827_v5 = vand.u32 4294901760, %v13562_v0 }
 0x5ab   : > { %v13580_v41 = vsub.f32 %v5628_v36, %v13569_v34  ;;  %v5557_v1 = vmax.f32 %v10348_v27, 0.0  ;;  %v9800_v58 = vpop.f32.mrb[50].mxu1  ;;  %v5861_v46 = vand.u32 4294901760, %v5860_v40  ;;  %v14830_v22 = vand.u32 4294901760, %v13558_v18 }
 0x5ac   : > { %v13584_v50 = vsub.f32 %v5625_v20, %v13576_v31  ;;  %v5634_v3 = vsel %vm15197_vm11, %v5558_v13, 0  ;;  %v10349_v15 = vadd.f32 %v9800_v58, %v13410_v28  ;;  %v5459_v16 = vpop.f32.mrb[51].mxu1  ;;  %9842 = vmatprep.mubr.f32.mxu0 %v5851_v60  ;;  %v5870_v8 = vsub.f32 %v13562_v0, %v14827_v5  ;;  %vm15304_vm11 = vmmov %vm15056_vm0 }
 0x5ad   : > { %15195 = vst [vmem:[#allocation19_spill] sm:$0xff] %v13580_v41  ;;  %v13591_v36 = vand.u32 4294901760, %v5634_v3  ;;  %v5631_v53 = vsel %vm15198_vm14, %v5557_v1, 0  ;;  %v10350_v27 = vadd.f32 %v13410_v28, %v5459_v16  ;;  %9843 = vmatmul.mubr.f32.gmra.mrb[42].mxu0 %v5861_v46  ;;  %v5880_v20 = vsub.f32 %v13558_v18, %v14830_v22  ;;  %vm15305_vm14 = vmmov %vm15056_vm0 }
 0x5ae   : > { %15196 = vst [vmem:[#allocation22_spill] sm:$0xff] %v13584_v50  ;;  %v13598_v40 = vand.u32 4294901760, %v5631_v53  ;;  %v5560_v58 = vmax.f32 %v10349_v15, 0.0  ;;  %v5871_v13 = vand.u32 4294901760, %v5870_v8  ;;  %v14833_v60 = vand.u32 4294901760, %v13584_v50 }
 0x5af   : > { %v13602_v25 = vsub.f32 %v5634_v3, %v13591_v36  ;;  %v5559_v5 = vmax.f32 %v10350_v27, 0.0  ;;  %v9803_v35 = vpop.f32.mrb[52].mxu1  ;;  %v5881_v42 = vand.u32 4294901760, %v5880_v20  ;;  %v14836_v1 = vand.u32 4294901760, %v13580_v41 }
 0x5b0   : > { %v13606_v16 = vsub.f32 %v5631_v53, %v13598_v40  ;;  %v5640_v46 = vsel %vm15201_vm15, %v5560_v58, 0  ;;  %v10351_v22 = vadd.f32 %v9803_v35, %v13410_v28  ;;  %v5471_v56 = vpop.f32.mrb[53].mxu1  ;;  %9845 = vmatprep.mubr.f32.mxu0 %v5871_v13  ;;  %v5890_v15 = vsub.f32 %v13584_v50, %v14833_v60  ;;  %vm15306_vm15 = vmmov %vm15056_vm0 }
 0x5b1   : > { %15199 = vst [vmem:[#allocation21_spill] sm:$0xff] %v13602_v25  ;;  %v13613_v3 = vand.u32 4294901760, %v5640_v46  ;;  %v5637_v8 = vsel %vm15203_vm13, %v5559_v5, 0  ;;  %v10352_v27 = vadd.f32 %v13410_v28, %v5471_v56  ;;  %9846 = vmatmul.mubr.f32.gmra.mrb[44].mxu0 %v5881_v42  ;;  %v5900_v53 = vsub.f32 %v13580_v41, %v14836_v1  ;;  %vm15307_vm13 = vmmov %vm15056_vm0 }
 0x5b2   : > { %15200 = vst [vmem:[#allocation24_spill] sm:$0xff] %v13606_v16  ;;  %v13620_v20 = vand.u32 4294901760, %v5637_v8  ;;  %v5562_v35 = vmax.f32 %v10351_v22, 0.0  ;;  %v5891_v58 = vand.u32 4294901760, %v5890_v15  ;;  %v14839_v13 = vand.u32 4294901760, %v13606_v16 }
 0x5b3   : > { %15202 = vst [vmem:[#allocation23_spill] sm:$0xff] %v13613_v3  ;;  %v13624_v62 = vsub.f32 %v5640_v46, %v13613_v3  ;;  %v5561_v60 = vmax.f32 %v10352_v27, 0.0  ;;  %v9806_v57 = vpop.f32.mrb[54].mxu1  ;;  %v5901_v37 = vand.u32 4294901760, %v5900_v53  ;;  %v14844_v5 = vand.u32 4294901760, %v13602_v25 }
 0x5b4   : > { %v13628_v56 = vsub.f32 %v5637_v8, %v13620_v20  ;;  %v5646_v42 = vsel %vm15206_vm12, %v5562_v35, 0  ;;  %v10353_v1 = vadd.f32 %v9806_v57, %v13410_v28  ;;  %v5483_v61 = vpop.f32.mrb[55].mxu1  ;;  %9848 = vmatprep.mubr.f32.mxu0 %v5891_v58  ;;  %v5910_v22 = vsub.f32 %v13606_v16, %v14839_v13  ;;  %vm15308_vm12 = vmmov %vm15056_vm0 }
 0x5b5   : > { %15204 = vst [vmem:[#allocation26_spill] sm:$0xff] %v13624_v62  ;;  %v13635_v46 = vand.u32 4294901760, %v5646_v42  ;;  %v5643_v15 = vsel %vm15208_vm8, %v5561_v60, 0  ;;  %v10354_v27 = vadd.f32 %v13410_v28, %v5483_v61  ;;  %9849 = vmatmul.mubr.f32.gmra.mrb[46].mxu0 %v5901_v37  ;;  %v5920_v8 = vsub.f32 %v13602_v25, %v14844_v5  ;;  %vm15309_vm8 = vmmov %vm15056_vm0 }
 0x5b6   : > { %15205 = vst [vmem:[#allocation25_spill] sm:$0xff] %v13628_v56  ;;  %v13642_v53 = vand.u32 4294901760, %v5643_v15  ;;  %v5564_v57 = vmax.f32 %v10353_v1, 0.0  ;;  %v5911_v35 = vand.u32 4294901760, %v5910_v22  ;;  %v14849_v58 = vand.u32 4294901760, %v13628_v56 }
 0x5b7   : > { %15207 = vst [vmem:[#allocation29_spill] sm:$0xff] %v13635_v46  ;;  %v13646_v23 = vsub.f32 %v5646_v42, %v13635_v46  ;;  %v5563_v13 = vmax.f32 %v10354_v27, 0.0  ;;  %v9809_v16 = vpop.f32.mrb[56].mxu1  ;;  %v5921_v41 = vand.u32 4294901760, %v5920_v8  ;;  %v14854_v60 = vand.u32 4294901760, %v13624_v62 }
 0x5b8   : > { %15209 = vst [vmem:[#allocation27_spill] sm:$0xff] %v13642_v53  ;;  %v13650_v37 = vsub.f32 %v5643_v15, %v13642_v53  ;;  %v5652_v61 = vsel %vm15212_vm10, %v5564_v57, 0  ;;  %v10355_v5 = vadd.f32 %v9809_v16, %v13410_v28  ;;  %v5495_v25 = vpop.f32.mrb[57].mxu1  ;;  %9851 = vmatprep.mubr.f32.mxu0 %v5911_v35  ;;  %v5930_v1 = vsub.f32 %v13628_v56, %v14849_v58  ;;  %vm15310_vm10 = vmmov %vm15056_vm0 }
 0x5b9   : > { %15210 = vst [vmem:[#allocation28_spill] sm:$0xff] %v13646_v23  ;;  %v13657_v42 = vand.u32 4294901760, %v5652_v61  ;;  %v5649_v22 = vsel %vm15214_vm3, %v5563_v13, 0  ;;  %v10356_v27 = vadd.f32 %v13410_v28, %v5495_v25  ;;  %9852 = vmatmul.mubr.f32.gmra.mrb[48].mxu0 %v5921_v41  ;;  %v5940_v15 = vsub.f32 %v13624_v62, %v14854_v60  ;;  %vm15311_vm3 = vmmov %vm15056_vm0 }
 0x5ba   : > { %15211 = vst [vmem:[#allocation2_spill] sm:$0xff] %v13650_v37  ;;  %v13664_v8 = vand.u32 4294901760, %v5649_v22  ;;  %v5566_v16 = vmax.f32 %v10355_v5, 0.0  ;;  %v5931_v57 = vand.u32 4294901760, %v5930_v1  ;;  %v14859_v35 = vand.u32 4294901760, %v13650_v37 }
 0x5bb   : > { %15213 = vst [vmem:[#allocation3_spill] sm:$0xff] %v13657_v42  ;;  %v13668_v50 = vsub.f32 %v5652_v61, %v13657_v42  ;;  %v5565_v58 = vmax.f32 %v10356_v27, 0.0  ;;  %v9812_v56 = vpop.f32.mrb[58].mxu1  ;;  %v5941_v18 = vand.u32 4294901760, %v5940_v15  ;;  %v14864_v13 = vand.u32 4294901760, %v13646_v23 }
 0x5bc   : > { %15215 = vst [vmem:[#allocation12_spill] sm:$0xff] %v13664_v8  ;;  %v13672_v25 = vsub.f32 %v5649_v22, %v13664_v8  ;;  %v5658_v41 = vsel %vm15056_vm0, %v5566_v16, 0  ;;  %v10357_v60 = vadd.f32 %v9812_v56, %v13410_v28  ;;  %v5507_v62 = vpop.f32.mrb[59].mxu1  ;;  %9854 = vmatprep.mubr.f32.mxu0 %v5931_v57  ;;  %v5950_v5 = vsub.f32 %v13650_v37, %v14859_v35 }
 0x5bd   : > { %15216 = vst [vmem:[#allocation14_spill] sm:$0xff] %v13668_v50  ;;  %v13679_v61 = vand.u32 4294901760, %v5658_v41  ;;  %v5655_v1 = vsel %vm15219_vm5, %v5565_v58, 0  ;;  %v10358_v27 = vadd.f32 %v13410_v28, %v5507_v62  ;;  %9855 = vmatmul.mubr.f32.gmra.mrb[50].mxu0 %v5941_v18  ;;  %v5960_v22 = vsub.f32 %v13646_v23, %v14864_v13  ;;  %vm15312_vm5 = vmmov %vm15056_vm0 }
 0x5be   : > { %15217 = vst [vmem:[#allocation4_spill] sm:$0xff] %v13672_v25  ;;  %v13686_v15 = vand.u32 4294901760, %v5655_v1  ;;  %v5568_v56 = vmax.f32 %v10357_v60, 0.0  ;;  %v5951_v16 = vand.u32 4294901760, %v5950_v5  ;;  %v14869_v57 = vand.u32 4294901760, %v13672_v25 }
 0x5bf   : > { %15218 = vst [vmem:[#allocation6_spill] sm:$0xff] %v13679_v61  ;;  %v13690_v0 = vsub.f32 %v5658_v41, %v13679_v61  ;;  %v5567_v35 = vmax.f32 %v10358_v27, 0.0  ;;  %v9815_v37 = vpop.f32.mrb[60].mxu1  ;;  %v5961_v24 = vand.u32 4294901760, %v5960_v22  ;;  %v14874_v58 = vand.u32 4294901760, %v13668_v50 }
 0x5c0   : > { %15220 = vst [vmem:[#allocation5_spill] sm:$0xff] %v13686_v15  ;;  %v13694_v62 = vsub.f32 %v5655_v1, %v13686_v15  ;;  %v5664_v18 = vsel %vm15222_vm1, %v5568_v56, 0  ;;  %v10359_v13 = vadd.f32 %v9815_v37, %v13410_v28  ;;  %v5519_v23 = vpop.f32.mrb[61].mxu1  ;;  %9857 = vmatprep.mubr.f32.mxu0 %v5951_v16  ;;  %v5970_v60 = vsub.f32 %v13672_v25, %v14869_v57  ;;  %vm15313_vm1 = vmmov %vm15056_vm0 }
 0x5c1   : > { %v13701_v41 = vand.u32 4294901760, %v5664_v18  ;;  %v5661_v5 = vsel %vm15224_vm4, %v5567_v35, 0  ;;  %v10360_v27 = vadd.f32 %v13410_v28, %v5519_v23  ;;  %9858 = vmatmul.mubr.f32.gmra.mrb[52].mxu0 %v5961_v24  ;;  %v5980_v1 = vsub.f32 %v13668_v50, %v14874_v58  ;;  %vm15314_vm4 = vmmov %vm15056_vm0 }
 0x5c2   : > { %15221 = vst [vmem:[#allocation8_spill] sm:$0xff] %v13694_v62  ;;  %v13708_v22 = vand.u32 4294901760, %v5661_v5  ;;  %v5570_v37 = vmax.f32 %v10359_v13, 0.0  ;;  %v5971_v56 = vand.u32 4294901760, %v5970_v60  ;;  %v14879_v16 = vand.u32 4294901760, %v13694_v62 }
 0x5c3   : > { %15223 = vst [vmem:[#allocation7_spill] sm:$0xff] %v13701_v41  ;;  %v13712_v17 = vsub.f32 %v5664_v18, %v13701_v41  ;;  %v5569_v57 = vmax.f32 %v10360_v27, 0.0  ;;  %v9818_v25 = vpop.f32.mrb[62].mxu1  ;;  %v5981_v49 = vand.u32 4294901760, %v5980_v1  ;;  %v14884_v35 = vand.u32 4294901760, %v13690_v0 }
 0x5c4   : > { %15225 = vst [vmem:[#allocation30_spill] sm:$0xff] %v13708_v22  ;;  %v13716_v23 = vsub.f32 %v5661_v5, %v13708_v22  ;;  %v5670_v24 = vsel %vm15227_vm6, %v5570_v37, 0  ;;  %v10361_v58 = vadd.f32 %v9818_v25, %v13410_v28  ;;  %v5531_v50 = vpop.f32.mrb[63].mxu1  ;;  %9860 = vmatprep.mubr.f32.mxu0 %v5971_v56  ;;  %v5990_v13 = vsub.f32 %v13694_v62, %v14879_v16  ;;  %vm15315_vm6 = vmmov %vm15056_vm0 }
 0x5c5   : > { %15226 = vst [vmem:[#allocation9_spill] sm:$0xff] %v13712_v17  ;;  %v13723_v18 = vand.u32 4294901760, %v5670_v24  ;;  %v5667_v60 = vsel %vm15229_vm7, %v5569_v57, 0  ;;  %v10362_v27 = vadd.f32 %v13410_v28, %v5531_v50  ;;  %9861 = vmatmul.mubr.f32.gmra.mrb[54].mxu0 %v5981_v49  ;;  %v6000_v5 = vsub.f32 %v13690_v0, %v14884_v35  ;;  %vm15316_vm7 = vmmov %vm15056_vm0 }
 0x5c6   : > { %v13730_v1 = vand.u32 4294901760, %v5667_v60  ;;  %v5572_v25 = vmax.f32 %v10361_v58, 0.0  ;;  %v5991_v37 = vand.u32 4294901760, %v5990_v13  ;;  %v14882_v56 = vand.u32 4294901760, %v13716_v23 }
 0x5c7   : > { %15228 = vst [vmem:[#allocation32_spill] sm:$0xff] %v13723_v18  ;;  %v13734_v63 = vsub.f32 %v5670_v24, %v13723_v18  ;;  %v5571_v16 = vmax.f32 %v10362_v27, 0.0  ;;  %v6001_v62 = vand.u32 4294901760, %v6000_v5  ;;  %v14883_v57 = vand.u32 4294901760, %v13712_v17 }
 0x5c8   : > { %15230 = vst [vmem:[#allocation31_spill] sm:$0xff] %v13730_v1  ;;  %v13738_v28 = vsub.f32 %v5667_v60, %v13730_v1  ;;  %v5676_v49 = vsel %vm15231_vm9, %v5572_v25, 0  ;;  %9863 = vmatprep.mubr.f32.mxu0 %v5991_v37  ;;  %v6010_v50 = vsub.f32 %v13716_v23, %v14882_v56  ;;  %vm15317_vm9 = vmmov %vm15056_vm0 }
 0x5c9   : > { %v13744_v58 = vand.u32 4294901760, %v5676_v49  ;;  %v5673_v13 = vsel %vm15233_vm2, %v5571_v16, 0  ;;  %9864 = vmatmul.mubr.f32.gmra.mrb[56].mxu0 %v6001_v62  ;;  %v6020_v24 = vsub.f32 %v13712_v17, %v14883_v57  ;;  %v14887_v27 = vand.u32 4294901760, %v13734_v63  ;;  %vm15318_vm2 = vmmov %vm15056_vm0 }
 0x5ca   : > { %v13751_v60 = vand.u32 4294901760, %v5673_v13  ;;  %v6011_v5 = vand.u32 4294901760, %v6010_v50  ;;  %v14890_v25 = vand.u32 4294901760, %v13738_v28 }
 0x5cb   : > { %15232 = vst [vmem:[#allocation34_spill] sm:$0xff] %v13744_v58  ;;  %v13755_v37 = vsub.f32 %v5676_v49, %v13744_v58  ;;  %v6021_v56 = vand.u32 4294901760, %v6020_v24  ;;  %v6040_v16 = vsub.f32 %v13734_v63, %v14887_v27 }
 0x5cc   : > { %15234 = vst [vmem:[#allocation33_spill] sm:$0xff] %v13751_v60  ;;  %v13761_v62 = vsub.f32 %v5673_v13, %v13751_v60  ;;  %9866 = vmatprep.mubr.f32.mxu0 %v6011_v5  ;;  %v6030_v57 = vsub.f32 %v13738_v28, %v14890_v25  ;;  %v15251_v25 = vld [vmem:[#allocation4_spill] sm:$0xff] }
 0x5cd   : > { %9867 = vmatmul.mubr.f32.gmra.mrb[58].mxu0 %v6021_v56  ;;  %v14888_v50 = vand.u32 4294901760, %v13755_v37  ;;  %v6041_v17 = vand.u32 4294901760, %v6040_v16  ;;  %v15238_v56 = vld [vmem:[#allocation18_spill] sm:$0xff] }
 0x5ce   : > { %v6031_v35 = vand.u32 4294901760, %v6030_v57  ;;  %v14889_v49 = vand.u32 4294901760, %v13761_v62  ;;  %v15241_v57 = vld [vmem:[#allocation20_spill] sm:$0xff]  ;;  %v15243_v16 = vld [vmem:[#allocation22_spill] sm:$0xff] }
 0x5cf   : > { %v6060_v24 = vsub.f32 %v13755_v37, %v14888_v50  ;;  %v15249_v50 = vld [vmem:[#allocation2_spill] sm:$0xff] }
 0x5d0   : > { %9869 = vmatprep.mubr.f32.mxu0 %v6031_v35  ;;  %v6050_v13 = vsub.f32 %v13761_v62, %v14889_v49  ;;  %v15237_v35 = vld [vmem:[#allocation10_spill] sm:$0xff]  ;;  %v15250_v49 = vld [vmem:[#allocation28_spill] sm:$0xff] }
 0x5d1   : > { %9870 = vmatmul.mubr.f32.gmra.mrb[60].mxu0 %v6041_v17  ;;  %v6061_v27 = vand.u32 4294901760, %v6060_v24  ;;  %v15244_v24 = vld [vmem:[#allocation19_spill] sm:$0xff] }
 0x5d2   : > { %v6051_v5 = vand.u32 4294901760, %v6050_v13  ;;  %v15245_v13 = vld [vmem:[#allocation24_spill] sm:$0xff] }
 0x5d4   : > { %9872 = vmatprep.mubr.f32.mxu0 %v6051_v5  ;;  %v15246_v5 = vld [vmem:[#allocation21_spill] sm:$0xff] }
 0x5d5   : > { %9873 = vmatmul.mubr.f32.gmra.mrb[62].mxu0 %v6061_v27  ;;  %v15242_v27 = vld [vmem:[#allocation17_spill] sm:$0xff] }
 0x5d6   : > { %9883 = vmatprep.mubr.f32.mxu0 %v13428_v32 }
 0x5d9   : > { %9884 = vmatmul.mubr.f32.vlgmr.msra.gmra.mrb[32].mxu0 %v13424_v9 }
 0x5da   : > { %10270 = vmatpush3.bf16.msra.mxu0 %v13391_v29  ;;  %9886 = vmatprep.mubr.f32.mxu0 %v13443_v21  ;;  %v15235_v29 = vand.u32 4294901760, %v13371_v55  ;;  %v15239_v55 = vld [vmem:[#allocation13_spill] sm:$0xff] }
 0x5db   : > { %10272 = vmatprep.subr.bf16.mxu0 %v13405_v33 }
 0x5dd   : > { %9887 = vmatmul.mubr.f32.gmra.mrb[34].mxu0 %v13439_v2 }
 0x5de   : > { %9889 = vmatprep.mubr.f32.mxu0 %v13464_v47  ;;  %10274 = vmatpush3.bf16.msra.mxu0 %v13405_v33  ;;  %v15236_v33 = vand.u32 4294901760, %v13376_v59  ;;  %v15240_v59 = vld [vmem:[#allocation11_spill] sm:$0xff] }
 0x5df   : > { %10276 = vmatprep.subr.bf16.mxu0 %v13290_v39 }
 0x5e0   : > { %v10283_v17 = vpack.c.bf16 %v15236_v33, %v15235_v29  ;;  %v15247_v29 = vld [vmem:[#allocation25_spill] sm:$0xff]  ;;  %v15248_v33 = vld [vmem:[#allocation26_spill] sm:$0xff] }
 0x5e1   : > { %9890 = vmatmul.mubr.f32.gmra.mrb[36].mxu0 %v13460_v7 }
 0x5e2   : > { %9892 = vmatprep.mubr.f32.mxu0 %v13486_v4 }
 0x5e5   : > { %9893 = vmatmul.mubr.f32.gmra.mrb[38].mxu0 %v13479_v12 }
 0x5e6   : > { %9895 = vmatprep.mubr.f32.mxu0 %v13509_v10 }
 0x5e9   : > { %9896 = vmatmul.mubr.f32.gmra.mrb[40].mxu0 %v13502_v43 }
 0x5ea   : > { %9898 = vmatprep.mubr.f32.mxu0 %v13532_v54 }
 0x5ed   : > { %9899 = vmatmul.mubr.f32.gmra.mrb[42].mxu0 %v13525_v51 }
 0x5ee   : > { %9901 = vmatprep.mubr.f32.mxu0 %v13554_v19 }
 0x5f1   : > { %9902 = vmatmul.mubr.f32.gmra.mrb[44].mxu0 %v13547_v26 }
 0x5f2   : > { %9904 = vmatprep.mubr.f32.mxu0 %v13576_v31 }
 0x5f5   : > { %9905 = vmatmul.mubr.f32.gmra.mrb[46].mxu0 %v13569_v34 }
 0x5f6   : > { %9907 = vmatprep.mubr.f32.mxu0 %v13598_v40 }
 0x5f9   : > { %9908 = vmatmul.mubr.f32.gmra.mrb[48].mxu0 %v13591_v36 }
 0x5fa   : > { %9910 = vmatprep.mubr.f32.mxu0 %v13620_v20 }
 0x5fd   : > { %9911 = vmatmul.mubr.f32.gmra.mrb[50].mxu0 %v13613_v3  ;;  %v15263_v3 = vand.u32 4294901760, %v13472_v30 }
 0x5fe   : > { %9913 = vmatprep.mubr.f32.mxu0 %v13642_v53  ;;  %v15262_v53 = vand.u32 4294901760, %v13450_v38 }
 0x601   : > { %9914 = vmatmul.mubr.f32.gmra.mrb[52].mxu0 %v13635_v46  ;;  %v15261_v46 = vand.u32 4294901760, %v13453_v6 }
 0x602   : > { %9916 = vmatprep.mubr.f32.mxu0 %v13664_v8  ;;  %v15260_v8 = vand.u32 4294901760, %v13431_v11 }
 0x605   : > { %9917 = vmatmul.mubr.f32.gmra.mrb[54].mxu0 %v13657_v42 }
 0x606   : > { %9919 = vmatprep.mubr.f32.mxu0 %v13686_v15 }
 0x609   : > { %9920 = vmatmul.mubr.f32.gmra.mrb[56].mxu0 %v13679_v61  ;;  %v15258_v61 = vld [vmem:[#allocation15_spill] sm:$0xff] }
 0x60a   : > { %9922 = vmatprep.mubr.f32.mxu0 %v13708_v22  ;;  %v15259_v15 = vand.u32 4294901760, %v15258_v61  ;;  %v15277_v61 = vand.u32 4294901760, %v15247_v29 }
 0x60d   : > { %9923 = vmatmul.mubr.f32.gmra.mrb[58].mxu0 %v13701_v41  ;;  %v15256_v41 = vld [vmem:[#allocation16_spill] sm:$0xff] }
 0x60e   : > { %9925 = vmatprep.mubr.f32.mxu0 %v13730_v1  ;;  %v15255_v1 = vand.u32 4294901760, %v13434_v14  ;;  %v15257_v22 = vand.u32 4294901760, %v15256_v41  ;;  %v15279_v41 = vand.u32 4294901760, %v15249_v50 }
 0x610   : > { %v10287_v42 = vpack.c.bf16 %v15259_v15, %v15257_v22  ;;  %v15278_v15 = vand.u32 4294901760, %v15248_v33  ;;  %v15280_v22 = vand.u32 4294901760, %v15250_v49 }
 0x611   : > { %9926 = vmatmul.mubr.f32.gmra.mrb[60].mxu0 %v13723_v18  ;;  %v15254_v18 = vld [vmem:[#allocation9_spill] sm:$0xff] }
 0x612   : > { %9928 = vmatprep.mubr.f32.mxu0 %v13751_v60  ;;  %v15253_v60 = vld [vmem:[#allocation8_spill] sm:$0xff] }
 0x615   : > { %9929 = vmatmul.mubr.f32.gmra.mrb[62].mxu0 %v13744_v58  ;;  %v15252_v58 = vld [vmem:[#allocation14_spill] sm:$0xff] }
 0x616   : > { %9939 = vmatprep.mubr.f32.mxu0 %v13434_v14  ;;  %v15264_v14 = vand.u32 4294901760, %v13468_v48 }
 0x619   : > { %9940 = vmatmul.mubr.f32.vlgmr.msra.gmra.mrb[32].mxu0 %v13431_v11  ;;  %v15265_v11 = vand.u32 4294901760, %v13495_v52 }
 0x61a   : > { %10278 = vmatpush3.bf16.msra.mxu0 %v13290_v39  ;;  %9942 = vmatprep.mubr.f32.mxu0 %v13453_v6  ;;  %v15267_v6 = vand.u32 4294901760, %v15237_v35 }
 0x61b   : > { %10280 = vmatprep.subr.bf16.mxu0 %v13297_v45 }
 0x61d   : > { %9943 = vmatmul.mubr.f32.gmra.mrb[34].mxu0 %v13450_v38  ;;  %v15268_v38 = vand.u32 4294901760, %v15238_v56 }
 0x61e   : > { %9945 = vmatprep.mubr.f32.mxu0 %v13472_v30  ;;  %10282 = vmatpush3.bf16.msra.mxu0 %v13297_v45  ;;  %v15269_v30 = vand.u32 4294901760, %v15239_v55 }
 0x61f   : > { %10284 = vmatprep.subr.bf16.mxu0 %v10283_v17 }
 0x621   : > { %9946 = vmatmul.mubr.f32.gmra.mrb[36].mxu0 %v13468_v48  ;;  %v15271_v48 = vand.u32 4294901760, %v15241_v57 }
 0x622   : > { %9948 = vmatprep.mubr.f32.mxu0 %v13495_v52  ;;  %v15272_v52 = vand.u32 4294901760, %v15242_v27 }
 0x625   : > { %9949 = vmatmul.mubr.f32.gmra.mrb[38].mxu0 %v13491_v44 }
 0x626   : > { %9951 = vmatprep.mubr.f32.mxu0 %v15237_v35  ;;  %v15283_v35 = vand.u32 4294901760, %v15253_v60 }
 0x629   : > { %9952 = vmatmul.mubr.f32.gmra.mrb[40].mxu0 %v15238_v56  ;;  %v15284_v56 = vand.u32 4294901760, %v13690_v0 }
 0x62a   : > { %9954 = vmatprep.mubr.f32.mxu0 %v15239_v55  ;;  %v15285_v55 = vand.u32 4294901760, %v13716_v23 }
 0x62d   : > { %9955 = vmatmul.mubr.f32.gmra.mrb[42].mxu0 %v15240_v59 }
 0x62e   : > { %9957 = vmatprep.mubr.f32.mxu0 %v15241_v57  ;;  %v7998_v57 = vld [vmem:[%s13914_s27 + $0x58] sm:$0xff] }
 0x631   : > { %9958 = vmatmul.mubr.f32.gmra.mrb[44].mxu0 %v15242_v27  ;;  %v8000_v27 = vld [vmem:[%s13914_s27 + $0x68] sm:$0xff] }
 0x632   : > { %9960 = vmatprep.mubr.f32.mxu0 %v15243_v16 }
 0x635   : > { %9961 = vmatmul.mubr.f32.gmra.mrb[46].mxu0 %v15244_v24 }
 0x636   : > { %9963 = vmatprep.mubr.f32.mxu0 %v15245_v13 }
 0x639   : > { %9964 = vmatmul.mubr.f32.gmra.mrb[48].mxu0 %v15246_v5 }
 0x63a   : > { %9966 = vmatprep.mubr.f32.mxu0 %v15247_v29  ;;  %v8006_v29 = vld [vmem:[%s13914_s27 + $0x98] sm:$0xff] }
 0x63d   : > { %9967 = vmatmul.mubr.f32.gmra.mrb[50].mxu0 %v15248_v33  ;;  %v7999_v33 = vld [vmem:[%s13914_s27 + $0x60] sm:$0xff] }
 0x63e   : > { %9969 = vmatprep.mubr.f32.mxu0 %v15249_v50  ;;  %v7989_v50 = vld [vmem:[%s13914_s27 + $0x10] sm:$0xff] }
 0x641   : > { %9970 = vmatmul.mubr.f32.gmra.mrb[52].mxu0 %v15250_v49  ;;  %v15290_v49 = vand.u32 4294901760, %v13755_v37 }
 0x642   : > { %9972 = vmatprep.mubr.f32.mxu0 %v15251_v25 }
 0x645   : > { %9973 = vmatmul.mubr.f32.gmra.mrb[54].mxu0 %v15252_v58 }
 0x646   : > { %9975 = vmatprep.mubr.f32.mxu0 %v15253_v60  ;;  %v15288_v60 = vand.u32 4294901760, %v13734_v63 }
 0x649   : > { %9976 = vmatmul.mubr.f32.gmra.mrb[56].mxu0 %v13690_v0  ;;  %v7988_v0 = vld [vmem:[%s13914_s27 + $0x8] sm:$0xff] }
 0x64a   : > { %9978 = vmatprep.mubr.f32.mxu0 %v13716_v23  ;;  %v11048_v23 = vmov 0  }
 0x64b   : > { %10951 = vset.pattern.permute.xlu1 %v11048_v23  ;;  %10950 = vset.pattern.permute.xlu0 %v11048_v23 }
 0x64c   : > { %8026 = vperm.xlu1 %10951, %v7988_v0  }
 0x64d   : > { %9979 = vmatmul.mubr.f32.gmra.mrb[58].mxu0 %v15254_v18 }
 0x64e   : > { %9981 = vmatprep.mubr.f32.mxu0 %v13738_v28 }
 0x650   : > { %8031 = vperm.xlu1 %10951, %v7989_v50  }
 0x651   : > { %9982 = vmatmul.mubr.f32.gmra.mrb[60].mxu0 %v13734_v63  ;;  %v7991_v63 = vld [vmem:[%s13914_s27 + $0x20] sm:$0xff] }
 0x652   : > { %9984 = vmatprep.mubr.f32.mxu0 %v13761_v62 }
 0x655   : > { %9985 = vmatmul.mubr.f32.gmra.mrb[62].mxu0 %v13755_v37  ;;  %v7992_v37 = vld [vmem:[%s13914_s27 + $0x28] sm:$0xff] }
 0x656   : > { %9995 = vmatprep.mubr.f32.mxu0 %v15255_v1  ;;  %v15281_v1 = vand.u32 4294901760, %v15251_v25  ;;  %v15286_v25 = vand.u32 4294901760, %v15254_v18  ;;  %v15289_v18 = vand.u32 4294901760, %v13761_v62  ;;  %v7996_v62 = vld [vmem:[%s13914_s27 + $0x48] sm:$0xff] }
 0x659   : > { %9996 = vmatmul.mubr.f32.vlgmr.msra.gmra.mrb[32].mxu0 %v15260_v8  ;;  %v15266_v8 = vand.u32 4294901760, %v13491_v44  ;;  %v15273_v44 = vand.u32 4294901760, %v15243_v16  ;;  %v7994_v16 = vld [vmem:[%s13914_s27 + $0x38] sm:$0xff] }
 0x65a   : > { %10286 = vmatpush3.bf16.msra.mxu0 %v10283_v17  ;;  %9998 = vmatprep.mubr.f32.mxu0 %v15261_v46  ;;  %v15274_v46 = vand.u32 4294901760, %v15244_v24  ;;  %v15282_v17 = vand.u32 4294901760, %v15252_v58  ;;  %v15287_v58 = vand.u32 4294901760, %v13738_v28  ;;  %v7990_v28 = vld [vmem:[%s13914_s27 + $0x18] sm:$0xff]  ;;  %v7995_v24 = vld [vmem:[%s13914_s27 + $0x40] sm:$0xff] }
 0x65b   : > { %10288 = vmatprep.subr.bf16.mxu0 %v10287_v42  ;;  %8036 = vperm.xlu1 %10951, %v7990_v28  }
 0x65d   : > { %9999 = vmatmul.mubr.f32.gmra.mrb[34].mxu0 %v15262_v53  ;;  %v15275_v53 = vand.u32 4294901760, %v15245_v13  ;;  %v8004_v13 = vld [vmem:[%s13914_s27 + $0x88] sm:$0xff] }
 0x65e   : > { %10001 = vmatprep.mubr.f32.mxu0 %v15263_v3  ;;  %10290 = vmatpush3.bf16.msra.mxu0 %v10287_v42  ;;  %v15270_v3 = vand.u32 4294901760, %v15240_v59  ;;  %v15276_v42 = vand.u32 4294901760, %v15246_v5  ;;  %v7987_v59 = vld [vmem:[%s13914_s27] sm:$0xff]  ;;  %v7997_v5 = vld [vmem:[%s13914_s27 + $0x50] sm:$0xff] }
 0x65f   : > { %10292 = vmatprep.subr.bf16.mxu0 %v13290_v39  ;;  %8021 = vperm.xlu0 %10950, %v7987_v59  }
 0x660   : > { %8041 = vperm.xlu1 %10951, %v7991_v63  }
 0x661   : > { %10002 = vmatmul.mubr.f32.gmra.mrb[36].mxu0 %v15264_v14  ;;  %v8008_v14 = vld [vmem:[%s13914_s27 + $0xa8] sm:$0xff] }
 0x662   : > { %10004 = vmatprep.mubr.f32.mxu0 %v15265_v11  ;;  %v8001_v11 = vld [vmem:[%s13914_s27 + $0x70] sm:$0xff] }
 0x663   : > { %8066 = vperm.xlu0 %10950, %v7996_v62  }
 0x664   : > { %8046 = vperm.xlu1 %10951, %v7992_v37  }
 0x665   : > { %10005 = vmatmul.mubr.f32.gmra.mrb[38].mxu0 %v15266_v8  ;;  %v8010_v8 = vld [vmem:[%s13914_s27 + $0xb8] sm:$0xff] }
 0x666   : > { %10007 = vmatprep.mubr.f32.mxu0 %v15267_v6  ;;  %v8003_v6 = vld [vmem:[%s13914_s27 + $0x80] sm:$0xff] }
 0x667   : > { %8076 = vperm.xlu0 %10950, %v7998_v57  }
 0x669   : > { %10008 = vmatmul.mubr.f32.gmra.mrb[40].mxu0 %v15268_v38  ;;  %v8012_v38 = vld [vmem:[%s13914_s27 + $0xc8] sm:$0xff] }
 0x66a   : > { %10010 = vmatprep.mubr.f32.mxu0 %v15269_v30  ;;  %v15291_v30 = vld [vmem:[#allocation23_spill] sm:$0xff] }
 0x66b   : > { %8086 = vperm.xlu0 %10950, %v8000_v27  }
 0x66d   : > { %10011 = vmatmul.mubr.f32.gmra.mrb[42].mxu0 %v15270_v3  ;;  %v8005_v3 = vld [vmem:[%s13914_s27 + $0x90] sm:$0xff] }
 0x66e   : > { %10013 = vmatprep.mubr.f32.mxu0 %v15271_v48  ;;  %v15292_v48 = vld [vmem:[#allocation27_spill] sm:$0xff] }
 0x671   : > { %10014 = vmatmul.mubr.f32.gmra.mrb[44].mxu0 %v15272_v52  ;;  %v8014_v52 = vld [vmem:[%s13914_s27 + $0xd8] sm:$0xff] }
 0x672   : > { %10016 = vmatprep.mubr.f32.mxu0 %v15273_v44  ;;  %v15293_v44 = vld [vmem:[#allocation29_spill] sm:$0xff] }
 0x675   : > { %10017 = vmatmul.mubr.f32.gmra.mrb[46].mxu0 %v15274_v46  ;;  %v8007_v46 = vld [vmem:[%s13914_s27 + $0xa0] sm:$0xff] }
 0x676   : > { %10019 = vmatprep.mubr.f32.mxu0 %v15275_v53  ;;  %v15294_v53 = vld [vmem:[#allocation12_spill] sm:$0xff] }
 0x679   : > { %10020 = vmatmul.mubr.f32.gmra.mrb[48].mxu0 %v15276_v42  ;;  %v15295_v42 = vld [vmem:[#allocation3_spill] sm:$0xff] }
 0x67a   : > { %10022 = vmatprep.mubr.f32.mxu0 %v15277_v61  ;;  %v8009_v61 = vld [vmem:[%s13914_s27 + $0xb0] sm:$0xff] }
 0x67d   : > { %10023 = vmatmul.mubr.f32.gmra.mrb[50].mxu0 %v15278_v15  ;;  %v15296_v15 = vld [vmem:[#allocation5_spill] sm:$0xff] }
 0x67e   : > { %10025 = vmatprep.mubr.f32.mxu0 %v15279_v41  ;;  %v15297_v41 = vld [vmem:[#allocation6_spill] sm:$0xff] }
 0x681   : > { %10026 = vmatmul.mubr.f32.gmra.mrb[52].mxu0 %v15280_v22  ;;  %v8011_v22 = vld [vmem:[%s13914_s27 + $0xc0] sm:$0xff] }
 0x682   : > { %10028 = vmatprep.mubr.f32.mxu0 %v15281_v1  ;;  %v15298_v1 = vld [vmem:[#allocation30_spill] sm:$0xff] }
 0x685   : > { %10029 = vmatmul.mubr.f32.gmra.mrb[54].mxu0 %v15282_v17  ;;  %v15299_v17 = vld [vmem:[#allocation7_spill] sm:$0xff] }
 0x686   : > { %10031 = vmatprep.mubr.f32.mxu0 %v15283_v35  ;;  %v8013_v35 = vld [vmem:[%s13914_s27 + $0xd0] sm:$0xff] }
 0x689   : > { %10032 = vmatmul.mubr.f32.gmra.mrb[56].mxu0 %v15284_v56  ;;  %v15300_v56 = vld [vmem:[#allocation31_spill] sm:$0xff] }
 0x68a   : > { %10034 = vmatprep.mubr.f32.mxu0 %v15285_v55  ;;  %v15301_v55 = vld [vmem:[#allocation32_spill] sm:$0xff] }
 0x68d   : > { %10035 = vmatmul.mubr.f32.gmra.mrb[58].mxu0 %v15286_v25  ;;  %v15302_v25 = vld [vmem:[#allocation33_spill] sm:$0xff] }
 0x68e   : > { %10037 = vmatprep.mubr.f32.mxu0 %v15287_v58  ;;  %v15303_v58 = vld [vmem:[#allocation34_spill] sm:$0xff] }
 0x691   : > { %10038 = vmatmul.mubr.f32.gmra.mrb[60].mxu0 %v15288_v60 }
 0x692   : > { %10040 = vmatprep.mubr.f32.mxu0 %v15289_v18 }
 0x695   : > { %10041 = vmatmul.mubr.f32.gmra.mrb[62].mxu0 %v15290_v49 }
 0x696   : > { %10051 = vmatprep.mubr.f32.mxu0 %v13428_v32 }
 0x699   : > { %10052 = vmatmul.mubr.f32.vlgmr.msra.gmra.mrb[32].mxu0 %v13424_v9 }
 0x69a   : > { %10294 = vmatpush3.bf16.msra.mxu0 %v13290_v39  ;;  %10054 = vmatprep.mubr.f32.mxu0 %v13443_v21  ;;  %v7993_v39 = vld [vmem:[%s13914_s27 + $0x30] sm:$0xff] }
 0x69b   : > { %10296 = vmatprep.subr.bf16.mxu0 %v13297_v45  ;;  %8051 = vperm.xlu1 %10951, %v7993_v39  }
 0x69d   : > { %10055 = vmatmul.mubr.f32.gmra.mrb[34].mxu0 %v13439_v2 }
 0x69e   : > { %10057 = vmatprep.mubr.f32.mxu0 %v13464_v47  ;;  %10298 = vmatpush3.bf16.msra.mxu0 %v13297_v45  ;;  %v8002_v45 = vld [vmem:[%s13914_s27 + $0x78] sm:$0xff] }
 0x69f   : > { %8056 = vperm.xlu1 %10951, %v7994_v16   ;;  %8096 = vperm.xlu0 %10950, %v8002_v45  }
 0x6a1   : > { %10058 = vmatmul.mubr.f32.gmra.mrb[36].mxu0 %v13460_v7 }
 0x6a2   : > { %10060 = vmatprep.mubr.f32.mxu0 %v13486_v4 }
 0x6a3   : > { %8061 = vperm.xlu1 %10951, %v7995_v24   ;;  %8106 = vperm.xlu0 %10950, %v8004_v13  }
 0x6a5   : > { %10061 = vmatmul.mubr.f32.gmra.mrb[38].mxu0 %v13479_v12 }
 0x6a6   : > { %10063 = vmatprep.mubr.f32.mxu0 %v13509_v10 }
 0x6a7   : > { %8071 = vperm.xlu1 %10951, %v7997_v5   ;;  %8116 = vperm.xlu0 %10950, %v8006_v29  }
 0x6a9   : > { %10064 = vmatmul.mubr.f32.gmra.mrb[40].mxu0 %v13502_v43 }
 0x6aa   : > { %10066 = vmatprep.mubr.f32.mxu0 %v13532_v54 }
 0x6ab   : > { %8081 = vperm.xlu1 %10951, %v7999_v33   ;;  %8126 = vperm.xlu0 %10950, %v8008_v14  }
 0x6ad   : > { %10067 = vmatmul.mubr.f32.gmra.mrb[42].mxu0 %v13525_v51 }
 0x6ae   : > { %10069 = vmatprep.mubr.f32.mxu0 %v13554_v19 }
 0x6af   : > { %8091 = vperm.xlu1 %10951, %v8001_v11   ;;  %8136 = vperm.xlu0 %10950, %v8010_v8  }
 0x6b1   : > { %10070 = vmatmul.mubr.f32.gmra.mrb[44].mxu0 %v13547_v26 }
 0x6b2   : > { %10072 = vmatprep.mubr.f32.mxu0 %v13576_v31 }
 0x6b3   : > { %8101 = vperm.xlu1 %10951, %v8003_v6   ;;  %8146 = vperm.xlu0 %10950, %v8012_v38  }
 0x6b5   : > { %10073 = vmatmul.mubr.f32.gmra.mrb[46].mxu0 %v13569_v34 }
 0x6b6   : > { %10075 = vmatprep.mubr.f32.mxu0 %v13598_v40 }
 0x6b7   : > { %8111 = vperm.xlu1 %10951, %v8005_v3   ;;  %8156 = vperm.xlu0 %10950, %v8014_v52  }
 0x6b9   : > { %10076 = vmatmul.mubr.f32.gmra.mrb[48].mxu0 %v13591_v36 }
 0x6ba   : > { %10078 = vmatprep.mubr.f32.mxu0 %v13620_v20 }
 0x6bb   : > { %8121 = vperm.xlu1 %10951, %v8007_v46  }
 0x6bd   : > { %10079 = vmatmul.mubr.f32.gmra.mrb[50].mxu0 %v15291_v30 }
 0x6be   : > { %10081 = vmatprep.mubr.f32.mxu0 %v15292_v48 }
 0x6bf   : > { %8131 = vperm.xlu1 %10951, %v8009_v61  }
 0x6c1   : > { %10082 = vmatmul.mubr.f32.gmra.mrb[52].mxu0 %v15293_v44 }
 0x6c2   : > { %10084 = vmatprep.mubr.f32.mxu0 %v15294_v53 }
 0x6c3   : > { %8141 = vperm.xlu1 %10951, %v8011_v22  }
 0x6c5   : > { %10085 = vmatmul.mubr.f32.gmra.mrb[54].mxu0 %v15295_v42 }
 0x6c6   : > { %10087 = vmatprep.mubr.f32.mxu0 %v15296_v15 }
 0x6c7   : > { %8151 = vperm.xlu1 %10951, %v8013_v35  }
 0x6c9   : > { %10088 = vmatmul.mubr.f32.gmra.mrb[56].mxu0 %v15297_v41 }
 0x6ca   : > { %10090 = vmatprep.mubr.f32.mxu0 %v15298_v1 }
 0x6cd   : > { %10091 = vmatmul.mubr.f32.gmra.mrb[58].mxu0 %v15299_v17 }
 0x6ce   : > { %10093 = vmatprep.mubr.f32.mxu0 %v15300_v56 }
 0x6d1   : > { %10094 = vmatmul.mubr.f32.gmra.mrb[60].mxu0 %v15301_v55 }
 0x6d2   : > { %10096 = vmatprep.mubr.f32.mxu0 %v15302_v25 }
 0x6d5   : > { %10097 = vmatmul.mubr.f32.gmra.mrb[62].mxu0 %v15303_v58 }
 0x6d6   : > { %10107 = vmatprep.mubr.f32.mxu0 %v13428_v32 }
 0x6d9   : > { %10108 = vmatmul.mubr.f32.vlgmr.msra.gmra.mrb[32].mxu0 %v13424_v9  ;;  %v14024_v9 = vld [vmem:[%s14667_s9 + $0x1] ss:$0 sm:$0xff] }
 0x6da   : > { %10110 = vmatprep.mubr.f32.mxu0 %v13443_v21 }
 0x6dd   : > { %10111 = vmatmul.mubr.f32.gmra.mrb[34].mxu0 %v13439_v2 }
 0x6de   : > { %10113 = vmatprep.mubr.f32.mxu0 %v13464_v47 }
 0x6e1   : > { %10114 = vmatmul.mubr.f32.gmra.mrb[36].mxu0 %v13460_v7 }
 0x6e2   : > { %10116 = vmatprep.mubr.f32.mxu0 %v13486_v4 }
 0x6e5   : > { %10117 = vmatmul.mubr.f32.gmra.mrb[38].mxu0 %v13479_v12 }
 0x6e6   : > { %10119 = vmatprep.mubr.f32.mxu0 %v13509_v10 }
 0x6e9   : > { %10120 = vmatmul.mubr.f32.gmra.mrb[40].mxu0 %v13502_v43 }
 0x6ea   : > { %10122 = vmatprep.mubr.f32.mxu0 %v13532_v54 }
 0x6ed   : > { %10123 = vmatmul.mubr.f32.gmra.mrb[42].mxu0 %v13525_v51 }
 0x6ee   : > { %10125 = vmatprep.mubr.f32.mxu0 %v13554_v19 }
 0x6f1   : > { %10126 = vmatmul.mubr.f32.gmra.mrb[44].mxu0 %v13547_v26 }
 0x6f2   : > { %10128 = vmatprep.mubr.f32.mxu0 %v13576_v31 }
 0x6f5   : > { %10129 = vmatmul.mubr.f32.gmra.mrb[46].mxu0 %v13569_v34 }
 0x6f6   : > { %10131 = vmatprep.mubr.f32.mxu0 %v13598_v40 }
 0x6f9   : > { %10132 = vmatmul.mubr.f32.gmra.mrb[48].mxu0 %v13591_v36 }
 0x6fa   : > { %10134 = vmatprep.mubr.f32.mxu0 %v13620_v20 }
 0x6fd   : > { %10135 = vmatmul.mubr.f32.gmra.mrb[50].mxu0 %v15291_v30 }
 0x6fe   : > { %10137 = vmatprep.mubr.f32.mxu0 %v15292_v48 }
 0x701   : > { %10138 = vmatmul.mubr.f32.gmra.mrb[52].mxu0 %v15293_v44 }
 0x702   : > { %10140 = vmatprep.mubr.f32.mxu0 %v15294_v53 }
 0x705   : > { %10141 = vmatmul.mubr.f32.gmra.mrb[54].mxu0 %v15295_v42 }
 0x706   : > { %10143 = vmatprep.mubr.f32.mxu0 %v15296_v15 }
 0x709   : > { %10144 = vmatmul.mubr.f32.gmra.mrb[56].mxu0 %v15297_v41 }
 0x70a   : > { %10146 = vmatprep.mubr.f32.mxu0 %v15298_v1 }
 0x70d   : > { %10147 = vmatmul.mubr.f32.gmra.mrb[58].mxu0 %v15299_v17 }
 0x70e   : > { %10149 = vmatprep.mubr.f32.mxu0 %v15300_v56 }
 0x711   : > { %10150 = vmatmul.mubr.f32.gmra.mrb[60].mxu0 %v15301_v55 }
 0x712   : > { %10152 = vmatprep.mubr.f32.mxu0 %v15302_v25 }
 0x715   : > { %10153 = vmatmul.mubr.f32.gmra.mrb[62].mxu0 %v15303_v58 }
 0x7ac   : > { %v10109_v32 = vpop.f32.mrb[32].mxu0 }
 0x7ad   : > { %v14027_v2 = vadd.f32 %v10109_v32, %v14024_v9  ;;  %v7306_v21 = vpop.f32.mrb[33].mxu0 }
 0x7ae   : > { %v14030_v7 = vadd.f32 %v14024_v9, %v7306_v21 }
 0x7af   : > { %v7499_v47 = vsel %vm15304_vm11, %v14027_v2, 0.0  ;;  %vm15319_vm11 = vmmov %vm15056_vm0 }
 0x7b0   : > { %7500 = vadd.xlane.f32.xlu1 %v7499_v47  ;;  %v10112_v12 = vpop.f32.mrb[34].mxu0  ;;  %v7496_v4 = vsel %vm15305_vm14, %v14030_v7, 0.0  ;;  %vm15320_vm14 = vmmov %vm15056_vm0 }
 0x7b1   : > { %v14037_v43 = vadd.f32 %v10112_v12, %v14024_v9  ;;  %v7318_v10 = vpop.f32.mrb[35].mxu0  ;;  %7497 = vadd.xlane.f32.xlu0 %v7496_v4  ;;  %v14134_v12 = vpop.permute.xlu1 %8026 }
 0x7b2   : > { %v14042_v54 = vadd.f32 %v14024_v9, %v7318_v10 }
 0x7b3   : > { %v7505_v51 = vsel %vm15306_vm15, %v14037_v43, 0.0  ;;  %vm15321_vm15 = vmmov %vm15056_vm0 }
 0x7b4   : > { %v10115_v26 = vpop.f32.mrb[36].mxu0  ;;  %v7502_v20 = vsel %vm15308_vm12, %v14042_v54, 0.0  ;;  %vm15323_vm12 = vmmov %vm15056_vm0 }
 0x7b5   : > { %v14045_v19 = vadd.f32 %v10115_v26, %v14024_v9  ;;  %v7330_v34 = vpop.f32.mrb[37].mxu0  ;;  %7506 = vadd.xlane.f32.xlu0 %v7505_v51 }
 0x7b6   : > { %v14050_v36 = vadd.f32 %v14024_v9, %v7330_v34 }
 0x7b7   : > { %v7511_v31 = vsel %vm15307_vm13, %v14045_v19, 0.0  ;;  %vm15322_vm13 = vmmov %vm15056_vm0 }
 0x7b8   : > { %7512 = vadd.xlane.f32.xlu1 %v7511_v31  ;;  %v10118_v40 = vpop.f32.mrb[38].mxu0  ;;  %v7508_v49 = vsel %vm15310_vm10, %v14050_v36, 0.0  ;;  %vm15325_vm10 = vmmov %vm15056_vm0 }
 0x7b9   : > { %v14055_v0 = vadd.f32 %v10118_v40, %v14024_v9  ;;  %v7342_v23 = vpop.f32.mrb[39].mxu0  ;;  %7503 = vadd.xlane.f32.xlu0 %v7502_v20 }
 0x7ba   : > { %v14060_v18 = vadd.f32 %v14024_v9, %v7342_v23  ;;  %v14149_v23 = vpop.permute.xlu1 %8031 }
 0x7bb   : > { %v7517_v60 = vsel %vm15309_vm8, %v14055_v0, 0.0  ;;  %vm15324_vm8 = vmmov %vm15056_vm0 }
 0x7bc   : > { %7518 = vadd.xlane.f32.xlu1 %v7517_v60  ;;  %v10121_v50 = vpop.f32.mrb[40].mxu0  ;;  %v7514_v57 = vsel %vm15056_vm0, %v14060_v18, 0.0 }
 0x7bd   : > { %v14065_v28 = vadd.f32 %v10121_v50, %v14024_v9  ;;  %v7354_v59 = vpop.f32.mrb[41].mxu0  ;;  %7509 = vadd.xlane.f32.xlu0 %v7508_v49 }
 0x7be   : > { %v14070_v62 = vadd.f32 %v14024_v9, %v7354_v59 }
 0x7bf   : > { %v7523_v63 = vsel %vm15311_vm3, %v14065_v28, 0.0  ;;  %vm15326_vm3 = vmmov %vm15056_vm0 }
 0x7c0   : > { %7524 = vadd.xlane.f32.xlu1 %v7523_v63  ;;  %v10124_v37 = vpop.f32.mrb[42].mxu0  ;;  %v7520_v13 = vsel %vm15313_vm1, %v14070_v62, 0.0  ;;  %vm15328_vm1 = vmmov %vm15056_vm0 }
 0x7c1   : > { %v14075_v39 = vadd.f32 %v10124_v37, %v14024_v9  ;;  %v7366_v27 = vpop.f32.mrb[43].mxu0  ;;  %7515 = vadd.xlane.f32.xlu0 %v7514_v57 }
 0x7c2   : > { %v14080_v45 = vadd.f32 %v14024_v9, %v7366_v27 }
 0x7c3   : > { %v7529_v16 = vsel %vm15312_vm5, %v14075_v39, 0.0  ;;  %vm15327_vm5 = vmmov %vm15056_vm0 }
 0x7c4   : > { %7530 = vadd.xlane.f32.xlu1 %v7529_v16  ;;  %v10127_v24 = vpop.f32.mrb[44].mxu0  ;;  %v7526_v8 = vsel %vm15315_vm6, %v14080_v45, 0.0  ;;  %vm15330_vm6 = vmmov %vm15056_vm0 }
 0x7c5   : > { %v14085_v5 = vadd.f32 %v10127_v24, %v14024_v9  ;;  %v7378_v29 = vpop.f32.mrb[45].mxu0  ;;  %7521 = vadd.xlane.f32.xlu0 %v7520_v13  ;;  %v14168_v13 = vpop.permute.xlu1 %8036 }
 0x7c6   : > { %v14090_v14 = vadd.f32 %v14024_v9, %v7378_v29 }
 0x7c7   : > { %v7535_v33 = vsel %vm15314_vm4, %v14085_v5, 0.0  ;;  %vm15329_vm4 = vmmov %vm15056_vm0 }
 0x7c8   : > { %7536 = vadd.xlane.f32.xlu1 %v7535_v33  ;;  %v10130_v11 = vpop.f32.mrb[46].mxu0  ;;  %v7532_v52 = vsel %vm15317_vm9, %v14090_v14, 0.0  ;;  %vm15332_vm9 = vmmov %vm15056_vm0 }
 0x7c9   : > { %v14095_v6 = vadd.f32 %v10130_v11, %v14024_v9  ;;  %v7390_v38 = vpop.f32.mrb[47].mxu0  ;;  %7527 = vadd.xlane.f32.xlu0 %v7526_v8 }
 0x7ca   : > { %v14100_v3 = vadd.f32 %v14024_v9, %v7390_v38 }
 0x7cb   : > { %v7541_v30 = vsel %vm15316_vm7, %v14095_v6, 0.0  ;;  %vm15331_vm7 = vmmov %vm15056_vm0 }
 0x7cc   : > { %7542 = vadd.xlane.f32.xlu1 %v7541_v30  ;;  %v10133_v48 = vpop.f32.mrb[48].mxu0  ;;  %v7538_v15 = vsel %vm15319_vm11, %v14100_v3, 0.0  ;;  %vm15343_vm11 = vmmov %vm15056_vm0 }
 0x7cd   : > { %v14105_v44 = vadd.f32 %v10133_v48, %v14024_v9  ;;  %v7402_v46 = vpop.f32.mrb[49].mxu0  ;;  %7533 = vadd.xlane.f32.xlu0 %v7532_v52 }
 0x7ce   : > { %v14110_v42 = vadd.f32 %v14024_v9, %v7402_v46 }
 0x7cf   : > { %v7547_v53 = vsel %vm15318_vm2, %v14105_v44, 0.0  ;;  %vm15333_vm2 = vmmov %vm15056_vm0 }
 0x7d0   : > { %7548 = vadd.xlane.f32.xlu1 %v7547_v53  ;;  %v10136_v61 = vpop.f32.mrb[50].mxu0  ;;  %v7544_v56 = vsel %vm15321_vm15, %v14110_v42, 0.0  ;;  %v14186_v53 = vpop.permute.xlu1 %8041  ;;  %vm15345_vm15 = vmmov %vm15056_vm0 }
 0x7d1   : > { %v14115_v41 = vadd.f32 %v10136_v61, %v14024_v9  ;;  %v7414_v22 = vpop.f32.mrb[51].mxu0  ;;  %7539 = vadd.xlane.f32.xlu0 %v7538_v15 }
 0x7d2   : > { %v14120_v17 = vadd.f32 %v14024_v9, %v7414_v22 }
 0x7d3   : > { %v7553_v1 = vsel %vm15320_vm14, %v14115_v41, 0.0  ;;  %vm15344_vm14 = vmmov %vm15056_vm0 }
 0x7d4   : > { %7554 = vadd.xlane.f32.xlu1 %v7553_v1  ;;  %v10139_v35 = vpop.f32.mrb[52].mxu0  ;;  %v7550_v47 = vsel %vm15323_vm12, %v14120_v17, 0.0  ;;  %v14194_v1 = vpop.permute.xlu1 %8046  ;;  %vm15347_vm12 = vmmov %vm15056_vm0 }
 0x7d5   : > { %v14125_v55 = vadd.f32 %v10139_v35, %v14024_v9  ;;  %v7426_v25 = vpop.f32.mrb[53].mxu0  ;;  %7545 = vadd.xlane.f32.xlu0 %v7544_v56 }
 0x7d6   : > { %v14130_v32 = vadd.f32 %v14024_v9, %v7426_v25  ;;  %v14201_v25 = vpop.permute.xlu0 %8021 }
 0x7d7   : > { %v7559_v58 = vsel %vm15322_vm13, %v14125_v55, 0.0  ;;  %vm15346_vm13 = vmmov %vm15056_vm0 }
 0x7d8   : > { %7560 = vadd.xlane.f32.xlu1 %v7559_v58  ;;  %v10142_v21 = vpop.f32.mrb[54].mxu0  ;;  %v7556_v31 = vsel %vm15325_vm10, %v14130_v32, 0.0  ;;  %v14196_v35 = vpop.permute.xlu1 %8051  ;;  %vm15349_vm10 = vmmov %vm15056_vm0 }
 0x7d9   : > { %v14137_v4 = vadd.f32 %v10142_v21, %v14024_v9  ;;  %v7438_v10 = vpop.f32.mrb[55].mxu0  ;;  %7551 = vadd.xlane.f32.xlu0 %v7550_v47  ;;  %v8016_v47 = vld [vmem:[%s13914_s27 + $0xe8] sm:$0xff] }
 0x7da   : > { %v14142_v26 = vadd.f32 %v14024_v9, %v7438_v10  ;;  %v14205_v21 = vpop.permute.xlu0 %8066 }
 0x7db   : > { %v7565_v51 = vsel %vm15324_vm8, %v14137_v4, 0.0  ;;  %vm15348_vm8 = vmmov %vm15056_vm0 }
 0x7dc   : > { %7566 = vadd.xlane.f32.xlu1 %v7565_v51  ;;  %v10145_v34 = vpop.f32.mrb[56].mxu0  ;;  %v7562_v59 = vsel %vm15056_vm0, %v14142_v26, 0.0  ;;  %v14199_v56 = vpop.permute.xlu1 %8056 }
 0x7dd   : > { %v14147_v40 = vadd.f32 %v10145_v34, %v14024_v9  ;;  %v7450_v20 = vpop.f32.mrb[57].mxu0  ;;  %7557 = vadd.xlane.f32.xlu0 %v7556_v31 }
 0x7de   : > { %v14154_v50 = vadd.f32 %v14024_v9, %v7450_v20  ;;  %v14210_v51 = vpop.permute.xlu0 %8076 }
 0x7df   : > { %v7571_v60 = vsel %vm15326_vm3, %v14147_v40, 0.0  ;;  %vm15350_vm3 = vmmov %vm15056_vm0 }
 0x7e0   : > { %7572 = vadd.xlane.f32.xlu1 %v7571_v60  ;;  %v10148_v49 = vpop.f32.mrb[58].mxu0  ;;  %v7568_v24 = vsel %vm15328_vm1, %v14154_v50, 0.0  ;;  %v14203_v58 = vpop.permute.xlu1 %8061  ;;  %vm15352_vm1 = vmmov %vm15056_vm0 }
 0x7e1   : > { %v14159_v63 = vadd.f32 %v10148_v49, %v14024_v9  ;;  %v7462_v37 = vpop.f32.mrb[59].mxu0  ;;  %7563 = vadd.xlane.f32.xlu0 %v7562_v59 }
 0x7e2   : > { %v14164_v27 = vadd.f32 %v14024_v9, %v7462_v37  ;;  %v14214_v31 = vpop.permute.xlu0 %8086 }
 0x7e3   : > { %v7577_v57 = vsel %vm15327_vm5, %v14159_v63, 0.0  ;;  %vm15351_vm5 = vmmov %vm15056_vm0 }
 0x7e4   : > { %7578 = vadd.xlane.f32.xlu1 %v7577_v57  ;;  %v10151_v16 = vpop.f32.mrb[60].mxu0  ;;  %v7574_v30 = vsel %vm15330_vm6, %v14164_v27, 0.0  ;;  %v14208_v10 = vpop.permute.xlu1 %8071  ;;  %vm15354_vm6 = vmmov %vm15056_vm0 }
 0x7e5   : > { %v14171_v29 = vadd.f32 %v10151_v16, %v14024_v9  ;;  %v7474_v33 = vpop.f32.mrb[61].mxu0  ;;  %7569 = vadd.xlane.f32.xlu0 %v7568_v24 }
 0x7e6   : > { %v14176_v8 = vadd.f32 %v14024_v9, %v7474_v33  ;;  %v14218_v60 = vpop.permute.xlu0 %8096 }
 0x7e7   : > { %v7583_v11 = vsel %vm15329_vm4, %v14171_v29, 0.0  ;;  %vm15353_vm4 = vmmov %vm15056_vm0 }
 0x7e8   : > { %7584 = vadd.xlane.f32.xlu1 %v7583_v11  ;;  %v10154_v38 = vpop.f32.mrb[62].mxu0  ;;  %v7580_v15 = vsel %vm15332_vm9, %v14176_v8, 0.0  ;;  %v14212_v34 = vpop.permute.xlu1 %8081  ;;  %vm15356_vm9 = vmmov %vm15056_vm0 }
 0x7e9   : > { %v14181_v48 = vadd.f32 %v10154_v38, %v14024_v9  ;;  %v7486_v52 = vpop.f32.mrb[63].mxu0  ;;  %7575 = vadd.xlane.f32.xlu0 %v7574_v30 }
 0x7ea   : > { %v14184_v46 = vadd.f32 %v14024_v9, %v7486_v52  ;;  %v8015_v9 = vld [vmem:[%s13914_s27 + $0xe0] sm:$0xff]  ;;  %v14222_v59 = vpop.permute.xlu0 %8106 }
 0x7eb   : > { %v7589_v61 = vsel %vm15331_vm7, %v14181_v48, 0.0  ;;  %vm15355_vm7 = vmmov %vm15056_vm0 }
 0x7ec   : > { %7590 = vadd.xlane.f32.xlu1 %v7589_v61  ;;  %v7586_v22 = vsel %vm15333_vm2, %v14184_v46, 0.0  ;;  %v14216_v20 = vpop.permute.xlu1 %8091  ;;  %vm15357_vm2 = vmmov %vm15056_vm0 }
 0x7ed   : > { %7581 = vadd.xlane.f32.xlu0 %v7580_v15 }
 0x7ee   : > { %v14226_v57 = vpop.permute.xlu0 %8116 }
 0x7f0   : > { %v14220_v49 = vpop.permute.xlu1 %8101 }
 0x7f1   : > { %7587 = vadd.xlane.f32.xlu0 %v7586_v22 }
 0x7f2   : > { %v14230_v24 = vpop.permute.xlu0 %8126 }
 0x7f3   : > { %15336 = vst [vmem:[#allocation10_spill] sm:$0xff] %v14230_v24 }
 0x7f4   : > { %v14224_v37 = vpop.permute.xlu1 %8111 }
 0x7f5   : > { %15334 = vst [vmem:[#allocation36_spill] sm:$0xff] %v14224_v37 }
 0x7f6   : > { %v14234_v11 = vpop.permute.xlu0 %8136 }
 0x7f7   : > { %15338 = vst [vmem:[#allocation13_spill] sm:$0xff] %v14234_v11 }
 0x7f8   : > { %v14228_v16 = vpop.permute.xlu1 %8121 }
 0x7f9   : > { %15335 = vst [vmem:[#allocation35_spill] sm:$0xff] %v14228_v16 }
 0x7fa   : > { %v14238_v30 = vpop.permute.xlu0 %8146 }
 0x7fb   : > { %15340 = vst [vmem:[#allocation20_spill] sm:$0xff] %v14238_v30 }
 0x7fc   : > { %v14232_v33 = vpop.permute.xlu1 %8131 }
 0x7fd   : > { %8161 = vperm.xlu1 %10951, %v8015_v9   ;;  %15337 = vst [vmem:[#allocation18_spill] sm:$0xff] %v14232_v33 }
 0x7fe   : > { %v14242_v61 = vpop.permute.xlu0 %8156 }
 0x7ff   : > { %15342 = vst [vmem:[#allocation22_spill] sm:$0xff] %v14242_v61 }
 0x800   : > { %v14236_v38 = vpop.permute.xlu1 %8141 }
 0x801   : > { %15339 = vst [vmem:[#allocation11_spill] sm:$0xff] %v14236_v38 }
 0x804   : > { %v14240_v52 = vpop.permute.xlu1 %8151 }
 0x805   : > { %15341 = vst [vmem:[#allocation17_spill] sm:$0xff] %v14240_v52 }
 0x807   : > { %8166 = vperm.xlu0 %10950, %v8016_v47  }
 0x83d   : > { %v7501_v15 = vpop.xlane.xlu1 %7500 }
 0x83e   : > { %v7594_v22 = vmul.f32 0.03125, %v7501_v15  ;;  %v7498_v9 = vpop.xlane.xlu0 %7497 }
 0x83f   : > { %v7593_v47 = vmul.f32 0.03125, %v7498_v9 }
 0x840   : > { %v14245_v16 = vsub.f32 %v14027_v2, %v7594_v22 }
 0x841   : > { %v14248_v37 = vsub.f32 %v14030_v7, %v7593_v47 }
 0x842   : > { %v7507_v33 = vpop.xlane.xlu0 %7506  ;;  %v7658_v38 = vmul.f32 %v14245_v16, %v14245_v16 }
 0x843   : > { %v7596_v11 = vmul.f32 0.03125, %v7507_v33  ;;  %v7657_v52 = vmul.f32 %v14248_v37, %v14248_v37 }
 0x844   : > { %v7692_v61 = vsel %vm15343_vm11, %v7658_v38, 0.0  ;;  %vm15358_vm11 = vmmov %vm15056_vm0 }
 0x845   : > { %v14256_v15 = vsub.f32 %v14037_v43, %v7596_v11  ;;  %v7513_v9 = vpop.xlane.xlu1 %7512  ;;  %7693 = vadd.xlane.f32.xlu1 %v7692_v61  ;;  %v7689_v2 = vsel %vm15344_vm14, %v7657_v52, 0.0  ;;  %vm15359_vm14 = vmmov %vm15056_vm0 }
 0x846   : > { %v7598_v22 = vmul.f32 0.03125, %v7513_v9  ;;  %7690 = vadd.xlane.f32.xlu0 %v7689_v2  ;;  %v7504_v7 = vpop.xlane.xlu0 %7503 }
 0x847   : > { %v7595_v47 = vmul.f32 0.03125, %v7504_v7  ;;  %v7660_v30 = vmul.f32 %v14256_v15, %v14256_v15 }
 0x848   : > { %v14262_v33 = vsub.f32 %v14045_v19, %v7598_v22 }
 0x849   : > { %v14265_v24 = vsub.f32 %v14042_v54, %v7595_v47  ;;  %v7519_v38 = vpop.xlane.xlu1 %7518  ;;  %v7698_v43 = vsel %vm15345_vm15, %v7660_v30, 0.0  ;;  %vm15360_vm15 = vmmov %vm15056_vm0 }
 0x84a   : > { %v7600_v11 = vmul.f32 0.03125, %v7519_v38  ;;  %7699 = vadd.xlane.f32.xlu1 %v7698_v43  ;;  %v7510_v61 = vpop.xlane.xlu0 %7509  ;;  %v7662_v52 = vmul.f32 %v14262_v33, %v14262_v33 }
 0x84b   : > { %v7597_v9 = vmul.f32 0.03125, %v7510_v61  ;;  %v7659_v2 = vmul.f32 %v14265_v24, %v14265_v24 }
 0x84c   : > { %v14273_v7 = vsub.f32 %v14055_v0, %v7600_v11  ;;  %v7704_v19 = vsel %vm15346_vm13, %v7662_v52, 0.0  ;;  %vm15361_vm13 = vmmov %vm15056_vm0 }
 0x84d   : > { %v14277_v54 = vsub.f32 %v14050_v36, %v7597_v9  ;;  %v7525_v22 = vpop.xlane.xlu1 %7524  ;;  %v7695_v30 = vsel %vm15347_vm12, %v7659_v2, 0.0  ;;  %vm15362_vm12 = vmmov %vm15056_vm0 }
 0x84e   : > { %v7602_v47 = vmul.f32 0.03125, %v7525_v22  ;;  %7705 = vadd.xlane.f32.xlu1 %v7704_v19  ;;  %7696 = vadd.xlane.f32.xlu0 %v7695_v30  ;;  %v7516_v38 = vpop.xlane.xlu0 %7515  ;;  %v7664_v43 = vmul.f32 %v14273_v7, %v14273_v7 }
 0x84f   : > { %v7599_v61 = vmul.f32 0.03125, %v7516_v38  ;;  %v7661_v0 = vmul.f32 %v14277_v54, %v14277_v54 }
 0x850   : > { %v14285_v11 = vsub.f32 %v14065_v28, %v7602_v47  ;;  %v7710_v36 = vsel %vm15348_vm8, %v7664_v43, 0.0  ;;  %vm15363_vm8 = vmmov %vm15056_vm0 }
 0x851   : > { %v14289_v52 = vsub.f32 %v14060_v18, %v7599_v61  ;;  %v7531_v9 = vpop.xlane.xlu1 %7530  ;;  %v7701_v2 = vsel %vm15349_vm10, %v7661_v0, 0.0  ;;  %vm15364_vm10 = vmmov %vm15056_vm0 }
 0x852   : > { %v7604_v19 = vmul.f32 0.03125, %v7531_v9  ;;  %7711 = vadd.xlane.f32.xlu1 %v7710_v36  ;;  %7702 = vadd.xlane.f32.xlu0 %v7701_v2  ;;  %v7522_v22 = vpop.xlane.xlu0 %7521  ;;  %v7666_v30 = vmul.f32 %v14285_v11, %v14285_v11 }
 0x853   : > { %v7601_v38 = vmul.f32 0.03125, %v7522_v22  ;;  %v7663_v28 = vmul.f32 %v14289_v52, %v14289_v52 }
 0x854   : > { %v14297_v47 = vsub.f32 %v14075_v39, %v7604_v19  ;;  %v7716_v18 = vsel %vm15350_vm3, %v7666_v30, 0.0  ;;  %vm15365_vm3 = vmmov %vm15056_vm0 }
 0x855   : > { %v14301_v43 = vsub.f32 %v14070_v62, %v7601_v38  ;;  %v7537_v61 = vpop.xlane.xlu1 %7536  ;;  %v7707_v0 = vsel %vm15056_vm0, %v7663_v28, 0.0 }
 0x856   : > { %v7606_v36 = vmul.f32 0.03125, %v7537_v61  ;;  %7717 = vadd.xlane.f32.xlu1 %v7716_v18  ;;  %7708 = vadd.xlane.f32.xlu0 %v7707_v0  ;;  %v7528_v9 = vpop.xlane.xlu0 %7527  ;;  %v7668_v2 = vmul.f32 %v14297_v47, %v14297_v47 }
 0x857   : > { %v7603_v22 = vmul.f32 0.03125, %v7528_v9  ;;  %v7665_v39 = vmul.f32 %v14301_v43, %v14301_v43 }
 0x858   : > { %v14309_v19 = vsub.f32 %v14085_v5, %v7606_v36  ;;  %v7722_v62 = vsel %vm15351_vm5, %v7668_v2, 0.0  ;;  %vm15367_vm5 = vmmov %vm15056_vm0 }
 0x859   : > { %v14313_v30 = vsub.f32 %v14080_v45, %v7603_v22  ;;  %v7543_v38 = vpop.xlane.xlu1 %7542  ;;  %v7713_v28 = vsel %vm15352_vm1, %v7665_v39, 0.0  ;;  %vm15369_vm1 = vmmov %vm15056_vm0 }
 0x85a   : > { %v7608_v18 = vmul.f32 0.03125, %v7543_v38  ;;  %7723 = vadd.xlane.f32.xlu1 %v7722_v62  ;;  %7714 = vadd.xlane.f32.xlu0 %v7713_v28  ;;  %v7534_v61 = vpop.xlane.xlu0 %7533  ;;  %v7670_v0 = vmul.f32 %v14309_v19, %v14309_v19 }
 0x85b   : > { %v7605_v9 = vmul.f32 0.03125, %v7534_v61  ;;  %v7667_v5 = vmul.f32 %v14313_v30, %v14313_v30 }
 0x85c   : > { %v14321_v36 = vsub.f32 %v14095_v6, %v7608_v18  ;;  %v7728_v45 = vsel %vm15353_vm4, %v7670_v0, 0.0  ;;  %vm15371_vm4 = vmmov %vm15056_vm0 }
 0x85d   : > { %v14325_v2 = vsub.f32 %v14090_v14, %v7605_v9  ;;  %v7549_v22 = vpop.xlane.xlu1 %7548  ;;  %v7719_v39 = vsel %vm15354_vm6, %v7667_v5, 0.0  ;;  %vm15373_vm6 = vmmov %vm15056_vm0 }
 0x85e   : > { %v7610_v62 = vmul.f32 0.03125, %v7549_v22  ;;  %7729 = vadd.xlane.f32.xlu1 %v7728_v45  ;;  %7720 = vadd.xlane.f32.xlu0 %v7719_v39  ;;  %v7540_v38 = vpop.xlane.xlu0 %7539  ;;  %v7672_v28 = vmul.f32 %v14321_v36, %v14321_v36 }
 0x85f   : > { %v7607_v61 = vmul.f32 0.03125, %v7540_v38  ;;  %v7669_v6 = vmul.f32 %v14325_v2, %v14325_v2 }
 0x860   : > { %v14333_v18 = vsub.f32 %v14105_v44, %v7610_v62  ;;  %v7734_v14 = vsel %vm15355_vm7, %v7672_v28, 0.0  ;;  %vm15374_vm7 = vmmov %vm15056_vm0 }
 0x861   : > { %v14337_v0 = vsub.f32 %v14100_v3, %v7607_v61  ;;  %v7555_v9 = vpop.xlane.xlu1 %7554  ;;  %v7725_v5 = vsel %vm15356_vm9, %v7669_v6, 0.0  ;;  %vm15376_vm9 = vmmov %vm15056_vm0 }
 0x862   : > { %v7612_v45 = vmul.f32 0.03125, %v7555_v9  ;;  %7735 = vadd.xlane.f32.xlu1 %v7734_v14  ;;  %7726 = vadd.xlane.f32.xlu0 %v7725_v5  ;;  %v7546_v22 = vpop.xlane.xlu0 %7545  ;;  %v7674_v39 = vmul.f32 %v14333_v18, %v14333_v18 }
 0x863   : > { %v7609_v38 = vmul.f32 0.03125, %v7546_v22  ;;  %v7671_v44 = vmul.f32 %v14337_v0, %v14337_v0 }
 0x864   : > { %v14345_v62 = vsub.f32 %v14115_v41, %v7612_v45  ;;  %v7740_v3 = vsel %vm15357_vm2, %v7674_v39, 0.0  ;;  %vm15377_vm2 = vmmov %vm15056_vm0 }
 0x865   : > { %v14349_v28 = vsub.f32 %v14110_v42, %v7609_v38  ;;  %v7561_v61 = vpop.xlane.xlu1 %7560  ;;  %v7731_v6 = vsel %vm15358_vm11, %v7671_v44, 0.0  ;;  %vm15380_vm11 = vmmov %vm15056_vm0 }
 0x866   : > { %v7614_v14 = vmul.f32 0.03125, %v7561_v61  ;;  %7741 = vadd.xlane.f32.xlu1 %v7740_v3  ;;  %7732 = vadd.xlane.f32.xlu0 %v7731_v6  ;;  %v7552_v9 = vpop.xlane.xlu0 %7551  ;;  %v7676_v5 = vmul.f32 %v14345_v62, %v14345_v62 }
 0x867   : > { %v7611_v22 = vmul.f32 0.03125, %v7552_v9  ;;  %v7673_v41 = vmul.f32 %v14349_v28, %v14349_v28 }
 0x868   : > { %v14357_v45 = vsub.f32 %v14125_v55, %v7614_v14  ;;  %v7746_v42 = vsel %vm15359_vm14, %v7676_v5, 0.0  ;;  %vm15381_vm14 = vmmov %vm15056_vm0 }
 0x869   : > { %v14361_v39 = vsub.f32 %v14120_v17, %v7611_v22  ;;  %v7567_v38 = vpop.xlane.xlu1 %7566  ;;  %v7737_v44 = vsel %vm15360_vm15, %v7673_v41, 0.0  ;;  %vm15382_vm15 = vmmov %vm15056_vm0 }
 0x86a   : > { %v7616_v3 = vmul.f32 0.03125, %v7567_v38  ;;  %7747 = vadd.xlane.f32.xlu1 %v7746_v42  ;;  %7738 = vadd.xlane.f32.xlu0 %v7737_v44  ;;  %v7558_v61 = vpop.xlane.xlu0 %7557  ;;  %v7678_v6 = vmul.f32 %v14357_v45, %v14357_v45 }
 0x86b   : > { %v7613_v9 = vmul.f32 0.03125, %v7558_v61  ;;  %v7675_v55 = vmul.f32 %v14361_v39, %v14361_v39 }
 0x86c   : > { %v14369_v14 = vsub.f32 %v14137_v4, %v7616_v3  ;;  %v7752_v17 = vsel %vm15361_vm13, %v7678_v6, 0.0  ;;  %vm15383_vm13 = vmmov %vm15056_vm0 }
 0x86d   : > { %v14373_v5 = vsub.f32 %v14130_v32, %v7613_v9  ;;  %v7573_v22 = vpop.xlane.xlu1 %7572  ;;  %v7743_v41 = vsel %vm15362_vm12, %v7675_v55, 0.0  ;;  %vm15384_vm12 = vmmov %vm15056_vm0 }
 0x86e   : > { %v7618_v42 = vmul.f32 0.03125, %v7573_v22  ;;  %7753 = vadd.xlane.f32.xlu1 %v7752_v17  ;;  %7744 = vadd.xlane.f32.xlu0 %v7743_v41  ;;  %v7564_v38 = vpop.xlane.xlu0 %7563  ;;  %v7680_v44 = vmul.f32 %v14369_v14, %v14369_v14 }
 0x86f   : > { %v7615_v61 = vmul.f32 0.03125, %v7564_v38  ;;  %v7677_v4 = vmul.f32 %v14373_v5, %v14373_v5 }
 0x870   : > { %v14381_v3 = vsub.f32 %v14147_v40, %v7618_v42  ;;  %v7758_v32 = vsel %vm15363_vm8, %v7680_v44, 0.0  ;;  %vm15385_vm8 = vmmov %vm15056_vm0 }
 0x871   : > { %v14385_v6 = vsub.f32 %v14142_v26, %v7615_v61  ;;  %v7579_v9 = vpop.xlane.xlu1 %7578  ;;  %v7749_v55 = vsel %vm15364_vm10, %v7677_v4, 0.0  ;;  %vm15386_vm10 = vmmov %vm15056_vm0 }
 0x872   : > { %v7620_v17 = vmul.f32 0.03125, %v7579_v9  ;;  %7759 = vadd.xlane.f32.xlu1 %v7758_v32  ;;  %7750 = vadd.xlane.f32.xlu0 %v7749_v55  ;;  %v7570_v22 = vpop.xlane.xlu0 %7569  ;;  %v7682_v41 = vmul.f32 %v14381_v3, %v14381_v3 }
 0x873   : > { %v7617_v38 = vmul.f32 0.03125, %v7570_v22  ;;  %v7679_v40 = vmul.f32 %v14385_v6, %v14385_v6 }
 0x874   : > { %v14393_v42 = vsub.f32 %v14159_v63, %v7620_v17  ;;  %v7764_v26 = vsel %vm15365_vm3, %v7682_v41, 0.0  ;;  %vm15387_vm3 = vmmov %vm15056_vm0 }
 0x875   : > { %v14397_v44 = vsub.f32 %v14154_v50, %v7617_v38  ;;  %v7585_v61 = vpop.xlane.xlu1 %7584  ;;  %v7755_v4 = vsel %vm15056_vm0, %v7679_v40, 0.0 }
 0x876   : > { %v7622_v32 = vmul.f32 0.03125, %v7585_v61  ;;  %7765 = vadd.xlane.f32.xlu1 %v7764_v26  ;;  %7756 = vadd.xlane.f32.xlu0 %v7755_v4  ;;  %v7576_v9 = vpop.xlane.xlu0 %7575  ;;  %v7684_v55 = vmul.f32 %v14393_v42, %v14393_v42 }
 0x877   : > { %v7619_v22 = vmul.f32 0.03125, %v7576_v9  ;;  %v7681_v63 = vmul.f32 %v14397_v44, %v14397_v44 }
 0x878   : > { %v14405_v17 = vsub.f32 %v14171_v29, %v7622_v32  ;;  %v7770_v50 = vsel %vm15367_vm5, %v7684_v55, 0.0  ;;  %vm15388_vm5 = vmmov %vm15056_vm0 }
 0x879   : > { %v14409_v41 = vsub.f32 %v14164_v27, %v7619_v22  ;;  %v7591_v38 = vpop.xlane.xlu1 %7590  ;;  %v7761_v40 = vsel %vm15369_vm1, %v7681_v63, 0.0  ;;  %vm15389_vm1 = vmmov %vm15056_vm0 }
 0x87a   : > { %15366 = vst [vmem:[#allocation19_spill] sm:$0xff] %v14405_v17  ;;  %v7624_v26 = vmul.f32 0.03125, %v7591_v38  ;;  %7771 = vadd.xlane.f32.xlu1 %v7770_v50  ;;  %7762 = vadd.xlane.f32.xlu0 %v7761_v40  ;;  %v7582_v61 = vpop.xlane.xlu0 %7581  ;;  %v7686_v4 = vmul.f32 %v14405_v17, %v14405_v17 }
 0x87b   : > { %15368 = vst [vmem:[#allocation24_spill] sm:$0xff] %v14409_v41  ;;  %v7621_v9 = vmul.f32 0.03125, %v7582_v61  ;;  %v7683_v29 = vmul.f32 %v14409_v41, %v14409_v41 }
 0x87c   : > { %v14417_v32 = vsub.f32 %v14181_v48, %v7624_v26  ;;  %v7776_v27 = vsel %vm15371_vm4, %v7686_v4, 0.0  ;;  %vm15390_vm4 = vmmov %vm15056_vm0 }
 0x87d   : > { %v14421_v55 = vsub.f32 %v14176_v8, %v7621_v9  ;;  %v7767_v22 = vsel %vm15373_vm6, %v7683_v29, 0.0  ;;  %v8017_v9 = vld [vmem:[%s13914_s27 + $0xf0] sm:$0xff]  ;;  %v8018_v29 = vld [vmem:[%s13914_s27 + $0xf8] sm:$0xff]  ;;  %vm15391_vm6 = vmmov %vm15056_vm0 }
 0x87e   : > { %15370 = vst [vmem:[#allocation21_spill] sm:$0xff] %v14417_v32  ;;  %7777 = vadd.xlane.f32.xlu1 %v7776_v27  ;;  %7768 = vadd.xlane.f32.xlu0 %v7767_v22  ;;  %v7588_v63 = vpop.xlane.xlu0 %7587  ;;  %v7688_v50 = vmul.f32 %v14417_v32, %v14417_v32  ;;  %v14438_v27 = vpop.permute.xlu1 %8161 }
 0x87f   : > { %15372 = vst [vmem:[#allocation25_spill] sm:$0xff] %v14421_v55  ;;  %v7623_v38 = vmul.f32 0.03125, %v7588_v63  ;;  %v7685_v48 = vmul.f32 %v14421_v55, %v14421_v55  ;;  %15378 = vst [vmem:[#allocation2_spill] sm:$0xff] %v14438_v27 }
 0x880   : > { %v7782_v40 = vsel %vm15374_vm7, %v7688_v50, 0.0  ;;  %vm15392_vm7 = vmmov %vm15056_vm0 }
 0x881   : > { %v14430_v26 = vsub.f32 %v14184_v46, %v7623_v38  ;;  %v7773_v8 = vsel %vm15376_vm9, %v7685_v48, 0.0  ;;  %vm15393_vm9 = vmmov %vm15056_vm0 }
 0x882   : > { %7783 = vadd.xlane.f32.xlu1 %v7782_v40  ;;  %7774 = vadd.xlane.f32.xlu0 %v7773_v8 }
 0x883   : > { %15375 = vst [vmem:[#allocation26_spill] sm:$0xff] %v14430_v26  ;;  %v7687_v61 = vmul.f32 %v14430_v26, %v14430_v26 }
 0x885   : > { %v7779_v4 = vsel %vm15377_vm2, %v7687_v61, 0.0  ;;  %vm15394_vm2 = vmmov %vm15056_vm0 }
 0x886   : > { %7780 = vadd.xlane.f32.xlu0 %v7779_v4  ;;  %v14440_v22 = vpop.permute.xlu0 %8166 }
 0x887   : > { %15379 = vst [vmem:[#allocation28_spill] sm:$0xff] %v14440_v22 }
 0x893   : > { %8171 = vperm.xlu1 %10951, %v8017_v9  }
 0x89c   : > { %8176 = vperm.xlu0 %10950, %v8018_v29  }
 0x8d2   : > { %v7694_v46 = vpop.xlane.xlu1 %7693 }
 0x8d3   : > { %v7786_v63 = vmul.f32 0.03125, %v7694_v46  ;;  %v7691_v50 = vpop.xlane.xlu0 %7690 }
 0x8d4   : > { %v7785_v38 = vmul.f32 0.03125, %v7691_v50 }
 0x8d5   : > { %v7818_v48 = vadd.f32 1e-05, %v7786_v63  ;;  %v14445_v63 = vld [vmem:[%s14667_s9 + $0x2] ss:$0 sm:$0xff] }
 0x8d6   : > { %v7817_v40 = vadd.f32 1e-05, %v7785_v38 }
 0x8d7   : > { %10952 = vrsqrt.f32 %v7818_v48  ;;  %v7700_v8 = vpop.xlane.xlu1 %7699 }
 0x8d8   : > { %10954 = vrsqrt.f32 %v7817_v40  ;;  %v7788_v26 = vmul.f32 0.03125, %v7700_v8  ;;  %v14451_v40 = vld [vmem:[%s14667_s9 + $0x3] ss:$0 sm:$0xff] }
 0x8da   : > { %v7820_v61 = vadd.f32 1e-05, %v7788_v26 }
 0x8db   : > { %v7706_v4 = vpop.xlane.xlu1 %7705  ;;  %v7697_v55 = vpop.xlane.xlu0 %7696 }
 0x8dc   : > { %10956 = vrsqrt.f32 %v7820_v61  ;;  %v7790_v9 = vmul.f32 0.03125, %v7706_v4  ;;  %v7787_v29 = vmul.f32 0.03125, %v7697_v55 }
 0x8de   : > { %v7822_v32 = vadd.f32 1e-05, %v7790_v9  ;;  %v7819_v27 = vadd.f32 1e-05, %v7787_v29 }
 0x8df   : > { %v7712_v41 = vpop.xlane.xlu1 %7711  ;;  %v7703_v22 = vpop.xlane.xlu0 %7702 }
 0x8e0   : > { %10958 = vrsqrt.f32 %v7822_v32  ;;  %v7792_v46 = vmul.f32 0.03125, %v7712_v41  ;;  %v7789_v17 = vmul.f32 0.03125, %v7703_v22 }
 0x8e1   : > { %v10953_v50 = vpop.eup %10952  ;;  %10960 = vrsqrt.f32 %v7819_v27 }
 0x8e2   : > { %v10955_v26 = vpop.eup %10954  ;;  %v7882_v38 = vmul.f32 %v10953_v50, %v14245_v16  ;;  %v7824_v48 = vadd.f32 1e-05, %v7792_v46  ;;  %v7821_v55 = vadd.f32 1e-05, %v7789_v17 }
 0x8e3   : > { %v7881_v41 = vmul.f32 %v10955_v26, %v14248_v37  ;;  %v7718_v32 = vpop.xlane.xlu1 %7717  ;;  %v7709_v22 = vpop.xlane.xlu0 %7708 }
 0x8e4   : > { %v7919_v8 = vmul.f32 %v14445_v63, %v7882_v38  ;;  %10962 = vrsqrt.f32 %v7824_v48  ;;  %v7794_v61 = vmul.f32 0.03125, %v7718_v32  ;;  %v7791_v27 = vmul.f32 0.03125, %v7709_v22 }
 0x8e5   : > { %v7918_v4 = vmul.f32 %v14445_v63, %v7881_v41  ;;  %10964 = vrsqrt.f32 %v7821_v55 }
 0x8e6   : > { %v10957_v16 = vpop.eup %10956  ;;  %v7956_v17 = vadd.f32 %v14451_v40, %v7919_v8  ;;  %v7826_v9 = vadd.f32 1e-05, %v7794_v61  ;;  %v7823_v29 = vadd.f32 1e-05, %v7791_v27 }
 0x8e7   : > { %v7955_v37 = vadd.f32 %v14451_v40, %v7918_v4  ;;  %v7884_v46 = vmul.f32 %v10957_v16, %v14256_v15  ;;  %v7724_v50 = vpop.xlane.xlu1 %7723  ;;  %v7715_v26 = vpop.xlane.xlu0 %7714 }
 0x8e8   : > { %v8180_v38 = vmul.f32 %v14134_v12, %v7956_v17  ;;  %10966 = vrsqrt.f32 %v7826_v9  ;;  %v7796_v48 = vmul.f32 0.03125, %v7724_v50  ;;  %v7793_v55 = vmul.f32 0.03125, %v7715_v26 }
 0x8e9   : > { %v8179_v41 = vmul.f32 %v14201_v25, %v7955_v37  ;;  %v7921_v32 = vmul.f32 %v14445_v63, %v7884_v46  ;;  %10968 = vrsqrt.f32 %v7823_v29 }
 0x8ea   : > { %v10959_v22 = vpop.eup %10958  ;;  %8212 = vst.msk [vmem:[%s14462_s21 + $0x8] sm:$0xff] %vm15380_vm11, %v8180_v38  ;;  %v7828_v8 = vadd.f32 1e-05, %v7796_v48  ;;  %v7825_v61 = vadd.f32 1e-05, %v7793_v55  ;;  %vm15395_vm11 = vmmov %vm15056_vm0 }
 0x8eb   : > { %v10961_v27 = vpop.eup %10960  ;;  %8211 = vst.msk [vmem:[%s14462_s21] sm:$0xff] %vm15381_vm14, %v8179_v41  ;;  %v7958_v15 = vadd.f32 %v14451_v40, %v7921_v32  ;;  %v7886_v12 = vmul.f32 %v10959_v22, %v14262_v33  ;;  %v7730_v4 = vpop.xlane.xlu1 %7729  ;;  %vm15396_vm14 = vmmov %vm15056_vm0 }
 0x8ec   : > { %v7721_v16 = vpop.xlane.xlu0 %7720  ;;  %v7883_v25 = vmul.f32 %v10961_v27, %v14265_v24  ;;  %10970 = vrsqrt.f32 %v7828_v8  ;;  %v7798_v17 = vmul.f32 0.03125, %v7730_v4 }
 0x8ed   : > { %v7795_v9 = vmul.f32 0.03125, %v7721_v16  ;;  %v8182_v29 = vmul.f32 %v14168_v13, %v7958_v15  ;;  %v7923_v37 = vmul.f32 %v14445_v63, %v7886_v12  ;;  %10972 = vrsqrt.f32 %v7825_v61 }
 0x8ee   : > { %v10963_v46 = vpop.eup %10962  ;;  %v7920_v50 = vmul.f32 %v14445_v63, %v7883_v25  ;;  %v7830_v26 = vadd.f32 1e-05, %v7798_v17 }
 0x8ef   : > { %v7827_v38 = vadd.f32 1e-05, %v7795_v9  ;;  %v10965_v48 = vpop.eup %10964  ;;  %8214 = vst.msk [vmem:[%s14462_s21 + $0x18] sm:$0xff] %vm15382_vm15, %v8182_v29  ;;  %v7960_v33 = vadd.f32 %v14451_v40, %v7923_v37  ;;  %v7888_v24 = vmul.f32 %v10963_v46, %v14273_v7  ;;  %v7736_v55 = vpop.xlane.xlu1 %7735  ;;  %vm15397_vm15 = vmmov %vm15056_vm0 }
 0x8f0   : > { %v7727_v41 = vpop.xlane.xlu0 %7726  ;;  %v7957_v13 = vadd.f32 %v14451_v40, %v7920_v50  ;;  %v7885_v32 = vmul.f32 %v10965_v48, %v14277_v54  ;;  %10974 = vrsqrt.f32 %v7830_v26  ;;  %v7800_v22 = vmul.f32 0.03125, %v7736_v55 }
 0x8f1   : > { %v8184_v8 = vmul.f32 %v14194_v1, %v7960_v33  ;;  %v7925_v61 = vmul.f32 %v14445_v63, %v7888_v24  ;;  %10976 = vrsqrt.f32 %v7827_v38  ;;  %v7797_v27 = vmul.f32 0.03125, %v7727_v41 }
 0x8f2   : > { %v10967_v15 = vpop.eup %10966  ;;  %v8181_v12 = vmul.f32 %v14149_v23, %v7957_v13  ;;  %v7922_v7 = vmul.f32 %v14445_v63, %v7885_v32  ;;  %v7832_v4 = vadd.f32 1e-05, %v7800_v22 }
 0x8f3   : > { %v10969_v16 = vpop.eup %10968  ;;  %8216 = vst.msk [vmem:[%s14462_s21 + $0x28] sm:$0xff] %vm15383_vm13, %v8184_v8  ;;  %v7962_v54 = vadd.f32 %v14451_v40, %v7925_v61  ;;  %v7890_v25 = vmul.f32 %v10967_v15, %v14285_v11  ;;  %v7829_v17 = vadd.f32 1e-05, %v7797_v27  ;;  %v7742_v9 = vpop.xlane.xlu1 %7741  ;;  %vm15400_vm13 = vmmov %vm15056_vm0 }
 0x8f4   : > { %v7733_v1 = vpop.xlane.xlu0 %7732  ;;  %8213 = vst.msk [vmem:[%s14462_s21 + $0x10] sm:$0xff] %vm15384_vm12, %v8181_v12  ;;  %v7959_v29 = vadd.f32 %v14451_v40, %v7922_v7  ;;  %v7887_v23 = vmul.f32 %v10969_v16, %v14289_v52  ;;  %10978 = vrsqrt.f32 %v7832_v4  ;;  %v7802_v37 = vmul.f32 0.03125, %v7742_v9  ;;  %vm15401_vm12 = vmmov %vm15056_vm0 }
 0x8f5   : > { %v8186_v46 = vmul.f32 %v14199_v56, %v7962_v54  ;;  %v7927_v50 = vmul.f32 %v14445_v63, %v7890_v25  ;;  %10980 = vrsqrt.f32 %v7829_v17  ;;  %v7799_v26 = vmul.f32 0.03125, %v7733_v1 }
 0x8f6   : > { %v10971_v11 = vpop.eup %10970  ;;  %v8183_v38 = vmul.f32 %v14186_v53, %v7959_v29  ;;  %v7924_v48 = vmul.f32 %v14445_v63, %v7887_v23  ;;  %v7834_v33 = vadd.f32 1e-05, %v7802_v37 }
 0x8f7   : > { %v10973_v24 = vpop.eup %10972  ;;  %8218 = vst.msk [vmem:[%s14462_s21 + $0x38] sm:$0xff] %vm15385_vm8, %v8186_v46  ;;  %v7964_v52 = vadd.f32 %v14451_v40, %v7927_v50  ;;  %v7892_v55 = vmul.f32 %v10971_v11, %v14297_v47  ;;  %v7831_v41 = vadd.f32 1e-05, %v7799_v26  ;;  %v7748_v13 = vpop.xlane.xlu1 %7747  ;;  %vm15404_vm8 = vmmov %vm15056_vm0 }
 0x8f8   : > { %v7739_v56 = vpop.xlane.xlu0 %7738  ;;  %8215 = vst.msk [vmem:[%s14462_s21 + $0x20] sm:$0xff] %vm15386_vm10, %v8183_v38  ;;  %v7961_v32 = vadd.f32 %v14451_v40, %v7924_v48  ;;  %v7889_v53 = vmul.f32 %v10973_v24, %v14301_v43  ;;  %10982 = vrsqrt.f32 %v7834_v33  ;;  %v7804_v22 = vmul.f32 0.03125, %v7748_v13  ;;  %vm15405_vm10 = vmmov %vm15056_vm0 }
 0x8f9   : > { %v8188_v8 = vmul.f32 %v14205_v21, %v7964_v52  ;;  %v7929_v61 = vmul.f32 %v14445_v63, %v7892_v55  ;;  %10984 = vrsqrt.f32 %v7831_v41  ;;  %v7801_v27 = vmul.f32 0.03125, %v7739_v56 }
 0x8fa   : > { %v10975_v47 = vpop.eup %10974  ;;  %v8185_v15 = vmul.f32 %v14196_v35, %v7961_v32  ;;  %v7926_v12 = vmul.f32 %v14445_v63, %v7889_v53  ;;  %v7836_v7 = vadd.f32 1e-05, %v7804_v22 }
 0x8fb   : > { %v10977_v4 = vpop.eup %10976  ;;  %8220 = vst.msk [vmem:[%s14462_s21 + $0x48] sm:$0xff] %vm15387_vm3, %v8188_v8  ;;  %v7966_v43 = vadd.f32 %v14451_v40, %v7929_v61  ;;  %v7894_v16 = vmul.f32 %v10975_v47, %v14309_v19  ;;  %v7833_v54 = vadd.f32 1e-05, %v7801_v27  ;;  %v7754_v25 = vpop.xlane.xlu1 %7753  ;;  %vm15408_vm3 = vmmov %vm15056_vm0 }
 0x8fc   : > { %v7745_v21 = vpop.xlane.xlu0 %7744  ;;  %8217 = vst.msk [vmem:[%s14462_s21 + $0x30] sm:$0xff] %vm15056_vm0, %v8185_v15  ;;  %v7963_v17 = vadd.f32 %v14451_v40, %v7926_v12  ;;  %v7891_v35 = vmul.f32 %v10977_v4, %v14313_v30  ;;  %10986 = vrsqrt.f32 %v7836_v7  ;;  %v7806_v9 = vmul.f32 0.03125, %v7754_v25 }
 0x8fd   : > { %v8190_v1 = vmul.f32 %v14210_v51, %v7966_v43  ;;  %v7931_v29 = vmul.f32 %v14445_v63, %v7894_v16  ;;  %10988 = vrsqrt.f32 %v7833_v54  ;;  %v7803_v23 = vmul.f32 0.03125, %v7745_v21 }
 0x8fe   : > { %v10979_v19 = vpop.eup %10978  ;;  %v8187_v37 = vmul.f32 %v14203_v58, %v7963_v17  ;;  %v7928_v46 = vmul.f32 %v14445_v63, %v7891_v35  ;;  %v7838_v50 = vadd.f32 1e-05, %v7806_v9 }
 0x8ff   : > { %v10981_v26 = vpop.eup %10980  ;;  %8222 = vst.msk [vmem:[%s14462_s21 + $0x58] sm:$0xff] %vm15388_vm5, %v8190_v1  ;;  %v7968_v30 = vadd.f32 %v14451_v40, %v7931_v29  ;;  %v7896_v11 = vmul.f32 %v10979_v19, %v14321_v36  ;;  %v7835_v38 = vadd.f32 1e-05, %v7803_v23  ;;  %v7760_v48 = vpop.xlane.xlu1 %7759  ;;  %vm15413_vm5 = vmmov %vm15056_vm0 }
 0x900   : > { %v7751_v51 = vpop.xlane.xlu0 %7750  ;;  %8219 = vst.msk [vmem:[%s14462_s21 + $0x40] sm:$0xff] %vm15389_vm1, %v8187_v37  ;;  %v7965_v33 = vadd.f32 %v14451_v40, %v7928_v46  ;;  %v7893_v58 = vmul.f32 %v10981_v26, %v14325_v2  ;;  %10990 = vrsqrt.f32 %v7838_v50  ;;  %v7808_v24 = vmul.f32 0.03125, %v7760_v48  ;;  %vm15415_vm1 = vmmov %vm15056_vm0 }
 0x901   : > { %v8192_v52 = vmul.f32 %v14214_v31, %v7968_v30  ;;  %v7933_v55 = vmul.f32 %v14445_v63, %v7896_v11  ;;  %10992 = vrsqrt.f32 %v7835_v38  ;;  %v7805_v41 = vmul.f32 0.03125, %v7751_v51 }
 0x902   : > { %v10983_v36 = vpop.eup %10982  ;;  %v8189_v13 = vmul.f32 %v14208_v10, %v7965_v33  ;;  %v7930_v56 = vmul.f32 %v14445_v63, %v7893_v58  ;;  %v7840_v32 = vadd.f32 1e-05, %v7808_v24 }
 0x903   : > { %v10985_v53 = vpop.eup %10984  ;;  %8224 = vst.msk [vmem:[%s14462_s21 + $0x68] sm:$0xff] %vm15390_vm4, %v8192_v52  ;;  %v7970_v2 = vadd.f32 %v14451_v40, %v7933_v55  ;;  %v7898_v22 = vmul.f32 %v10983_v36, %v14333_v18  ;;  %v7837_v8 = vadd.f32 1e-05, %v7805_v41  ;;  %v7766_v61 = vpop.xlane.xlu1 %7765  ;;  %vm15419_vm4 = vmmov %vm15056_vm0 }
 0x904   : > { %v7757_v31 = vpop.xlane.xlu0 %7756  ;;  %8221 = vst.msk [vmem:[%s14462_s21 + $0x50] sm:$0xff] %vm15391_vm6, %v8189_v13  ;;  %v7967_v27 = vadd.f32 %v14451_v40, %v7930_v56  ;;  %v7895_v10 = vmul.f32 %v10985_v53, %v14337_v0  ;;  %10994 = vrsqrt.f32 %v7840_v32  ;;  %v7810_v47 = vmul.f32 0.03125, %v7766_v61  ;;  %vm15421_vm6 = vmmov %vm15056_vm0 }
 0x905   : > { %v8194_v15 = vmul.f32 %v14218_v60, %v7970_v2  ;;  %v7935_v12 = vmul.f32 %v14445_v63, %v7898_v22  ;;  %10996 = vrsqrt.f32 %v7837_v8  ;;  %v7807_v7 = vmul.f32 0.03125, %v7757_v31  ;;  %v15398_v2 = vld [vmem:[#allocation10_spill] sm:$0xff]  ;;  %v15399_v31 = vld [vmem:[#allocation36_spill] sm:$0xff] }
 0x906   : > { %v10987_v18 = vpop.eup %10986  ;;  %v8191_v4 = vmul.f32 %v14212_v34, %v7967_v27  ;;  %v7932_v43 = vmul.f32 %v14445_v63, %v7895_v10  ;;  %v7842_v16 = vadd.f32 1e-05, %v7810_v47 }
 0x907   : > { %v10989_v54 = vpop.eup %10988  ;;  %8226 = vst.msk [vmem:[%s14462_s21 + $0x78] sm:$0xff] %vm15392_vm7, %v8194_v15  ;;  %v7972_v0 = vadd.f32 %v14451_v40, %v7935_v12  ;;  %v7900_v25 = vmul.f32 %v10987_v18, %v14345_v62  ;;  %v7839_v21 = vadd.f32 1e-05, %v7807_v7  ;;  %v7772_v17 = vpop.xlane.xlu1 %7771  ;;  %vm15423_vm7 = vmmov %vm15056_vm0 }
 0x908   : > { %v7763_v60 = vpop.xlane.xlu0 %7762  ;;  %8223 = vst.msk [vmem:[%s14462_s21 + $0x60] sm:$0xff] %vm15393_vm9, %v8191_v4  ;;  %v7969_v35 = vadd.f32 %v14451_v40, %v7932_v43  ;;  %v7897_v34 = vmul.f32 %v10989_v54, %v14349_v28  ;;  %10998 = vrsqrt.f32 %v7842_v16  ;;  %v7812_v9 = vmul.f32 0.03125, %v7772_v17  ;;  %v15402_v54 = vld [vmem:[#allocation13_spill] sm:$0xff]  ;;  %v15403_v17 = vld [vmem:[#allocation35_spill] sm:$0xff]  ;;  %vm15424_vm9 = vmmov %vm15056_vm0 }
 0x909   : > { %v8196_v1 = vmul.f32 %v14222_v59, %v7972_v0  ;;  %v7937_v29 = vmul.f32 %v14445_v63, %v7900_v25  ;;  %11000 = vrsqrt.f32 %v7839_v21  ;;  %v7809_v23 = vmul.f32 0.03125, %v7763_v60 }
 0x90a   : > { %v10991_v62 = vpop.eup %10990  ;;  %v8193_v19 = vmul.f32 %v14216_v20, %v7969_v35  ;;  %v7934_v37 = vmul.f32 %v14445_v63, %v7897_v34  ;;  %v7844_v46 = vadd.f32 1e-05, %v7812_v9 }
 0x90b   : > { %v10993_v50 = vpop.eup %10992  ;;  %8228 = vst.msk [vmem:[%s14462_s21 + $0x88] sm:$0xff] %vm15394_vm2, %v8196_v1  ;;  %v7974_v28 = vadd.f32 %v14451_v40, %v7937_v29  ;;  %v7902_v26 = vmul.f32 %v10991_v62, %v14357_v45  ;;  %v7841_v30 = vadd.f32 1e-05, %v7809_v23  ;;  %v7778_v11 = vpop.xlane.xlu1 %7777  ;;  %v15406_v23 = vld [vmem:[#allocation20_spill] sm:$0xff]  ;;  %vm15425_vm2 = vmmov %vm15056_vm0 }
 0x90c   : > { %v7769_v59 = vpop.xlane.xlu0 %7768  ;;  %8225 = vst.msk [vmem:[%s14462_s21 + $0x70] sm:$0xff] %vm15395_vm11, %v8193_v19  ;;  %v7971_v38 = vadd.f32 %v14451_v40, %v7934_v37  ;;  %v7899_v20 = vmul.f32 %v10993_v50, %v14361_v39  ;;  %11002 = vrsqrt.f32 %v7844_v46  ;;  %v7814_v48 = vmul.f32 0.03125, %v7778_v11  ;;  %v15407_v46 = vld [vmem:[#allocation18_spill] sm:$0xff] }
 0x90d   : > { %v8198_v51 = vmul.f32 %v14226_v57, %v7974_v28  ;;  %v7939_v33 = vmul.f32 %v14445_v63, %v7902_v26  ;;  %11004 = vrsqrt.f32 %v7841_v30  ;;  %v7811_v58 = vmul.f32 0.03125, %v7769_v59  ;;  %v15409_v30 = vld [vmem:[#allocation19_spill] sm:$0xff]  ;;  %v15410_v59 = vld [vmem:[#allocation24_spill] sm:$0xff] }
 0x90e   : > { %v10995_v45 = vpop.eup %10994  ;;  %v8195_v24 = vmul.f32 %v14220_v49, %v7971_v38  ;;  %v7936_v52 = vmul.f32 %v14445_v63, %v7899_v20  ;;  %v7846_v55 = vadd.f32 1e-05, %v7814_v48  ;;  %v15411_v20 = vld [vmem:[#allocation22_spill] sm:$0xff] }
 0x90f   : > { %v10997_v41 = vpop.eup %10996  ;;  %8230 = vst.msk [vmem:[%s14462_s21 + $0x98] sm:$0xff] %vm15396_vm14, %v8198_v51  ;;  %v7976_v39 = vadd.f32 %v14451_v40, %v7939_v33  ;;  %v7904_v36 = vmul.f32 %v10995_v45, %v14369_v14  ;;  %v7843_v13 = vadd.f32 1e-05, %v7811_v58  ;;  %v7784_v56 = vpop.xlane.xlu1 %7783  ;;  %v15412_v58 = vld [vmem:[#allocation11_spill] sm:$0xff] }
 0x910   : > { %v7775_v57 = vpop.xlane.xlu0 %7774  ;;  %8227 = vst.msk [vmem:[%s14462_s21 + $0x80] sm:$0xff] %vm15397_vm15, %v8195_v24  ;;  %v7973_v32 = vadd.f32 %v14451_v40, %v7936_v52  ;;  %v7901_v49 = vmul.f32 %v10997_v41, %v14373_v5  ;;  %11006 = vrsqrt.f32 %v7846_v55  ;;  %v7816_v53 = vmul.f32 0.03125, %v7784_v56  ;;  %v15414_v41 = vld [vmem:[#allocation21_spill] sm:$0xff] }
 0x911   : > { %v8200_v22 = vmul.f32 %v15398_v2, %v7976_v39  ;;  %v7941_v8 = vmul.f32 %v14445_v63, %v7904_v36  ;;  %11008 = vrsqrt.f32 %v7843_v13  ;;  %v7813_v61 = vmul.f32 0.03125, %v7775_v57  ;;  %v15416_v13 = vld [vmem:[#allocation25_spill] sm:$0xff]  ;;  %v15417_v57 = vld [vmem:[#allocation28_spill] sm:$0xff] }
 0x912   : > { %v10999_v14 = vpop.eup %10998  ;;  %v8197_v27 = vmul.f32 %v15399_v31, %v7973_v32  ;;  %v7938_v10 = vmul.f32 %v14445_v63, %v7901_v49  ;;  %v7848_v47 = vadd.f32 1e-05, %v7816_v53  ;;  %v15418_v2 = vld [vmem:[#allocation17_spill] sm:$0xff] }
 0x913   : > { %v11001_v15 = vpop.eup %11000  ;;  %8232 = vst.msk [vmem:[%s14462_s21 + $0xa8] sm:$0xff] %vm15400_vm13, %v8200_v22  ;;  %v7978_v5 = vadd.f32 %v14451_v40, %v7941_v8  ;;  %v7906_v12 = vmul.f32 %v10999_v14, %v14381_v3  ;;  %v7845_v7 = vadd.f32 1e-05, %v7813_v61  ;;  %v15420_v61 = vld [vmem:[#allocation26_spill] sm:$0xff] }
 0x914   : > { %v7781_v18 = vpop.xlane.xlu0 %7780  ;;  %8229 = vst.msk [vmem:[%s14462_s21 + $0x90] sm:$0xff] %vm15401_vm12, %v8197_v27  ;;  %v7975_v4 = vadd.f32 %v14451_v40, %v7938_v10  ;;  %v7903_v43 = vmul.f32 %v11001_v15, %v14385_v6  ;;  %11010 = vrsqrt.f32 %v7848_v47 }
 0x915   : > { %v7815_v16 = vmul.f32 0.03125, %v7781_v18  ;;  %v8202_v0 = vmul.f32 %v15402_v54, %v7978_v5  ;;  %v7943_v25 = vmul.f32 %v14445_v63, %v7906_v12  ;;  %11012 = vrsqrt.f32 %v7845_v7  ;;  %v15422_v5 = vld [vmem:[#allocation2_spill] sm:$0xff]  ;;  %v8172_v18 = vpop.permute.xlu1 %8171 }
 0x916   : > { %v11003_v21 = vpop.eup %11002  ;;  %v8199_v3 = vmul.f32 %v15403_v17, %v7975_v4  ;;  %v7940_v60 = vmul.f32 %v14445_v63, %v7903_v43 }
 0x917   : > { %v7847_v35 = vadd.f32 1e-05, %v7815_v16  ;;  %v11005_v34 = vpop.eup %11004  ;;  %8234 = vst.msk [vmem:[%s14462_s21 + $0xb8] sm:$0xff] %vm15404_vm8, %v8202_v0  ;;  %v7980_v6 = vadd.f32 %v14451_v40, %v7943_v25  ;;  %v7908_v9 = vmul.f32 %v11003_v21, %v14393_v42 }
 0x918   : > { %8231 = vst.msk [vmem:[%s14462_s21 + $0xa0] sm:$0xff] %vm15405_vm10, %v8199_v3  ;;  %v7977_v1 = vadd.f32 %v14451_v40, %v7940_v60  ;;  %v7905_v29 = vmul.f32 %v11005_v34, %v14397_v44 }
 0x919   : > { %11014 = vrsqrt.f32 %v7847_v35  ;;  %v8204_v62 = vmul.f32 %v15406_v23, %v7980_v6  ;;  %v7945_v19 = vmul.f32 %v14445_v63, %v7908_v9 }
 0x91a   : > { %v11007_v37 = vpop.eup %11006  ;;  %v8201_v50 = vmul.f32 %v15407_v46, %v7977_v1  ;;  %v7942_v28 = vmul.f32 %v14445_v63, %v7905_v29 }
 0x91b   : > { %v11009_v26 = vpop.eup %11008  ;;  %8236 = vst.msk [vmem:[%s14462_s21 + $0xc8] sm:$0xff] %vm15408_vm3, %v8204_v62  ;;  %v7982_v42 = vadd.f32 %v14451_v40, %v7945_v19  ;;  %v7910_v11 = vmul.f32 %v11007_v37, %v15409_v30  ;;  %v8177_v10 = vpop.permute.xlu0 %8176 }
 0x91c   : > { %8233 = vst.msk [vmem:[%s14462_s21 + $0xb0] sm:$0xff] %vm15056_vm0, %v8201_v50  ;;  %v7979_v44 = vadd.f32 %v14451_v40, %v7942_v28  ;;  %v7907_v38 = vmul.f32 %v11009_v26, %v15410_v59 }
 0x91d   : > { %v8206_v48 = vmul.f32 %v15411_v20, %v7982_v42  ;;  %v7947_v51 = vmul.f32 %v14445_v63, %v7910_v11 }
 0x91e   : > { %v11011_v33 = vpop.eup %11010  ;;  %v8203_v45 = vmul.f32 %v15412_v58, %v7979_v44  ;;  %v7944_v24 = vmul.f32 %v14445_v63, %v7907_v38 }
 0x91f   : > { %v11013_v52 = vpop.eup %11012  ;;  %8238 = vst.msk [vmem:[%s14462_s21 + $0xd8] sm:$0xff] %vm15413_vm5, %v8206_v48  ;;  %v7984_v55 = vadd.f32 %v14451_v40, %v7947_v51  ;;  %v7912_v39 = vmul.f32 %v11011_v33, %v15414_v41 }
 0x920   : > { %8235 = vst.msk [vmem:[%s14462_s21 + $0xc0] sm:$0xff] %vm15415_vm1, %v8203_v45  ;;  %v7981_v36 = vadd.f32 %v14451_v40, %v7944_v24  ;;  %v7909_v56 = vmul.f32 %v11013_v52, %v15416_v13 }
 0x921   : > { %v8208_v32 = vmul.f32 %v15417_v57, %v7984_v55  ;;  %v7949_v49 = vmul.f32 %v14445_v63, %v7912_v39 }
 0x922   : > { %v8205_v22 = vmul.f32 %v15418_v2, %v7981_v36  ;;  %v7946_v8 = vmul.f32 %v14445_v63, %v7909_v56 }
 0x923   : > { %v11015_v53 = vpop.eup %11014  ;;  %8240 = vst.msk [vmem:[%s14462_s21 + $0xe8] sm:$0xff] %vm15419_vm4, %v8208_v32  ;;  %v7986_v31 = vadd.f32 %v14451_v40, %v7949_v49 }
 0x924   : > { %v7911_v14 = vmul.f32 %v11015_v53, %v15420_v61  ;;  %8237 = vst.msk [vmem:[%s14462_s21 + $0xd0] sm:$0xff] %vm15421_vm6, %v8205_v22  ;;  %v7983_v27 = vadd.f32 %v14451_v40, %v7946_v8 }
 0x925   : > { %v8210_v15 = vmul.f32 %v8177_v10, %v7986_v31 }
 0x926   : > { %v7948_v47 = vmul.f32 %v14445_v63, %v7911_v14  ;;  %v8207_v12 = vmul.f32 %v15422_v5, %v7983_v27 }
 0x927   : > { %8242 = vst.msk [vmem:[%s14462_s21 + $0xf8] sm:$0xff] %vm15423_vm7, %v8210_v15 }
 0x928   : > { %v7985_v7 = vadd.f32 %v14451_v40, %v7948_v47  ;;  %8239 = vst.msk [vmem:[%s14462_s21 + $0xe0] sm:$0xff] %vm15424_vm9, %v8207_v12 }
 0x92a   : > { %v8209_v4 = vmul.f32 %v8172_v18, %v7985_v7 }
 0x92c   : > { %8241 = vst.msk [vmem:[%s14462_s21 + $0xf0] sm:$0xff] %vm15425_vm2, %v8209_v4 }
 0x92d PF: > { %s20_s15 = sadd.s32 1, %s11044_s15   ;;  %s15426_s13 = smov %s11040_s14 }
 0x92e   : > { %p17_p5 = scmp.ge.s32.totalorder %s20_s15, 4   ;;  %s15427_s14 = smov %s15429_s16 }
 0x930   :  { %19 = sbr.rel (!%p17_p5) target bundleno = 2 (0x2), region = 107 }

</bundles_post_ra>
